<compile_context>
chip_gen: v7x
topology: tpu7x:2x2x1
jax: 0.10.0
libtpu: 0.0.40
codegen_flags: <defaults>
</compile_context>

<pallas_src>
import functools

import jax
import jax.numpy as jnp
from jax.experimental import pallas as pl
from jax.experimental.pallas import tpu as pltpu


# k_size -> (K0, Ks, dilation), matching the PyTorch LSKA constructor.
_LSKA_CFG = {
    7: (3, 3, 2),
    11: (3, 5, 2),
    23: (5, 7, 3),
    35: (5, 11, 3),
    41: (5, 13, 3),
    53: (5, 17, 3),
}


def _lska_kernel(x_ref, w0h_ref, b0h_ref, w0v_ref, b0v_ref,
                 wsh_ref, bsh_ref, wsv_ref, bsv_ref, w1_ref, b1_ref,
                 o_ref, *, H, W, C, K0, Ks, dil):
    """One batch element: x_ref (1,H,W,C) -> o_ref (1,H,W,C), C on lanes."""

    def dw_conv(a, w_ref, b_ref, K, d, axis):
        # Depthwise "same" conv along `axis` (0=H, 1=W) with dilation d.
        L = a.shape[axis]
        pad = d * (K - 1) // 2
        zshape = list(a.shape)
        zshape[axis] = pad
        z = jnp.zeros(zshape, jnp.float32)
        ap = jnp.concatenate([z, a, z], axis=axis)          # in-kernel halo
        acc = jnp.zeros((H, W, C), jnp.float32) + b_ref[0, :]
        for t in range(K):                                   # K small, unrolled
            tap = jax.lax.slice_in_dim(ap, t * d, t * d + L, axis=axis)
            acc = acc + tap * w_ref[t, :]                    # full-lane VPU FMA
        return acc

    x = x_ref[0].astype(jnp.float32)                         # (H, W, C)

    a = dw_conv(x, w0h_ref, b0h_ref, K0, 1, axis=1)          # (1,K0)   along W
    a = dw_conv(a, w0v_ref, b0v_ref, K0, 1, axis=0)          # (K0,1)   along H
    a = dw_conv(a, wsh_ref, bsh_ref, Ks, dil, axis=1)        # (1,Ks) dil along W
    a = dw_conv(a, wsv_ref, bsv_ref, Ks, dil, axis=0)        # (Ks,1) dil along H

    # 1x1 dense conv: one (H*W, C) x (C, C) MXU matmul, f32 accumulation.
    attn = jnp.dot(a.reshape(H * W, C), w1_ref[...],
                   preferred_element_type=jnp.float32) + b1_ref[0, :]

    # Elementwise gate with the (unmodified) input; lane-dense unmasked store.
    o_ref[0] = (x * attn.reshape(H, W, C)).astype(o_ref.dtype)


@functools.partial(jax.jit, static_argnames=("k_size",))
def lska_forward(x_nchw, w0h, b0h, w0v, b0v, wsh, bsh, wsv, bsv, w1, b1,
                 k_size=7):
    """LSKA forward. Weights are in PyTorch layouts:
       w0h (C,1,1,K0), w0v (C,1,K0,1), wsh (C,1,1,Ks), wsv (C,1,Ks,1),
       w1 (C,C,1,1); biases are (C,)."""
    K0, Ks, dil = _LSKA_CFG[k_size]
    N, C, H, W = x_nchw.shape

    # NCHW -> NHWC so channels sit on the 128-lane axis.
    x_nhwc = jnp.transpose(x_nchw, (0, 2, 3, 1))

    # Pack depthwise weights as (K, C) rows; 1x1 weight as (C_in, C_out).
    w0h_p = jnp.transpose(w0h[:, 0, 0, :], (1, 0)).astype(jnp.float32)
    w0v_p = jnp.transpose(w0v[:, 0, :, 0], (1, 0)).astype(jnp.float32)
    wsh_p = jnp.transpose(wsh[:, 0, 0, :], (1, 0)).astype(jnp.float32)
    wsv_p = jnp.transpose(wsv[:, 0, :, 0], (1, 0)).astype(jnp.float32)
    w1_p = jnp.transpose(w1[:, :, 0, 0], (1, 0)).astype(jnp.float32)

    vec = lambda v: v.reshape(1, C).astype(jnp.float32)
    full = lambda shape: pl.BlockSpec(shape, lambda n: (0,) * len(shape))

    kernel = functools.partial(_lska_kernel, H=H, W=W, C=C,
                               K0=K0, Ks=Ks, dil=dil)

    y_nhwc = pl.pallas_call(
        kernel,
        out_shape=jax.ShapeDtypeStruct((N, H, W, C), x_nhwc.dtype),
        grid_spec=pltpu.PrefetchScalarGridSpec(
            num_scalar_prefetch=0,
            grid=(N,),
            in_specs=[
                pl.BlockSpec((1, H, W, C), lambda n: (n, 0, 0, 0)),
                full((K0, C)), full((1, C)),     # conv0h
                full((K0, C)), full((1, C)),     # conv0v
                full((Ks, C)), full((1, C)),     # conv_spatial_h
                full((Ks, C)), full((1, C)),     # conv_spatial_v
                full((C, C)), full((1, C)),      # conv1 (1x1)
            ],
            out_specs=pl.BlockSpec((1, H, W, C), lambda n: (n, 0, 0, 0)),
        ),
        compiler_params=pltpu.CompilerParams(
            dimension_semantics=("parallel",),
            vmem_limit_bytes=32 * 1024 * 1024),
    )(x_nhwc,
      w0h_p, vec(b0h), w0v_p, vec(b0v),
      wsh_p, vec(bsh), wsv_p, vec(bsv),
      w1_p, vec(b1))

    return jnp.transpose(y_nhwc, (0, 3, 1, 2))               # NHWC -> NCHW


# ----------------------------- reference -----------------------------------
def lska_reference(x, w0h, b0h, w0v, b0v, wsh, bsh, wsv, bsv, w1, b1,
                   k_size=7):
    K0, Ks, dil = _LSKA_CFG[k_size]
    C = x.shape[1]
    p0 = (K0 - 1) // 2
    ps = dil * (Ks - 1) // 2

    def dw(a, w, b, pad, rhs_dil):
        y = jax.lax.conv_general_dilated(
            a, w, window_strides=(1, 1), padding=list(pad),
            rhs_dilation=rhs_dil,
            dimension_numbers=("NCHW", "OIHW", "NCHW"),
            feature_group_count=C,
            precision=jax.lax.Precision.HIGHEST)
        return y + b.reshape(1, -1, 1, 1)

    a = dw(x, w0h, b0h, ((0, 0), (p0, p0)), (1, 1))
    a = dw(a, w0v, b0v, ((p0, p0), (0, 0)), (1, 1))
    a = dw(a, wsh, bsh, ((0, 0), (ps, ps)), (1, dil))
    a = dw(a, wsv, bsv, ((ps, ps), (0, 0)), (dil, 1))
    a = jax.lax.conv_general_dilated(
        a, w1, (1, 1), [(0, 0), (0, 0)],
        dimension_numbers=("NCHW", "OIHW", "NCHW"),
        precision=jax.lax.Precision.HIGHEST) + b1.reshape(1, -1, 1, 1)
    return x * a


if __name__ == "__main__":
    # LSKA(dim=128, k_size=7) on input (N=2, C=128, H=16, W=16).
    # dim=128 keeps channels lane-dense (one full vreg lane axis).
    N, C, H, W = 2, 128, 16, 16
    k_size = 7
    K0, Ks, dil = _LSKA_CFG[k_size]

    key = jax.random.PRNGKey(0)
    ks = jax.random.split(key, 11)

    x = jax.random.normal(ks[0], (N, C, H, W), dtype=jnp.float32)
    w0h = 0.3 * jax.random.normal(ks[1], (C, 1, 1, K0), dtype=jnp.float32)
    b0h = 0.1 * jax.random.normal(ks[2], (C,), dtype=jnp.float32)
    w0v = 0.3 * jax.random.normal(ks[3], (C, 1, K0, 1), dtype=jnp.float32)
    b0v = 0.1 * jax.random.normal(ks[4], (C,), dtype=jnp.float32)
    wsh = 0.3 * jax.random.normal(ks[5], (C, 1, 1, Ks), dtype=jnp.float32)
    bsh = 0.1 * jax.random.normal(ks[6], (C,), dtype=jnp.float32)
    wsv = 0.3 * jax.random.normal(ks[7], (C, 1, Ks, 1), dtype=jnp.float32)
    bsv = 0.1 * jax.random.normal(ks[8], (C,), dtype=jnp.float32)
    w1 = 0.1 * jax.random.normal(ks[9], (C, C, 1, 1), dtype=jnp.float32)
    b1 = 0.1 * jax.random.normal(ks[10], (C,), dtype=jnp.float32)

    out = lska_forward(x, w0h, b0h, w0v, b0v, wsh, bsh, wsv, bsv, w1, b1,
                       k_size=k_size)
    out = jax.block_until_ready(out)

    ref = lska_reference(x, w0h, b0h, w0v, b0v, wsh, bsh, wsv, bsv, w1, b1,
                         k_size=k_size)

    assert out.shape == (N, C, H, W)
    scale = jnp.max(jnp.abs(ref)) + 1e-6
    max_err = jnp.max(jnp.abs(out - ref))
    assert max_err < 2e-3 * scale + 1e-4, float(max_err)

    print("KERNEL_OK")
</pallas_src>

<mosaic_0001>
module attributes {stable_mosaic.version = 11 : i64} {
  func.func @_lska_kernel(%arg0: i32, %arg1: memref<1x16x16x128xf32, #tpu.memory_space<vmem>>, %arg2: memref<3x128xf32, #tpu.memory_space<vmem>>, %arg3: memref<1x128xf32, #tpu.memory_space<vmem>>, %arg4: memref<3x128xf32, #tpu.memory_space<vmem>>, %arg5: memref<1x128xf32, #tpu.memory_space<vmem>>, %arg6: memref<3x128xf32, #tpu.memory_space<vmem>>, %arg7: memref<1x128xf32, #tpu.memory_space<vmem>>, %arg8: memref<3x128xf32, #tpu.memory_space<vmem>>, %arg9: memref<1x128xf32, #tpu.memory_space<vmem>>, %arg10: memref<128x128xf32, #tpu.memory_space<vmem>>, %arg11: memref<1x128xf32, #tpu.memory_space<vmem>>, %arg12: memref<1x16x16x128xf32, #tpu.memory_space<vmem>>) attributes {dimension_semantics = [#tpu.dimension_semantics<parallel>], iteration_bounds = array<i64: 2>, scalar_prefetch = 0 : i64, scratch_operands = 0 : i64, tpu.core_type = #tpu.core_type<tc>, window_params = [{transform_indices = @transform_0, window_bounds = array<i64: 1, 16, 16, 128>}, {pipeline_mode = #tpu.pipeline_mode<synchronous>, transform_indices = @transform_1, window_bounds = array<i64: 3, 128>}, {pipeline_mode = #tpu.pipeline_mode<synchronous>, transform_indices = @transform_2, window_bounds = array<i64: 1, 128>}, {pipeline_mode = #tpu.pipeline_mode<synchronous>, transform_indices = @transform_3, window_bounds = array<i64: 3, 128>}, {pipeline_mode = #tpu.pipeline_mode<synchronous>, transform_indices = @transform_4, window_bounds = array<i64: 1, 128>}, {pipeline_mode = #tpu.pipeline_mode<synchronous>, transform_indices = @transform_5, window_bounds = array<i64: 3, 128>}, {pipeline_mode = #tpu.pipeline_mode<synchronous>, transform_indices = @transform_6, window_bounds = array<i64: 1, 128>}, {pipeline_mode = #tpu.pipeline_mode<synchronous>, transform_indices = @transform_7, window_bounds = array<i64: 3, 128>}, {pipeline_mode = #tpu.pipeline_mode<synchronous>, transform_indices = @transform_8, window_bounds = array<i64: 1, 128>}, {pipeline_mode = #tpu.pipeline_mode<synchronous>, transform_indices = @transform_9, window_bounds = array<i64: 128, 128>}, {pipeline_mode = #tpu.pipeline_mode<synchronous>, transform_indices = @transform_10, window_bounds = array<i64: 1, 128>}, {transform_indices = @transform_11, window_bounds = array<i64: 1, 16, 16, 128>}]} {
    %c0 = arith.constant 0 : index
    %c0_0 = arith.constant 0 : index
    %c0_1 = arith.constant 0 : index
    %c0_2 = arith.constant 0 : index
    %0 = vector.load %arg1[%c0, %c0_0, %c0_1, %c0_2] : memref<1x16x16x128xf32, #tpu.memory_space<vmem>>, vector<1x16x16x128xf32>
    %1 = vector.shape_cast %0 : vector<1x16x16x128xf32> to vector<16x16x128xf32>
    %cst = arith.constant 0.000000e+00 : f32
    %2 = vector.broadcast %cst : f32 to vector<16x1x128xf32>
    %3 = tpu.concatenate %2, %1, %2 in 1 : vector<16x1x128xf32>, vector<16x16x128xf32>, vector<16x1x128xf32> -> vector<16x18x128xf32>
    %cst_3 = arith.constant 0.000000e+00 : f32
    %4 = vector.broadcast %cst_3 : f32 to vector<16x16x128xf32>
    %c0_4 = arith.constant 0 : index
    %c0_5 = arith.constant 0 : index
    %5 = vector.load %arg3[%c0_4, %c0_5] : memref<1x128xf32, #tpu.memory_space<vmem>>, vector<1x128xf32>
    %6 = vector.shape_cast %5 : vector<1x128xf32> to vector<128xf32>
    %7 = vector.shape_cast %6 : vector<128xf32> to vector<1x1x128xf32>
    %8 = vector.broadcast %7 : vector<1x1x128xf32> to vector<16x16x128xf32>
    %9 = arith.addf %4, %8 : vector<16x16x128xf32>
    %10 = vector.extract_strided_slice %3 {offsets = [0, 0, 0], sizes = [16, 16, 128], strides = [1, 1, 1]} : vector<16x18x128xf32> to vector<16x16x128xf32>
    %c0_6 = arith.constant 0 : index
    %c0_7 = arith.constant 0 : index
    %11 = vector.load %arg2[%c0_6, %c0_7] : memref<3x128xf32, #tpu.memory_space<vmem>>, vector<1x128xf32>
    %12 = vector.shape_cast %11 : vector<1x128xf32> to vector<128xf32>
    %13 = vector.shape_cast %12 : vector<128xf32> to vector<1x1x128xf32>
    %14 = vector.broadcast %13 : vector<1x1x128xf32> to vector<16x16x128xf32>
    %15 = arith.mulf %10, %14 : vector<16x16x128xf32>
    %16 = arith.addf %9, %15 : vector<16x16x128xf32>
    %17 = vector.extract_strided_slice %3 {offsets = [0, 1, 0], sizes = [16, 16, 128], strides = [1, 1, 1]} : vector<16x18x128xf32> to vector<16x16x128xf32>
    %c1 = arith.constant 1 : index
    %c0_8 = arith.constant 0 : index
    %18 = vector.load %arg2[%c1, %c0_8] : memref<3x128xf32, #tpu.memory_space<vmem>>, vector<1x128xf32>
    %19 = vector.shape_cast %18 : vector<1x128xf32> to vector<128xf32>
    %20 = vector.shape_cast %19 : vector<128xf32> to vector<1x1x128xf32>
    %21 = vector.broadcast %20 : vector<1x1x128xf32> to vector<16x16x128xf32>
    %22 = arith.mulf %17, %21 : vector<16x16x128xf32>
    %23 = arith.addf %16, %22 : vector<16x16x128xf32>
    %24 = vector.extract_strided_slice %3 {offsets = [0, 2, 0], sizes = [16, 16, 128], strides = [1, 1, 1]} : vector<16x18x128xf32> to vector<16x16x128xf32>
    %c2 = arith.constant 2 : index
    %c0_9 = arith.constant 0 : index
    %25 = vector.load %arg2[%c2, %c0_9] : memref<3x128xf32, #tpu.memory_space<vmem>>, vector<1x128xf32>
    %26 = vector.shape_cast %25 : vector<1x128xf32> to vector<128xf32>
    %27 = vector.shape_cast %26 : vector<128xf32> to vector<1x1x128xf32>
    %28 = vector.broadcast %27 : vector<1x1x128xf32> to vector<16x16x128xf32>
    %29 = arith.mulf %24, %28 : vector<16x16x128xf32>
    %30 = arith.addf %23, %29 : vector<16x16x128xf32>
    %cst_10 = arith.constant 0.000000e+00 : f32
    %31 = vector.broadcast %cst_10 : f32 to vector<1x16x128xf32>
    %32 = tpu.concatenate %31, %30, %31 in 0 : vector<1x16x128xf32>, vector<16x16x128xf32>, vector<1x16x128xf32> -> vector<18x16x128xf32>
    %cst_11 = arith.constant 0.000000e+00 : f32
    %33 = vector.broadcast %cst_11 : f32 to vector<16x16x128xf32>
    %c0_12 = arith.constant 0 : index
    %c0_13 = arith.constant 0 : index
    %34 = vector.load %arg5[%c0_12, %c0_13] : memref<1x128xf32, #tpu.memory_space<vmem>>, vector<1x128xf32>
    %35 = vector.shape_cast %34 : vector<1x128xf32> to vector<128xf32>
    %36 = vector.shape_cast %35 : vector<128xf32> to vector<1x1x128xf32>
    %37 = vector.broadcast %36 : vector<1x1x128xf32> to vector<16x16x128xf32>
    %38 = arith.addf %33, %37 : vector<16x16x128xf32>
    %39 = vector.extract_strided_slice %32 {offsets = [0, 0, 0], sizes = [16, 16, 128], strides = [1, 1, 1]} : vector<18x16x128xf32> to vector<16x16x128xf32>
    %c0_14 = arith.constant 0 : index
    %c0_15 = arith.constant 0 : index
    %40 = vector.load %arg4[%c0_14, %c0_15] : memref<3x128xf32, #tpu.memory_space<vmem>>, vector<1x128xf32>
    %41 = vector.shape_cast %40 : vector<1x128xf32> to vector<128xf32>
    %42 = vector.shape_cast %41 : vector<128xf32> to vector<1x1x128xf32>
    %43 = vector.broadcast %42 : vector<1x1x128xf32> to vector<16x16x128xf32>
    %44 = arith.mulf %39, %43 : vector<16x16x128xf32>
    %45 = arith.addf %38, %44 : vector<16x16x128xf32>
    %46 = vector.extract_strided_slice %32 {offsets = [1, 0, 0], sizes = [16, 16, 128], strides = [1, 1, 1]} : vector<18x16x128xf32> to vector<16x16x128xf32>
    %c1_16 = arith.constant 1 : index
    %c0_17 = arith.constant 0 : index
    %47 = vector.load %arg4[%c1_16, %c0_17] : memref<3x128xf32, #tpu.memory_space<vmem>>, vector<1x128xf32>
    %48 = vector.shape_cast %47 : vector<1x128xf32> to vector<128xf32>
    %49 = vector.shape_cast %48 : vector<128xf32> to vector<1x1x128xf32>
    %50 = vector.broadcast %49 : vector<1x1x128xf32> to vector<16x16x128xf32>
    %51 = arith.mulf %46, %50 : vector<16x16x128xf32>
    %52 = arith.addf %45, %51 : vector<16x16x128xf32>
    %53 = vector.extract_strided_slice %32 {offsets = [2, 0, 0], sizes = [16, 16, 128], strides = [1, 1, 1]} : vector<18x16x128xf32> to vector<16x16x128xf32>
    %c2_18 = arith.constant 2 : index
    %c0_19 = arith.constant 0 : index
    %54 = vector.load %arg4[%c2_18, %c0_19] : memref<3x128xf32, #tpu.memory_space<vmem>>, vector<1x128xf32>
    %55 = vector.shape_cast %54 : vector<1x128xf32> to vector<128xf32>
    %56 = vector.shape_cast %55 : vector<128xf32> to vector<1x1x128xf32>
    %57 = vector.broadcast %56 : vector<1x1x128xf32> to vector<16x16x128xf32>
    %58 = arith.mulf %53, %57 : vector<16x16x128xf32>
    %59 = arith.addf %52, %58 : vector<16x16x128xf32>
    %cst_20 = arith.constant 0.000000e+00 : f32
    %60 = vector.broadcast %cst_20 : f32 to vector<16x2x128xf32>
    %61 = tpu.concatenate %60, %59, %60 in 1 : vector<16x2x128xf32>, vector<16x16x128xf32>, vector<16x2x128xf32> -> vector<16x20x128xf32>
    %cst_21 = arith.constant 0.000000e+00 : f32
    %62 = vector.broadcast %cst_21 : f32 to vector<16x16x128xf32>
    %c0_22 = arith.constant 0 : index
    %c0_23 = arith.constant 0 : index
    %63 = vector.load %arg7[%c0_22, %c0_23] : memref<1x128xf32, #tpu.memory_space<vmem>>, vector<1x128xf32>
    %64 = vector.shape_cast %63 : vector<1x128xf32> to vector<128xf32>
    %65 = vector.shape_cast %64 : vector<128xf32> to vector<1x1x128xf32>
    %66 = vector.broadcast %65 : vector<1x1x128xf32> to vector<16x16x128xf32>
    %67 = arith.addf %62, %66 : vector<16x16x128xf32>
    %68 = vector.extract_strided_slice %61 {offsets = [0, 0, 0], sizes = [16, 16, 128], strides = [1, 1, 1]} : vector<16x20x128xf32> to vector<16x16x128xf32>
    %c0_24 = arith.constant 0 : index
    %c0_25 = arith.constant 0 : index
    %69 = vector.load %arg6[%c0_24, %c0_25] : memref<3x128xf32, #tpu.memory_space<vmem>>, vector<1x128xf32>
    %70 = vector.shape_cast %69 : vector<1x128xf32> to vector<128xf32>
    %71 = vector.shape_cast %70 : vector<128xf32> to vector<1x1x128xf32>
    %72 = vector.broadcast %71 : vector<1x1x128xf32> to vector<16x16x128xf32>
    %73 = arith.mulf %68, %72 : vector<16x16x128xf32>
    %74 = arith.addf %67, %73 : vector<16x16x128xf32>
    %75 = vector.extract_strided_slice %61 {offsets = [0, 2, 0], sizes = [16, 16, 128], strides = [1, 1, 1]} : vector<16x20x128xf32> to vector<16x16x128xf32>
    %c1_26 = arith.constant 1 : index
    %c0_27 = arith.constant 0 : index
    %76 = vector.load %arg6[%c1_26, %c0_27] : memref<3x128xf32, #tpu.memory_space<vmem>>, vector<1x128xf32>
    %77 = vector.shape_cast %76 : vector<1x128xf32> to vector<128xf32>
    %78 = vector.shape_cast %77 : vector<128xf32> to vector<1x1x128xf32>
    %79 = vector.broadcast %78 : vector<1x1x128xf32> to vector<16x16x128xf32>
    %80 = arith.mulf %75, %79 : vector<16x16x128xf32>
    %81 = arith.addf %74, %80 : vector<16x16x128xf32>
    %82 = vector.extract_strided_slice %61 {offsets = [0, 4, 0], sizes = [16, 16, 128], strides = [1, 1, 1]} : vector<16x20x128xf32> to vector<16x16x128xf32>
    %c2_28 = arith.constant 2 : index
    %c0_29 = arith.constant 0 : index
    %83 = vector.load %arg6[%c2_28, %c0_29] : memref<3x128xf32, #tpu.memory_space<vmem>>, vector<1x128xf32>
    %84 = vector.shape_cast %83 : vector<1x128xf32> to vector<128xf32>
    %85 = vector.shape_cast %84 : vector<128xf32> to vector<1x1x128xf32>
    %86 = vector.broadcast %85 : vector<1x1x128xf32> to vector<16x16x128xf32>
    %87 = arith.mulf %82, %86 : vector<16x16x128xf32>
    %88 = arith.addf %81, %87 : vector<16x16x128xf32>
    %cst_30 = arith.constant 0.000000e+00 : f32
    %89 = vector.broadcast %cst_30 : f32 to vector<2x16x128xf32>
    %90 = tpu.concatenate %89, %88, %89 in 0 : vector<2x16x128xf32>, vector<16x16x128xf32>, vector<2x16x128xf32> -> vector<20x16x128xf32>
    %cst_31 = arith.constant 0.000000e+00 : f32
    %91 = vector.broadcast %cst_31 : f32 to vector<16x16x128xf32>
    %c0_32 = arith.constant 0 : index
    %c0_33 = arith.constant 0 : index
    %92 = vector.load %arg9[%c0_32, %c0_33] : memref<1x128xf32, #tpu.memory_space<vmem>>, vector<1x128xf32>
    %93 = vector.shape_cast %92 : vector<1x128xf32> to vector<128xf32>
    %94 = vector.shape_cast %93 : vector<128xf32> to vector<1x1x128xf32>
    %95 = vector.broadcast %94 : vector<1x1x128xf32> to vector<16x16x128xf32>
    %96 = arith.addf %91, %95 : vector<16x16x128xf32>
    %97 = vector.extract_strided_slice %90 {offsets = [0, 0, 0], sizes = [16, 16, 128], strides = [1, 1, 1]} : vector<20x16x128xf32> to vector<16x16x128xf32>
    %c0_34 = arith.constant 0 : index
    %c0_35 = arith.constant 0 : index
    %98 = vector.load %arg8[%c0_34, %c0_35] : memref<3x128xf32, #tpu.memory_space<vmem>>, vector<1x128xf32>
    %99 = vector.shape_cast %98 : vector<1x128xf32> to vector<128xf32>
    %100 = vector.shape_cast %99 : vector<128xf32> to vector<1x1x128xf32>
    %101 = vector.broadcast %100 : vector<1x1x128xf32> to vector<16x16x128xf32>
    %102 = arith.mulf %97, %101 : vector<16x16x128xf32>
    %103 = arith.addf %96, %102 : vector<16x16x128xf32>
    %104 = vector.extract_strided_slice %90 {offsets = [2, 0, 0], sizes = [16, 16, 128], strides = [1, 1, 1]} : vector<20x16x128xf32> to vector<16x16x128xf32>
    %c1_36 = arith.constant 1 : index
    %c0_37 = arith.constant 0 : index
    %105 = vector.load %arg8[%c1_36, %c0_37] : memref<3x128xf32, #tpu.memory_space<vmem>>, vector<1x128xf32>
    %106 = vector.shape_cast %105 : vector<1x128xf32> to vector<128xf32>
    %107 = vector.shape_cast %106 : vector<128xf32> to vector<1x1x128xf32>
    %108 = vector.broadcast %107 : vector<1x1x128xf32> to vector<16x16x128xf32>
    %109 = arith.mulf %104, %108 : vector<16x16x128xf32>
    %110 = arith.addf %103, %109 : vector<16x16x128xf32>
    %111 = vector.extract_strided_slice %90 {offsets = [4, 0, 0], sizes = [16, 16, 128], strides = [1, 1, 1]} : vector<20x16x128xf32> to vector<16x16x128xf32>
    %c2_38 = arith.constant 2 : index
    %c0_39 = arith.constant 0 : index
    %112 = vector.load %arg8[%c2_38, %c0_39] : memref<3x128xf32, #tpu.memory_space<vmem>>, vector<1x128xf32>
    %113 = vector.shape_cast %112 : vector<1x128xf32> to vector<128xf32>
    %114 = vector.shape_cast %113 : vector<128xf32> to vector<1x1x128xf32>
    %115 = vector.broadcast %114 : vector<1x1x128xf32> to vector<16x16x128xf32>
    %116 = arith.mulf %111, %115 : vector<16x16x128xf32>
    %117 = arith.addf %110, %116 : vector<16x16x128xf32>
    %118 = vector.shape_cast %117 : vector<16x16x128xf32> to vector<256x128xf32>
    %c0_40 = arith.constant 0 : index
    %c0_41 = arith.constant 0 : index
    %119 = vector.load %arg10[%c0_40, %c0_41] : memref<128x128xf32, #tpu.memory_space<vmem>>, vector<128x128xf32>
    %cst_42 = arith.constant dense<0.000000e+00> : vector<256x128xf32>
    %120 = tpu.matmul %118, %119, %cst_42 {dimension_numbers = #tpu.dot_dimension_numbers<[1], [0], [0], [1], [0, 0, 1, 1], [], []>} : vector<256x128xf32>, vector<128x128xf32>, vector<256x128xf32> -> vector<256x128xf32>
    %c0_43 = arith.constant 0 : index
    %c0_44 = arith.constant 0 : index
    %121 = vector.load %arg11[%c0_43, %c0_44] : memref<1x128xf32, #tpu.memory_space<vmem>>, vector<1x128xf32>
    %122 = vector.shape_cast %121 : vector<1x128xf32> to vector<128xf32>
    %123 = vector.shape_cast %122 : vector<128xf32> to vector<1x128xf32>
    %124 = vector.broadcast %123 : vector<1x128xf32> to vector<256x128xf32>
    %125 = arith.addf %120, %124 : vector<256x128xf32>
    %126 = vector.shape_cast %125 : vector<256x128xf32> to vector<16x16x128xf32>
    %127 = arith.mulf %1, %126 : vector<16x16x128xf32>
    %c0_45 = arith.constant 0 : index
    %c0_46 = arith.constant 0 : index
    %c0_47 = arith.constant 0 : index
    %c0_48 = arith.constant 0 : index
    %128 = vector.load %arg12[%c0_45, %c0_46, %c0_47, %c0_48] : memref<1x16x16x128xf32, #tpu.memory_space<vmem>>, vector<1x16x16x128xf32>
    %129 = vector.shape_cast %128 : vector<1x16x16x128xf32> to vector<16x16x128xf32>
    %130 = vector.shape_cast %127 : vector<16x16x128xf32> to vector<1x16x16x128xf32>
    tpu.vector_store %arg12[%c0_45, %c0_46, %c0_47, %c0_48], %130 {strides = array<i32>} : memref<1x16x16x128xf32, #tpu.memory_space<vmem>>, vector<1x16x16x128xf32>,
    return
  }
  func.func @transform_0(%arg0: i32) -> (i32, i32, i32, i32) {
    %c0_i32 = arith.constant 0 : i32
    %c0_i32_0 = arith.constant 0 : i32
    %c0_i32_1 = arith.constant 0 : i32
    %c0_i32_2 = arith.constant 0 : i32
    return %arg0, %c0_i32, %c0_i32_0, %c0_i32_1 : i32, i32, i32, i32
  }
  func.func @transform_1(%arg0: i32) -> (i32, i32) {
    %c0_i32 = arith.constant 0 : i32
    %c0_i32_0 = arith.constant 0 : i32
    %c0_i32_1 = arith.constant 0 : i32
    return %c0_i32, %c0_i32_0 : i32, i32
  }
  func.func @transform_2(%arg0: i32) -> (i32, i32) {
    %c0_i32 = arith.constant 0 : i32
    %c0_i32_0 = arith.constant 0 : i32
    %c0_i32_1 = arith.constant 0 : i32
    return %c0_i32, %c0_i32_0 : i32, i32
  }
  func.func @transform_3(%arg0: i32) -> (i32, i32) {
    %c0_i32 = arith.constant 0 : i32
    %c0_i32_0 = arith.constant 0 : i32
    %c0_i32_1 = arith.constant 0 : i32
    return %c0_i32, %c0_i32_0 : i32, i32
  }
  func.func @transform_4(%arg0: i32) -> (i32, i32) {
    %c0_i32 = arith.constant 0 : i32
    %c0_i32_0 = arith.constant 0 : i32
    %c0_i32_1 = arith.constant 0 : i32
    return %c0_i32, %c0_i32_0 : i32, i32
  }
  func.func @transform_5(%arg0: i32) -> (i32, i32) {
    %c0_i32 = arith.constant 0 : i32
    %c0_i32_0 = arith.constant 0 : i32
    %c0_i32_1 = arith.constant 0 : i32
    return %c0_i32, %c0_i32_0 : i32, i32
  }
  func.func @transform_6(%arg0: i32) -> (i32, i32) {
    %c0_i32 = arith.constant 0 : i32
    %c0_i32_0 = arith.constant 0 : i32
    %c0_i32_1 = arith.constant 0 : i32
    return %c0_i32, %c0_i32_0 : i32, i32
  }
  func.func @transform_7(%arg0: i32) -> (i32, i32) {
    %c0_i32 = arith.constant 0 : i32
    %c0_i32_0 = arith.constant 0 : i32
    %c0_i32_1 = arith.constant 0 : i32
    return %c0_i32, %c0_i32_0 : i32, i32
  }
  func.func @transform_8(%arg0: i32) -> (i32, i32) {
    %c0_i32 = arith.constant 0 : i32
    %c0_i32_0 = arith.constant 0 : i32
    %c0_i32_1 = arith.constant 0 : i32
    return %c0_i32, %c0_i32_0 : i32, i32
  }
  func.func @transform_9(%arg0: i32) -> (i32, i32) {
    %c0_i32 = arith.constant 0 : i32
    %c0_i32_0 = arith.constant 0 : i32
    %c0_i32_1 = arith.constant 0 : i32
    return %c0_i32, %c0_i32_0 : i32, i32
  }
  func.func @transform_10(%arg0: i32) -> (i32, i32) {
    %c0_i32 = arith.constant 0 : i32
    %c0_i32_0 = arith.constant 0 : i32
    %c0_i32_1 = arith.constant 0 : i32
    return %c0_i32, %c0_i32_0 : i32, i32
  }
  func.func @transform_11(%arg0: i32) -> (i32, i32, i32, i32) {
    %c0_i32 = arith.constant 0 : i32
    %c0_i32_0 = arith.constant 0 : i32
    %c0_i32_1 = arith.constant 0 : i32
    %c0_i32_2 = arith.constant 0 : i32
    return %arg0, %c0_i32, %c0_i32_0, %c0_i32_1 : i32, i32, i32, i32
  }
}

</mosaic_0001>

<bundles_post_ra>
// kernel: lska_forward.1
= control target key start
LH: loop header
LB: loop body
LE: loop exit
PB: predicated region body
PF: predicated region fallthrough
CT: control target
= control target key end

     0   :  { %s5220_s0 = inlined_call_operand.hbm [shape: f32[2,16,16,128], index: 0, kind: input, shape index: {}]   ;;  %s5221_s1 = inlined_call_operand.vmem [shape: f32[3,128], index: 1, kind: input, shape index: {}]   ;;  %s5222_s2 = inlined_call_operand.vmem [shape: f32[1,128], index: 2, kind: input, shape index: {}]   ;;  %s5223_s3 = inlined_call_operand.vmem [shape: f32[3,128], index: 3, kind: input, shape index: {}]   ;;  %s5224_s4 = inlined_call_operand.vmem [shape: f32[1,128], index: 4, kind: input, shape index: {}]   ;;  %s5225_s5 = inlined_call_operand.vmem [shape: f32[3,128], index: 5, kind: input, shape index: {}]   ;;  %s5226_s6 = inlined_call_operand.vmem [shape: f32[1,128], index: 6, kind: input, shape index: {}]   ;;  %s5227_s7 = inlined_call_operand.vmem [shape: f32[3,128], index: 7, kind: input, shape index: {}]   ;;  %s5228_s8 = inlined_call_operand.vmem [shape: f32[1,128], index: 8, kind: input, shape index: {}]   ;;  %s5229_s9 = inlined_call_operand.vmem [shape: f32[128,128], index: 9, kind: input, shape index: {}]   ;;  %s5230_s10 = inlined_call_operand.vmem [shape: f32[1,128], index: 10, kind: input, shape index: {}]   ;;  %s5231_s11 = inlined_call_operand.hbm [shape: f32[2,16,16,128], index: 11, kind: output, shape index: {}]  }
   0x1   :  { %5312 = sst [smem:[#allocation43_spill]] %s5220_s0 }
   0x2   :  { %16 = vsyncpa [#allocation3], 0 }
   0x3   :  { %18 = vsyncpa [#allocation3 + $0x1], 0 }
   0x4   :  { %19 = vsyncpa [#allocation4], 0 }
   0x5   :  { %21 = vsyncpa [#allocation4 + $0x1], 0  ;;  %s3191_s17 = smov 0   ;;  %s3193_s18 = smov 0  }
   0x6   :  { %s3195_s19 = smov 0   ;;  %s3197_s20 = smov 0  }
   0x7 LB: > { %5313 = sst [smem:[#allocation8_spill]] %s3119_s19  ;;  %s3212_s21 = sadd.s32 4294967295, %s3123_s20   ;;  %s3123_s20 = sphi %s3197_s20, %s5431_s20   ;;  %s3119_s19 = sphi %s3195_s19, %s5428_s19   ;;  %s3115_s18 = sphi %s3193_s18, %s5430_s18   ;;  %s3111_s17 = sphi %s3191_s17, %s5429_s17  }
   0x8   : > { %s2713_s22 = sadd.s32 4294967294, %s3123_s20   ;;  %s3216_s23 = sadd.s32 1, %s3123_s20  }
   0x9   : > { %s34_s24 = sadd.s32 1, %s3119_s19  ;;  %s31_s25 = ssub.s32 %s3123_s20, %s3216_s23 }
   0xa   : > { %p41_p0 = scmp.ne.s32.totalorder %s3119_s19, %s3115_s18  ;;  %p32_p1 = scmp.eq.s32.totalorder %s31_s25, 0 }
   0xb   : > { %p42_p2 = scmp.eq.s32.totalorder %s3123_s20, 0  ;;  %p47_p3 = scmp.ne.s32.totalorder %s3115_s18, %s3111_s17 }
   0xc   : > { %p48_p4 = scmp.eq.s32.totalorder %s3212_s21, 0  ;;  %p281_p7 = scmp.eq.s32.totalorder %s3212_s21, 1 }
   0xd   : > { %s3228_s26 = scalar_select %p32_p1, %s3119_s19, %s34_s24  }
   0xe   : > { %p3230_p5 = por %p42_p2, %p41_p0  ;;  %p3234_p6 = por %p48_p4, %p47_p3 }
   0xf   : > { %5314 = sst [smem:[#allocation9_spill]] %s3228_s26  ;;  %p287_p8 = scmp.eq.s32.totalorder %s2713_s22, 1 }
  0x10   : > { %p2934_p10 = scmp.lt.s32.totalorder %s3123_s20, 2  ;;  %p3241_p11 = por %p281_p7, %p41_p0 }
  0x11   : > { %p3245_p12 = por %p287_p8, %p47_p3  ;;  %s337_s12 = sand.u32 1, %s3119_s19  }
  0x12   : > { %s5317_s29 = scalar_select %p3241_p11, 1, 0 }
  0x13   : > { %s5318_s30 = scalar_select %p3245_p12, 1, 0 }
  0x14   : > { %s2744_s13 = sshll.u32 %s3123_s20, 12  ;;  %s2716_s14 = sshll.u32 %s337_s12, 8 }
  0x15   : > { %s5319_s0 = sld [smem:[#allocation43_spill]]  ;;  %s341_s22 = scalar_lea.vmem [#allocation2], %s2716_s14 }
  0x16   : > { %s348_s25 = sshll.u32 %s341_s22, 4  ;;  %p3258_p13 = pnand %p2934_p10, %p3230_p5  ;;  %s3262_s25 = int_to_ptr.vmem [resolvable:$true] %s348_s25 }
  0x17   : > { %s3264_s19 = scalar_lea.sflag [#allocation3], %s337_s12 }
  0x18   : > { %p3029_p1 = pneg %p3258_p13 }
  0x1b   : > { %s3254_s24 = scalar_lea.hbm %s5319_s0, %s2744_s13  ;;  %s3032_s14 = scalar_lea.hbm %s5319_s0, 8192 }
  0x1c   : > { %s3027_s15 = scalar_lea.hbm %s3254_s24, 4096  ;;  %p3033_p4 = scmp.lt.u32.totalorder %s3254_s24, %s5319_s0 }
  0x1d   : > { %p3028_p0 = scmp.ne.s32.totalorder %s3254_s24, %s3027_s15  ;;  %p3034_p5 = scmp.lt.u32.totalorder %s3032_s14, %s3027_s15 }
  0x1e   : > { %p3036_p8 = scmp.lt.u32.totalorder %s3027_s15, %s3254_s24 }
  0x1f   : > { %p3030_p2 = pnand %p3029_p1, %p3028_p0  ;;  %p3035_p7 = por %p3034_p5, %p3033_p4 }
  0x21   : > { %p3031_p3 = pneg %p3030_p2  ;;  %p3037_p10 = por %p3036_p8, %p3035_p7 }
  0x23   : > { %p3038_p9 = pnand %p3037_p10, %p3031_p3 }
  0x25   : > { %3041 = shalt.err (!%p3038_p9)
}
  0x26   : > { %s3042_s12 = scalar_lea.vmem %s3262_s25, 4096  ;;  %s3125_s13 = smov [#allocation2]  }
  0x27   : > { %p3043_p0 = scmp.ne.s32.totalorder %s3262_s25, %s3042_s12  ;;  %s3047_s27 = sshll.u32 %s3125_s13, 4  ;;  %s3048_s27 = int_to_ptr.vmem [resolvable:$false] %s3047_s27 }
  0x28   : > { %s3049_s16 = scalar_lea.vmem %s3048_s27, 8192  ;;  %p3050_p11 = scmp.lt.s32.totalorder %s3262_s25, %s3048_s27 }
  0x29   : > { %p3045_p2 = pnand %p3043_p0, %p3029_p1  ;;  %p3051_p4 = scmp.lt.s32.totalorder %s3049_s16, %s3042_s12 }
  0x2b   : > { %p3046_p12 = pneg %p3045_p2  ;;  %p3052_p5 = por %p3051_p4, %p3050_p11 }
  0x2d   : > { %p3053_p7 = pnand %p3052_p5, %p3046_p12 }
  0x2f   : > { %3056 = shalt.err (!%p3053_p7)
}
  0x30   : > { %s3126_s15 = smov 128   ;;  %s3127_s14 = smov 8  }
  0x31   : > { %2929 = dma.hbm_to_vmem [thread:$0]  (!%p3258_p13), %s3254_s24, 4096, %s3262_s25, %s3264_s19, %s3126_s15, %s3126_s15, %s3127_s14  }
  0x32   : > { %p2719_p9 = scmp.ge.s32.totalorder %s3123_s20, 1  ;;  %p356_p1 = scmp.lt.s32.totalorder %s3123_s20, 3 }
  0x34   : > { %p357_p3 = pnand %p2719_p9, %p356_p1 }
  0x36   : > { %360 = sbr.rel (%p357_p3) target bundleno = 638 (0x27e), region = 64 }
  0x3d   : > { %s3295_s22 = sand.u32 1, %s3115_s18  }
  0x3e   : > { %s5234_s12 = sshll.u32 %s3295_s22, 8  ;;  %s363_s13 = scalar_lea.sflag [#allocation3], %s3295_s22 }
  0x3f   : > { %s3301_s27 = scalar_lea.vmem [#allocation2], %s5234_s12 }
  0x40   : > { %3102 = dma.done.wait (%p3234_p6), %s363_s13, 4096  }
  0x41   : > { %3104 = vsyncadd (%p3234_p6), %s363_s13, 4294963200  ;;  %v2314_v0 = vld [vmem:[%s5229_s9] sm:$0xff]  ;;  %v2315_v1 = vld [vmem:[%s5229_s9 + $0x8] sm:$0xff]  ;;  %vm469_vm0 = vcmask 1040384   ;;  %vm776_vm1 = vcmask 1046528   ;;  %vm1022_vm2 = vcmask 1045504  }
  0x42   : > { %v2316_v2 = vld [vmem:[%s5229_s9 + $0x10] sm:$0xff]  ;;  %v2874_v3 = vpack.c.bf16 %v2315_v1, %v2314_v0  ;;  %v2317_v4 = vld [vmem:[%s5229_s9 + $0x18] sm:$0xff]  ;;  %v2318_v5 = vld [vmem:[%s5229_s9 + $0x20] sm:$0xff]  ;;  %vm1411_vm3 = vcmask 1041408   ;;  %vm1963_vm4 = vcmask 1043456   ;;  %s5419_s13 = sshll.u32 %s3295_s22, 8 }
  0x43   : > { %v2319_v6 = vld [vmem:[%s5229_s9 + $0x28] sm:$0xff]  ;;  %v2878_v7 = vpack.c.bf16 %v2317_v4, %v2316_v2  ;;  %v2320_v8 = vld [vmem:[%s5229_s9 + $0x30] sm:$0xff]  ;;  %v2321_v9 = vld [vmem:[%s5229_s9 + $0x38] sm:$0xff]  ;;  %s5075_s19 = scalar_lea.vmem [#allocation5], %s5419_s13  ;;  %s2745_s26 = sshll.u32 %s3212_s21, 12 }
  0x44   : > { %v2322_v10 = vld [vmem:[%s5229_s9 + $0x40] sm:$0xff]  ;;  %2875 = vmatprep.subr.bf16.mxu0 %v2874_v3  ;;  %2906 = vmatprep.subr.bf16.mxu1 %v2874_v3  ;;  %v2323_v11 = vld [vmem:[%s5229_s9 + $0x48] sm:$0xff]  ;;  %v2324_v12 = vld [vmem:[%s5229_s9 + $0x50] sm:$0xff]  ;;  %v2882_v17 = vpack.c.bf16 %v2319_v6, %v2318_v5  ;;  %v3352_v18 = vpack.c.bf16 %v2321_v9, %v2320_v8  ;;  %s2640_s24 = sshll.u32 %s5075_s19, 4  ;;  %s5171_s21 = scalar_lea.hbm %s5231_s11, %s2745_s26  ;;  %s5173_s24 = int_to_ptr.vmem [resolvable:$true] %s2640_s24 }
  0x45   : > { %v2325_v13 = vld [vmem:[%s5229_s9 + $0x58] sm:$0xff]  ;;  %2877 = vmatpush3.bf16.msra.mxu0 %v2874_v3  ;;  %2914 = vmatpush3.bf16.msra.mxu1 %v2874_v3  ;;  %v2326_v14 = vld [vmem:[%s5229_s9 + $0x60] sm:$0xff]  ;;  %v2327_v15 = vld [vmem:[%s5229_s9 + $0x68] sm:$0xff]  ;;  %v3359_v22 = vpack.c.bf16 %v2323_v11, %v2322_v10  ;;  %s3057_s15 = scalar_lea.vmem %s5173_s24, 4096  ;;  %p5424_p11 = scmp.ne.s32.totalorder %s5317_s29, 0 }
  0x46   : > { %v2328_v16 = vld [vmem:[%s5229_s9 + $0x70] sm:$0xff]  ;;  %2879 = vmatprep.subr.bf16.mxu0 %v2878_v7  ;;  %2907 = vmatprep.subr.bf16.mxu1 %v2878_v7  ;;  %v2329_v19 = vld [vmem:[%s5229_s9 + $0x78] sm:$0xff]  ;;  %v405_v20 = vld [vmem:[%s3301_s27] sm:$0xff]  ;;  %v3361_v23 = vpack.c.bf16 %v2325_v13, %v2324_v12  ;;  %v3366_v29 = vpack.c.bf16 %v2327_v15, %v2326_v14  ;;  %p3058_p6 = scmp.ne.s32.totalorder %s5173_s24, %s3057_s15  ;;  %s3128_s12 = smov [#allocation5]  }
  0x47   : > { %v406_v21 = vld [vmem:[%s3301_s27 + $0x8] sm:$0xff]  ;;  %v407_v24 = vld [vmem:[%s3301_s27 + $0x10] sm:$0xff]  ;;  %v408_v25 = vld [vmem:[%s3301_s27 + $0x18] sm:$0xff]  ;;  %v470_v27 = vrot.slane %v405_v20, 7  ;;  %v3371_v36 = vpack.c.bf16 %v2329_v19, %v2328_v16  ;;  %s3061_s0 = sshll.u32 %s3128_s12, 4  ;;  %s3062_s0 = int_to_ptr.vmem [resolvable:$false] %s3061_s0 }
  0x48   : > { %v409_v26 = vld [vmem:[%s3301_s27 + $0x20] sm:$0xff]  ;;  %v471_v28 = vrot.slane %v406_v21, 7  ;;  %v410_v30 = vld [vmem:[%s3301_s27 + $0x28] sm:$0xff]  ;;  %v411_v31 = vld [vmem:[%s3301_s27 + $0x30] sm:$0xff]  ;;  %v473_v33 = vrot.slane %v407_v24, 7  ;;  %v474_v34 = vrot.slane %v408_v25, 7  ;;  %p3059_p12 = pnand %p3058_p6, %p5424_p11  ;;  %p3064_p8 = scmp.lt.s32.totalorder %s5173_s24, %s3062_s0 }
  0x49   : > { %v412_v32 = vld [vmem:[%s3301_s27 + $0x38] sm:$0xff]  ;;  %v476_v35 = vrot.slane %v409_v26, 7  ;;  %2881 = vmatpush3.bf16.msra.mxu0 %v2878_v7  ;;  %2915 = vmatpush3.bf16.msra.mxu1 %v2878_v7  ;;  %v477_v37 = vrot.slane %v410_v30, 7  ;;  %v479_v38 = vrot.slane %v411_v31, 7  ;;  %v3380_v42 = vsel %vm469_vm0, 0.0, %v470_v27  ;;  %v3449_v3 = vld [vmem:[%s3301_s27 + $0x50] sm:$0xff] }
  0x4a   : > { %v480_v39 = vrot.slane %v412_v32, 7  ;;  %2883 = vmatprep.subr.bf16.mxu0 %v2882_v17  ;;  %2908 = vmatprep.subr.bf16.mxu1 %v2882_v17  ;;  %v3374_v40 = vsel %vm469_vm0, %v470_v27, %v471_v28  ;;  %v3377_v41 = vsel %vm469_vm0, %v473_v33, %v474_v34  ;;  %v3383_v43 = vsel %vm469_vm0, 0.0, %v473_v33  ;;  %v3400_v48 = vld [vmem:[%s5221_s1] ss:$0 sm:$0xff]  ;;  %v3458_v8 = vld [vmem:[%s5221_s1 + $0x1] ss:$0 sm:$0xff]  ;;  %p3060_p13 = pneg %p3059_p12 }
  0x4b   : > { %v3386_v44 = vsel %vm469_vm0, %v476_v35, %v477_v37  ;;  %v3392_v46 = vsel %vm469_vm0, 0.0, %v476_v35  ;;  %v3395_v47 = vsel %vm469_vm0, 0.0, %v479_v38  ;;  %v3403_v49 = vsel %vm469_vm0, %v471_v28, 0.0  ;;  %v3425_v57 = vld [vmem:[%s5223_s3] ss:$0 sm:$0xff]  ;;  %s3063_s14 = scalar_lea.vmem %s3062_s0, 8192 }
  0x4c   : > { %v3389_v45 = vsel %vm469_vm0, %v479_v38, %v480_v39  ;;  %v3406_v50 = vsel %vm469_vm0, %v474_v34, 0.0  ;;  %v3409_v51 = vsel %vm469_vm0, %v477_v37, 0.0  ;;  %v611_v52 = vmul.f32 %v3400_v48, %v3380_v42  ;;  %5321 = vst [vmem:[#allocation10_spill] sm:$0xff] %v3425_v57  ;;  %v3432_v58 = vld [vmem:[%s5222_s2] ss:$0 sm:$0xff]  ;;  %p3065_p10 = scmp.lt.s32.totalorder %s3063_s14, %s3057_s15 }
  0x4d   : > { %2885 = vmatpush3.bf16.msra.mxu0 %v2882_v17  ;;  %2916 = vmatpush3.bf16.msra.mxu1 %v2882_v17  ;;  %v3414_v53 = vsel %vm469_vm0, %v480_v39, 0.0  ;;  %v612_v54 = vmul.f32 %v3400_v48, %v3374_v40  ;;  %v613_v55 = vmul.f32 %v3400_v48, %v3383_v43  ;;  %v614_v56 = vmul.f32 %v3400_v48, %v3377_v41  ;;  %v3463_v9 = vld [vmem:[%s5227_s7] ss:$0 sm:$0xff] }
  0x4e   : > { %2887 = vmatprep.subr.bf16.mxu0 %v3352_v18  ;;  %2909 = vmatprep.subr.bf16.mxu1 %v3352_v18  ;;  %v615_v59 = vmul.f32 %v3400_v48, %v3392_v46  ;;  %v616_v60 = vmul.f32 %v3400_v48, %v3386_v44  ;;  %v617_v61 = vmul.f32 %v3400_v48, %v3395_v47  ;;  %v3441_v62 = vmul.f32 0.0, %v3425_v57  ;;  %p3066_p0 = por %p3065_p10, %p3064_p8 }
  0x4f   : > { %v618_v63 = vmul.f32 %v3400_v48, %v3389_v45  ;;  %v643_v0 = vadd.f32 %v3432_v58, %v611_v52  ;;  %v644_v1 = vadd.f32 %v3432_v58, %v612_v54  ;;  %v645_v2 = vadd.f32 %v3432_v58, %v613_v55  ;;  %v3506_v54 = vld [vmem:[%s3301_s27 + $0x58] sm:$0xff] }
  0x50   : > { %v646_v4 = vadd.f32 %v3432_v58, %v614_v56  ;;  %v647_v5 = vadd.f32 %v3432_v58, %v615_v59  ;;  %v648_v6 = vadd.f32 %v3432_v58, %v616_v60  ;;  %v649_v7 = vadd.f32 %v3432_v58, %v617_v61  ;;  %p3067_p2 = pnand %p3066_p0, %p3060_p13 }
  0x51   : > { %2889 = vmatpush3.bf16.msra.mxu0 %v3352_v18  ;;  %2917 = vmatpush3.bf16.msra.mxu1 %v3352_v18  ;;  %v650_v10 = vadd.f32 %v3432_v58, %v618_v63  ;;  %v680_v11 = vmul.f32 %v3458_v8, %v3380_v42  ;;  %v681_v12 = vmul.f32 %v3458_v8, %v3374_v40  ;;  %v3473_v13 = vmul.f32 0.0, %v3463_v9 }
  0x52   : > { %2891 = vmatprep.subr.bf16.mxu0 %v3359_v22  ;;  %2910 = vmatprep.subr.bf16.mxu1 %v3359_v22  ;;  %v682_v14 = vmul.f32 %v3458_v8, %v3403_v49  ;;  %v683_v15 = vmul.f32 %v3458_v8, %v3383_v43  ;;  %v684_v16 = vmul.f32 %v3458_v8, %v3377_v41  ;;  %v5240_v17 = vrot.slane %v3449_v3, 7 }
  0x53   : > { %v685_v18 = vmul.f32 %v3458_v8, %v3406_v50  ;;  %v686_v19 = vmul.f32 %v3458_v8, %v3392_v46  ;;  %v687_v20 = vmul.f32 %v3458_v8, %v3386_v44  ;;  %v688_v21 = vmul.f32 %v3458_v8, %v3409_v51 }
  0x54   : > { %v689_v24 = vmul.f32 %v3458_v8, %v3395_v47  ;;  %v690_v25 = vmul.f32 %v3458_v8, %v3389_v45  ;;  %v691_v26 = vmul.f32 %v3458_v8, %v3414_v53  ;;  %v777_v27 = vrot.slane %v680_v11, 1 }
  0x55   : > { %2893 = vmatpush3.bf16.msra.mxu0 %v3359_v22  ;;  %2918 = vmatpush3.bf16.msra.mxu1 %v3359_v22  ;;  %v778_v28 = vrot.slane %v681_v12, 1  ;;  %v780_v30 = vrot.slane %v682_v14, 1  ;;  %v782_v31 = vrot.slane %v683_v15, 1  ;;  %v783_v32 = vrot.slane %v684_v16, 1 }
  0x56   : > { %2895 = vmatprep.subr.bf16.mxu0 %v3361_v23  ;;  %2911 = vmatprep.subr.bf16.mxu1 %v3361_v23  ;;  %v785_v33 = vrot.slane %v685_v18, 1  ;;  %v787_v34 = vrot.slane %v686_v19, 1  ;;  %v788_v35 = vrot.slane %v687_v20, 1  ;;  %v790_v37 = vrot.slane %v688_v21, 1  ;;  %v3519_v18 = vld [vmem:[%s5221_s1 + $0x2] ss:$0 sm:$0xff] }
  0x57   : > { %v779_v38 = vsel %vm776_vm1, %v777_v27, %v778_v28  ;;  %v781_v39 = vsel %vm776_vm1, %v778_v28, %v780_v30  ;;  %v784_v52 = vsel %vm776_vm1, %v782_v31, %v783_v32  ;;  %v792_v22 = vrot.slane %v689_v24, 1 }
  0x58   : > { %v786_v55 = vsel %vm776_vm1, %v783_v32, %v785_v33  ;;  %v789_v56 = vsel %vm776_vm1, %v787_v34, %v788_v35  ;;  %v791_v59 = vsel %vm776_vm1, %v788_v35, %v790_v37  ;;  %v793_v60 = vrot.slane %v690_v25, 1 }
  0x59   : > { %2897 = vmatpush3.bf16.msra.mxu0 %v3361_v23  ;;  %2919 = vmatpush3.bf16.msra.mxu1 %v3361_v23  ;;  %v795_v61 = vrot.slane %v691_v26, 1  ;;  %v889_v63 = vadd.f32 %v779_v38, %v643_v0  ;;  %v890_v11 = vadd.f32 %v781_v39, %v644_v1  ;;  %v891_v12 = vadd.f32 %v784_v52, %v645_v2 }
  0x5a   : > { %2899 = vmatprep.subr.bf16.mxu0 %v3366_v29  ;;  %2912 = vmatprep.subr.bf16.mxu1 %v3366_v29  ;;  %v794_v14 = vsel %vm776_vm1, %v792_v22, %v793_v60  ;;  %v892_v15 = vadd.f32 %v786_v55, %v646_v4  ;;  %v893_v16 = vadd.f32 %v789_v56, %v647_v5  ;;  %v5237_v19 = vrot.slane %v3506_v54, 7  ;;  %v3568_v22 = vld [vmem:[%s5224_s4] ss:$0 sm:$0xff]  ;;  %v3573_v55 = vld [vmem:[%s5223_s3 + $0x1] ss:$0 sm:$0xff] }
  0x5b   : > { %v796_v23 = vsel %vm776_vm1, %v793_v60, %v795_v61  ;;  %v894_v0 = vadd.f32 %v791_v59, %v648_v6  ;;  %v895_v1 = vadd.f32 %v794_v14, %v649_v7  ;;  %v926_v2 = vmul.f32 %v3519_v18, %v3380_v42  ;;  %5324 = vst [vmem:[#allocation13_spill] sm:$0xff] %v3568_v22 }
  0x5c   : > { %v896_v20 = vadd.f32 %v796_v23, %v650_v10  ;;  %v927_v21 = vmul.f32 %v3519_v18, %v3374_v40  ;;  %v928_v4 = vmul.f32 %v3519_v18, %v3403_v49  ;;  %v929_v5 = vmul.f32 %v3519_v18, %v3383_v43  ;;  %5325 = vst [vmem:[#allocation14_spill] sm:$0xff] %v3573_v55 }
  0x5d   : > { %2901 = vmatpush3.bf16.msra.mxu0 %v3366_v29  ;;  %2920 = vmatpush3.bf16.msra.mxu1 %v3366_v29  ;;  %v930_v6 = vmul.f32 %v3519_v18, %v3377_v41  ;;  %v931_v42 = vmul.f32 %v3519_v18, %v3406_v50  ;;  %v932_v7 = vmul.f32 %v3519_v18, %v3392_v46  ;;  %v1023_v40 = vrot.slane %v926_v2, 2  ;;  %v3607_v2 = vld [vmem:[%s5228_s8] ss:$0 sm:$0xff] }
  0x5e   : > { %2903 = vmatprep.subr.bf16.mxu0 %v3371_v36  ;;  %2913 = vmatprep.subr.bf16.mxu1 %v3371_v36  ;;  %v933_v43 = vmul.f32 %v3519_v18, %v3386_v44  ;;  %v934_v29 = vmul.f32 %v3519_v18, %v3409_v51  ;;  %v935_v41 = vmul.f32 %v3519_v18, %v3395_v47  ;;  %v1024_v49 = vrot.slane %v927_v21, 2 }
  0x5f   : > { %v936_v50 = vmul.f32 %v3519_v18, %v3389_v45  ;;  %v937_v46 = vmul.f32 %v3519_v18, %v3414_v53  ;;  %v1026_v10 = vrot.slane %v928_v4, 2  ;;  %v1028_v24 = vrot.slane %v929_v5, 2  ;;  %5333 = vst [vmem:[#allocation22_spill] sm:$0xff] %v3607_v2  ;;  %v3616_v5 = vld [vmem:[%s3301_s27 + $0x60] sm:$0xff] }
  0x60   : > { %v1025_v25 = vsel %vm1022_vm2, %v1023_v40, %v1024_v49  ;;  %v1029_v26 = vrot.slane %v930_v6, 2  ;;  %v1031_v27 = vrot.slane %v931_v42, 2  ;;  %v1033_v44 = vrot.slane %v932_v7, 2 }
  0x61   : > { %2905 = vmatpush3.bf16.msra.mxu0 %v3371_v36  ;;  %2921 = vmatpush3.bf16.msra.mxu1 %v3371_v36  ;;  %v1027_v47 = vsel %vm1022_vm2, %v1024_v49, %v1026_v10  ;;  %v1034_v51 = vrot.slane %v933_v43, 2  ;;  %v1036_v28 = vrot.slane %v934_v29, 2  ;;  %v1038_v30 = vrot.slane %v935_v41, 2  ;;  %v3623_v43 = vld [vmem:[%s3301_s27 + $0x68] sm:$0xff]  ;;  %v3626_v29 = vld [vmem:[%s3301_s27 + $0x70] sm:$0xff]  ;;  %v3635_v10 = vld [vmem:[%s3301_s27 + $0x78] sm:$0xff] }
  0x62   : > { %v1030_v45 = vsel %vm1022_vm2, %v1028_v24, %v1029_v26  ;;  %v1032_v53 = vsel %vm1022_vm2, %v1029_v26, %v1031_v27  ;;  %v1039_v31 = vrot.slane %v936_v50, 2  ;;  %v1041_v32 = vrot.slane %v937_v46, 2  ;;  %v3638_v24 = vld [vmem:[%s3301_s27 + $0x80] sm:$0xff]  ;;  %v3641_v27 = vld [vmem:[%s3301_s27 + $0x88] sm:$0xff] }
  0x63   : > { %v1035_v33 = vsel %vm1022_vm2, %v1033_v44, %v1034_v51  ;;  %v1037_v34 = vsel %vm1022_vm2, %v1034_v51, %v1036_v28  ;;  %v1135_v35 = vadd.f32 %v1025_v25, %v889_v63  ;;  %v1136_v37 = vadd.f32 %v1027_v47, %v890_v11  ;;  %v3586_v63 = vld [vmem:[%s5223_s3 + $0x2] ss:$0 sm:$0xff]  ;;  %v3654_v28 = vld [vmem:[%s5225_s5] ss:$0 sm:$0xff] }
  0x64   : > { %v1040_v38 = vsel %vm1022_vm2, %v1038_v30, %v1039_v31  ;;  %v1042_v36 = vsel %vm1022_vm2, %v1039_v31, %v1041_v32  ;;  %v3561_v39 = vadd.f32 %v1030_v45, %v891_v12  ;;  %v3563_v52 = vadd.f32 %v1032_v53, %v892_v15  ;;  %5330 = vst [vmem:[#allocation19_spill] sm:$0xff] %v3586_v63  ;;  %v3661_v32 = vld [vmem:[%s5225_s5 + $0x1] ss:$0 sm:$0xff] }
  0x65   : > { %v3575_v56 = vadd.f32 %v1035_v33, %v893_v16  ;;  %v3577_v59 = vadd.f32 %v1037_v34, %v894_v0  ;;  %v3579_v60 = vadd.f32 %v1040_v38, %v895_v1  ;;  %v3581_v61 = vadd.f32 %v1042_v36, %v896_v20  ;;  %5335 = vst [vmem:[#allocation24_spill] sm:$0xff] %v3654_v28 }
  0x66   : > { %5322 = vst [vmem:[#allocation11_spill] sm:$0xff] %v3561_v39  ;;  %5323 = vst [vmem:[#allocation12_spill] sm:$0xff] %v3563_v52  ;;  %v3589_v11 = vmul.f32 %v3425_v57, %v1135_v35  ;;  %v3592_v12 = vmul.f32 %v3425_v57, %v1136_v37  ;;  %v1183_v14 = vmul.f32 %v3425_v57, %v3561_v39  ;;  %v5239_v47 = vrot.slane %v3616_v5, 7 }
  0x67   : > { %5326 = vst [vmem:[#allocation15_spill] sm:$0xff] %v3575_v56  ;;  %5327 = vst [vmem:[#allocation16_spill] sm:$0xff] %v3577_v59  ;;  %v1184_v15 = vmul.f32 %v3425_v57, %v3563_v52  ;;  %v1211_v16 = vadd.f32 %v3568_v22, %v3441_v62  ;;  %v1247_v23 = vmul.f32 %v3573_v55, %v1135_v35  ;;  %v5236_v30 = vrot.slane %v3623_v43, 7 }
  0x68   : > { %5328 = vst [vmem:[#allocation17_spill] sm:$0xff] %v3579_v60  ;;  %5329 = vst [vmem:[#allocation18_spill] sm:$0xff] %v3581_v61  ;;  %v1248_v0 = vmul.f32 %v3573_v55, %v1136_v37  ;;  %v1251_v1 = vmul.f32 %v3573_v55, %v3575_v56  ;;  %v1214_v20 = vadd.f32 %v3568_v22, %v1183_v14  ;;  %v5238_v45 = vrot.slane %v3626_v29, 7 }
  0x69   : > { %5331 = vst [vmem:[#allocation20_spill] sm:$0xff] %v3589_v11  ;;  %5332 = vst [vmem:[#allocation21_spill] sm:$0xff] %v3592_v12  ;;  %v1215_v21 = vadd.f32 %v3568_v22, %v1184_v15  ;;  %v1252_v62 = vmul.f32 %v3573_v55, %v3577_v59  ;;  %v1316_v4 = vmul.f32 %v3586_v63, %v3561_v39  ;;  %v5235_v33 = vrot.slane %v3635_v10, 7 }
  0x6a   : > { %v1279_v6 = vadd.f32 %v1247_v23, %v1211_v16  ;;  %v1280_v42 = vadd.f32 %v1248_v0, %v1211_v16  ;;  %v1317_v7 = vmul.f32 %v3586_v63, %v3563_v52  ;;  %v1320_v40 = vmul.f32 %v3586_v63, %v3579_v60  ;;  %5336 = vst [vmem:[#allocation25_spill] sm:$0xff] %v3661_v32  ;;  %v3678_v16 = vld [vmem:[%s5226_s6] ss:$0 sm:$0xff]  ;;  %v3683_v23 = vld [vmem:[%s5225_s5 + $0x2] ss:$0 sm:$0xff] }
  0x6b   : > { %v1283_v41 = vadd.f32 %v1251_v1, %v1214_v20  ;;  %v1284_v49 = vadd.f32 %v1252_v62, %v1215_v21  ;;  %v1321_v50 = vmul.f32 %v3586_v63, %v3581_v61  ;;  %v3632_v46 = vadd.f32 %v3607_v2, %v3473_v13  ;;  %5337 = vst [vmem:[#allocation26_spill] sm:$0xff] %v3678_v16 }
  0x6c   : > { %v1347_v25 = vadd.f32 %v1316_v4, %v1279_v6  ;;  %v1348_v26 = vadd.f32 %v1317_v7, %v1280_v42  ;;  %v3648_v44 = vsel %vm469_vm0, %v5240_v17, %v5237_v19  ;;  %v5242_v34 = vrot.slane %v3638_v24, 7  ;;  %5338 = vst [vmem:[#allocation27_spill] sm:$0xff] %v3683_v23 }
  0x6d   : > { %5334 = vst [vmem:[#allocation23_spill] sm:$0xff] %v3632_v46  ;;  %v1351_v13 = vadd.f32 %v1320_v40, %v1283_v41  ;;  %v1352_v51 = vadd.f32 %v1321_v50, %v1284_v49  ;;  %v3670_v38 = vsel %vm469_vm0, %v5239_v47, %v5236_v30  ;;  %v5241_v36 = vrot.slane %v3641_v27, 7  ;;  %v426_v47 = vld [vmem:[%s3301_s27 + $0xa8] sm:$0xff] }
  0x6e   : > { %v1412_v53 = vrot.slane %v1347_v25, 6  ;;  %v1413_v31 = vrot.slane %v1348_v26, 6  ;;  %v3691_v1 = vsel %vm469_vm0, %v5238_v45, %v5235_v33  ;;  %v501_v61 = vrot.slane %v426_v47, 7 }
  0x6f   : > { %v1418_v35 = vrot.slane %v1351_v13, 6  ;;  %v1419_v37 = vrot.slane %v1352_v51, 6  ;;  %v5348_v47 = vrot.slane %v3616_v5, 7 }
  0x70   : > { %v1414_v14 = vsel %vm1411_vm3, %v1412_v53, %v1413_v31  ;;  %v1508_v15 = vsel %vm1411_vm3, 0.0, %v1412_v53  ;;  %v1524_v0 = vsel %vm1411_vm3, %v1413_v31, 0.0 }
  0x71   : > { %v1420_v20 = vsel %vm1411_vm3, %v1418_v35, %v1419_v37  ;;  %v1510_v21 = vsel %vm1411_vm3, 0.0, %v1418_v35  ;;  %v1553_v62 = vmul.f32 %v3654_v28, %v1508_v15  ;;  %v1622_v4 = vmul.f32 %v3661_v32, %v1508_v15 }
  0x72   : > { %v1557_v6 = vmul.f32 %v3654_v28, %v1510_v21  ;;  %v1623_v42 = vmul.f32 %v3661_v32, %v1414_v14  ;;  %v1628_v7 = vmul.f32 %v3661_v32, %v1510_v21  ;;  %v1629_v40 = vmul.f32 %v3661_v32, %v1420_v20 }
  0x73   : > { %v1585_v41 = vadd.f32 %v3678_v16, %v1553_v62  ;;  %v1718_v49 = vrot.slane %v1622_v4, 2  ;;  %v1867_v50 = vmul.f32 %v3683_v23, %v1508_v15  ;;  %v1868_v25 = vmul.f32 %v3683_v23, %v1414_v14 }
  0x74   : > { %v1589_v26 = vadd.f32 %v3678_v16, %v1557_v6  ;;  %v1719_v13 = vrot.slane %v1623_v42, 2  ;;  %v1728_v51 = vrot.slane %v1628_v7, 2  ;;  %v1729_v53 = vrot.slane %v1629_v40, 2 }
  0x75   : > { %v1873_v31 = vmul.f32 %v3683_v23, %v1510_v21  ;;  %v1874_v35 = vmul.f32 %v3683_v23, %v1420_v20  ;;  %v1964_v33 = vrot.slane %v1867_v50, 4  ;;  %v1965_v30 = vrot.slane %v1868_v25, 4  ;;  %v3715_v21 = vld [vmem:[%s5227_s7 + $0x1] ss:$0 sm:$0xff] }
  0x76   : > { %v1720_v19 = vsel %vm1022_vm2, %v1718_v49, %v1719_v13  ;;  %v1730_v62 = vsel %vm1022_vm2, %v1728_v51, %v1729_v53  ;;  %v1526_v15 = vsel %vm1411_vm3, %v1419_v37, 0.0  ;;  %v1554_v4 = vmul.f32 %v3654_v28, %v1414_v14  ;;  %5339 = vst [vmem:[#allocation28_spill] sm:$0xff] %v3715_v21 }
  0x77   : > { %v1830_v45 = vadd.f32 %v1720_v19, %v1585_v41  ;;  %v1834_v6 = vadd.f32 %v1730_v62, %v1589_v26  ;;  %v1966_v42 = vsel %vm1963_vm4, %v1964_v33, %v1965_v30  ;;  %v1974_v7 = vrot.slane %v1873_v31, 4  ;;  %v423_v41 = vld [vmem:[%s3301_s27 + $0x90] sm:$0xff] }
  0x78   : > { %v1975_v40 = vrot.slane %v1874_v35, 4  ;;  %v1558_v49 = vmul.f32 %v3654_v28, %v1420_v20  ;;  %v1586_v50 = vadd.f32 %v3678_v16, %v1554_v4  ;;  %v1624_v37 = vmul.f32 %v3661_v32, %v1524_v0  ;;  %v3728_v20 = vld [vmem:[%s5227_s7 + $0x2] ss:$0 sm:$0xff]  ;;  %v424_v4 = vld [vmem:[%s3301_s27 + $0x98] sm:$0xff] }
  0x79   : > { %v2076_v25 = vadd.f32 %v1966_v42, %v1830_v45  ;;  %v1630_v19 = vmul.f32 %v3661_v32, %v1526_v15  ;;  %v1869_v14 = vmul.f32 %v3683_v23, %v1524_v0  ;;  %v1875_v33 = vmul.f32 %v3683_v23, %v1526_v15  ;;  %5340 = vst [vmem:[#allocation29_spill] sm:$0xff] %v3728_v20 }
  0x7a   : > { %v1976_v26 = vsel %vm1963_vm4, %v1974_v7, %v1975_v40  ;;  %v1590_v51 = vadd.f32 %v3678_v16, %v1558_v49  ;;  %v1721_v31 = vrot.slane %v1624_v37, 2  ;;  %v3736_v45 = vsel %vm469_vm0, %v5242_v34, %v5241_v36  ;;  %v425_v37 = vld [vmem:[%s3301_s27 + $0xa0] sm:$0xff]  ;;  %v427_v34 = vld [vmem:[%s3301_s27 + $0xb0] sm:$0xff] }
  0x7b   : > { %v3738_v0 = vadd.f32 %v1976_v26, %v1834_v6  ;;  %v3741_v35 = vmul.f32 %v3463_v9, %v2076_v25  ;;  %v2184_v62 = vmul.f32 %v3715_v21, %v2076_v25  ;;  %v1731_v15 = vrot.slane %v1630_v19, 2 }
  0x7c   : > { %v1722_v42 = vsel %vm1022_vm2, %v1719_v13, %v1721_v31  ;;  %v1967_v7 = vrot.slane %v1869_v14, 4  ;;  %v1977_v49 = vrot.slane %v1875_v33, 4  ;;  %v497_v17 = vrot.slane %v423_v41, 7 }
  0x7d   : > { %5341 = vst [vmem:[#allocation30_spill] sm:$0xff] %v3738_v0  ;;  %5342 = vst [vmem:[#allocation31_spill] sm:$0xff] %v3741_v35  ;;  %v2216_v36 = vadd.f32 %v2184_v62, %v3632_v46  ;;  %v2253_v6 = vmul.f32 %v3728_v20, %v3738_v0  ;;  %v1732_v26 = vsel %vm1022_vm2, %v1729_v53, %v1731_v15  ;;  %v428_v35 = vld [vmem:[%s3301_s27 + $0xb8] sm:$0xff]  ;;  %v498_v14 = vrot.slane %v424_v4, 7 }
  0x7e   : > { %v1831_v9 = vadd.f32 %v1722_v42, %v1586_v50  ;;  %v1835_v25 = vadd.f32 %v1732_v26, %v1590_v51  ;;  %v1968_v19 = vsel %vm1963_vm4, %v1965_v30, %v1967_v7  ;;  %v1978_v13 = vsel %vm1963_vm4, %v1975_v40, %v1977_v49 }
  0x7f   : > { %v2282_v33 = vadd.f32 %v2253_v6, %v2216_v36  ;;  %v500_v41 = vrot.slane %v425_v37, 7  ;;  %v3761_v0 = vsel %vm469_vm0, %v497_v17, %v498_v14  ;;  %v503_v53 = vrot.slane %v427_v34, 7 }
  0x80   : > { %v3756_v31 = vadd.f32 %v1968_v19, %v1831_v9  ;;  %v3758_v62 = vadd.f32 %v1978_v13, %v1835_v25  ;;  %5345 = vst [vmem:[#allocation34_spill] sm:$0xff] %v3761_v0  ;;  %v504_v50 = vrot.slane %v428_v35, 7  ;;  %v5347_v36 = vrot.slane %v3449_v3, 7 }
  0x81   : > { %2826 = vmatprep.mubr.f32.mxu0 %v2282_v33  ;;  %v3766_v30 = vsel %vm469_vm0, %v500_v41, %v501_v61  ;;  %v3776_v15 = vsel %vm469_vm0, 0.0, %v5348_v47  ;;  %v5350_v4 = vrot.slane %v3626_v29, 7  ;;  %v5351_v3 = vrot.slane %v3638_v24, 7 }
  0x82   : > { %5343 = vst [vmem:[#allocation32_spill] sm:$0xff] %v3756_v31  ;;  %5344 = vst [vmem:[#allocation33_spill] sm:$0xff] %v3758_v62  ;;  %v2185_v51 = vmul.f32 %v3715_v21, %v3756_v31  ;;  %v3771_v40 = vsel %vm469_vm0, 0.0, %v5347_v36  ;;  %v2254_v34 = vmul.f32 %v3728_v20, %v3758_v62  ;;  %v3781_v35 = vsel %vm469_vm0, %v503_v53, %v504_v50 }
  0x83   : > { %5346 = vst [vmem:[#allocation35_spill] sm:$0xff] %v3766_v30  ;;  %5349 = vst [vmem:[#allocation36_spill] sm:$0xff] %v3781_v35  ;;  %v3786_v42 = vsel %vm469_vm0, 0.0, %v5350_v4  ;;  %v3791_v7 = vsel %vm469_vm0, 0.0, %v5351_v3  ;;  %v3795_v49 = vsel %vm469_vm0, 0.0, %v497_v17  ;;  %v3798_v37 = vsel %vm469_vm0, 0.0, %v500_v41 }
  0x84   : > { %v2217_v5 = vadd.f32 %v2185_v51, %v3632_v46  ;;  %5352 = vst [vmem:[#allocation37_spill] sm:$0xff] %v3795_v49  ;;  %5353 = vst [vmem:[#allocation38_spill] sm:$0xff] %v3798_v37  ;;  %v3801_v6 = vsel %vm469_vm0, 0.0, %v503_v53  ;;  %v5355_v29 = vrot.slane %v3506_v54, 7  ;;  %v5356_v24 = vrot.slane %v3623_v43, 7 }
  0x85   : > { %5354 = vst [vmem:[#allocation39_spill] sm:$0xff] %v3801_v6  ;;  %v5357_v25 = vrot.slane %v3635_v10, 7  ;;  %v5358_v19 = vrot.slane %v3641_v27, 7  ;;  %v3824_v54 = vsel %vm469_vm0, %v498_v14, 0.0  ;;  %v3827_v41 = vsel %vm469_vm0, %v501_v61, 0.0 }
  0x86   : > { %v3806_v26 = vsel %vm469_vm0, %v5355_v29, 0.0  ;;  %v3811_v9 = vsel %vm469_vm0, %v5356_v24, 0.0  ;;  %v2283_v33 = vadd.f32 %v2254_v34, %v2217_v5  ;;  %5360 = vst [vmem:[#allocation41_spill] sm:$0xff] %v3824_v54  ;;  %5361 = vst [vmem:[#allocation42_spill] sm:$0xff] %v3827_v41  ;;  %v3830_v43 = vsel %vm469_vm0, %v504_v50, 0.0 }
  0x87   : > { %v3816_v17 = vsel %vm469_vm0, %v5357_v25, 0.0  ;;  %v3821_v13 = vsel %vm469_vm0, %v5358_v19, 0.0  ;;  %v621_v10 = vmul.f32 %v3400_v48, %v3771_v40  ;;  %v622_v53 = vmul.f32 %v3400_v48, %v3648_v44 }
  0x88   : > { %5359 = vst [vmem:[#allocation40_spill] sm:$0xff] %v3821_v13  ;;  %v623_v27 = vmul.f32 %v3400_v48, %v3776_v15  ;;  %v624_v51 = vmul.f32 %v3400_v48, %v3670_v38  ;;  %2827 = vmatmul.mubr.f32.vlgmr.msra.gmra.mrb[0].mxu0 %v2283_v33  ;;  %v625_v61 = vmul.f32 %v3400_v48, %v3786_v42 }
  0x89   : > { %v626_v14 = vmul.f32 %v3400_v48, %v3691_v1  ;;  %v627_v50 = vmul.f32 %v3400_v48, %v3791_v7  ;;  %v628_v36 = vmul.f32 %v3400_v48, %v3736_v45  ;;  %v629_v47 = vmul.f32 %v3400_v48, %v3795_v49 }
  0x8a   : > { %v630_v34 = vmul.f32 %v3400_v48, %v3761_v0  ;;  %v631_v4 = vmul.f32 %v3400_v48, %v3798_v37  ;;  %v632_v3 = vmul.f32 %v3400_v48, %v3766_v30  ;;  %v633_v5 = vmul.f32 %v3400_v48, %v3801_v6 }
  0x8b   : > { %v634_v29 = vmul.f32 %v3400_v48, %v3781_v35  ;;  %v3861_v24 = vadd.f32 %v3432_v58, %v621_v10  ;;  %v3864_v25 = vadd.f32 %v3432_v58, %v622_v53  ;;  %v3867_v19 = vadd.f32 %v3432_v58, %v623_v27 }
  0x8c   : > { %v3870_v33 = vadd.f32 %v3432_v58, %v624_v51  ;;  %v3873_v62 = vadd.f32 %v3432_v58, %v625_v61  ;;  %v3876_v31 = vadd.f32 %v3432_v58, %v626_v14  ;;  %v3879_v48 = vadd.f32 %v3432_v58, %v627_v50 }
  0x8d   : > { %v3882_v10 = vadd.f32 %v3432_v58, %v628_v36  ;;  %v3885_v53 = vadd.f32 %v3432_v58, %v629_v47  ;;  %v3888_v27 = vadd.f32 %v3432_v58, %v630_v34  ;;  %v3891_v51 = vadd.f32 %v3432_v58, %v631_v4 }
  0x8e   : > { %v3894_v61 = vadd.f32 %v3432_v58, %v632_v3  ;;  %v3897_v14 = vadd.f32 %v3432_v58, %v633_v5  ;;  %v3900_v50 = vadd.f32 %v3432_v58, %v634_v29  ;;  %v695_v36 = vmul.f32 %v3458_v8, %v3771_v40 }
  0x8f   : > { %v696_v47 = vmul.f32 %v3458_v8, %v3648_v44  ;;  %v697_v34 = vmul.f32 %v3458_v8, %v3806_v26  ;;  %v698_v4 = vmul.f32 %v3458_v8, %v3776_v15  ;;  %v699_v3 = vmul.f32 %v3458_v8, %v3670_v38 }
  0x90   : > { %v700_v5 = vmul.f32 %v3458_v8, %v3811_v9  ;;  %v701_v58 = vmul.f32 %v3458_v8, %v3786_v42  ;;  %v702_v29 = vmul.f32 %v3458_v8, %v3691_v1  ;;  %v703_v46 = vmul.f32 %v3458_v8, %v3816_v17 }
  0x91   : > { %v704_v60 = vmul.f32 %v3458_v8, %v3791_v7  ;;  %v705_v52 = vmul.f32 %v3458_v8, %v3736_v45  ;;  %v706_v39 = vmul.f32 %v3458_v8, %v3821_v13  ;;  %v707_v12 = vmul.f32 %v3458_v8, %v3795_v49 }
  0x92   : > { %v708_v11 = vmul.f32 %v3458_v8, %v3761_v0  ;;  %v709_v59 = vmul.f32 %v3458_v8, %v3824_v54  ;;  %v710_v56 = vmul.f32 %v3458_v8, %v3798_v37  ;;  %v711_v20 = vmul.f32 %v3458_v8, %v3766_v30 }
  0x93   : > { %v712_v2 = vmul.f32 %v3458_v8, %v3827_v41  ;;  %v713_v21 = vmul.f32 %v3458_v8, %v3801_v6  ;;  %v714_v23 = vmul.f32 %v3458_v8, %v3781_v35  ;;  %v715_v16 = vmul.f32 %v3458_v8, %v3830_v43 }
  0x94   : > { %v802_v32 = vrot.slane %v695_v36, 1  ;;  %v803_v28 = vrot.slane %v696_v47, 1  ;;  %v805_v63 = vrot.slane %v697_v34, 1  ;;  %v807_v22 = vrot.slane %v698_v4, 1 }
  0x95   : > { %v808_v55 = vrot.slane %v699_v3, 1  ;;  %v810_v57 = vrot.slane %v700_v5, 1  ;;  %v812_v37 = vrot.slane %v701_v58, 1  ;;  %v813_v54 = vrot.slane %v702_v29, 1  ;;  %v5370_v29 = vld [vmem:[#allocation36_spill] sm:$0xff] }
  0x96   : > { %v804_v30 = vsel %vm776_vm1, %v802_v32, %v803_v28  ;;  %v806_v41 = vsel %vm776_vm1, %v803_v28, %v805_v63  ;;  %v815_v0 = vrot.slane %v703_v46, 1  ;;  %v817_v49 = vrot.slane %v704_v60, 1 }
  0x97   : > { %v809_v6 = vsel %vm776_vm1, %v807_v22, %v808_v55  ;;  %v811_v35 = vsel %vm776_vm1, %v808_v55, %v810_v57  ;;  %v818_v13 = vrot.slane %v705_v52, 1  ;;  %v814_v8 = vsel %vm776_vm1, %v812_v37, %v813_v54 }
  0x98   : > { %v816_v36 = vsel %vm776_vm1, %v813_v54, %v815_v0  ;;  %v820_v47 = vrot.slane %v706_v39, 1  ;;  %v822_v34 = vrot.slane %v707_v12, 1  ;;  %v823_v3 = vrot.slane %v708_v11, 1 }
  0x99   : > { %v819_v4 = vsel %vm776_vm1, %v817_v49, %v818_v13  ;;  %v825_v32 = vrot.slane %v709_v59, 1  ;;  %v827_v5 = vrot.slane %v710_v56, 1  ;;  %v828_v46 = vrot.slane %v711_v20, 1 }
  0x9a   : > { %v821_v63 = vsel %vm776_vm1, %v818_v13, %v820_v47  ;;  %v830_v28 = vrot.slane %v712_v2, 1  ;;  %v832_v22 = vrot.slane %v713_v21, 1  ;;  %v824_v57 = vsel %vm776_vm1, %v822_v34, %v823_v3 }
  0x9b   : > { %v826_v52 = vsel %vm776_vm1, %v823_v3, %v825_v32  ;;  %v833_v55 = vrot.slane %v714_v23, 1  ;;  %v835_v60 = vrot.slane %v715_v16, 1  ;;  %v829_v0 = vsel %vm776_vm1, %v827_v5, %v828_v46 }
  0x9c   : > { %v831_v39 = vsel %vm776_vm1, %v828_v46, %v830_v28  ;;  %v3957_v12 = vadd.f32 %v804_v30, %v3861_v24  ;;  %v3960_v56 = vadd.f32 %v806_v41, %v3864_v25  ;;  %v3965_v2 = vadd.f32 %v809_v6, %v3867_v19 }
  0x9d   : > { %v834_v59 = vsel %vm776_vm1, %v832_v22, %v833_v55  ;;  %v836_v11 = vsel %vm776_vm1, %v833_v55, %v835_v60  ;;  %v3968_v23 = vadd.f32 %v811_v35, %v3870_v33  ;;  %v3971_v16 = vadd.f32 %v814_v8, %v3873_v62 }
  0x9e   : > { %v3974_v21 = vadd.f32 %v816_v36, %v3876_v31  ;;  %v3977_v20 = vadd.f32 %v819_v4, %v3879_v48  ;;  %v3980_v30 = vadd.f32 %v821_v63, %v3882_v10  ;;  %v3983_v49 = vadd.f32 %v824_v57, %v3885_v53  ;;  %v5362_v48 = vld [vmem:[#allocation40_spill] sm:$0xff]  ;;  %v5363_v10 = vld [vmem:[#allocation37_spill] sm:$0xff]  ;;  %v5364_v53 = vld [vmem:[#allocation34_spill] sm:$0xff] }
  0x9f   : > { %v3986_v37 = vadd.f32 %v826_v52, %v3888_v27  ;;  %v3989_v35 = vadd.f32 %v829_v0, %v3891_v51  ;;  %v3992_v62 = vadd.f32 %v831_v39, %v3894_v61  ;;  %v3995_v31 = vadd.f32 %v834_v59, %v3897_v14  ;;  %v5365_v27 = vld [vmem:[#allocation41_spill] sm:$0xff]  ;;  %v5366_v51 = vld [vmem:[#allocation38_spill] sm:$0xff]  ;;  %v5367_v61 = vld [vmem:[#allocation35_spill] sm:$0xff] }
  0xa0   : > { %v3998_v6 = vadd.f32 %v836_v11, %v3900_v50  ;;  %v941_v13 = vmul.f32 %v3519_v18, %v3771_v40  ;;  %v942_v54 = vmul.f32 %v3519_v18, %v3648_v44  ;;  %v943_v41 = vmul.f32 %v3519_v18, %v3806_v26  ;;  %v5368_v14 = vld [vmem:[#allocation42_spill] sm:$0xff]  ;;  %v5369_v50 = vld [vmem:[#allocation39_spill] sm:$0xff] }
  0xa1   : > { %v944_v24 = vmul.f32 %v3519_v18, %v3776_v15  ;;  %v945_v25 = vmul.f32 %v3519_v18, %v3670_v38  ;;  %v946_v19 = vmul.f32 %v3519_v18, %v3811_v9  ;;  %v947_v33 = vmul.f32 %v3519_v18, %v3786_v42 }
  0xa2   : > { %v948_v40 = vmul.f32 %v3519_v18, %v3691_v1  ;;  %v949_v44 = vmul.f32 %v3519_v18, %v3816_v17  ;;  %v950_v26 = vmul.f32 %v3519_v18, %v3791_v7  ;;  %v951_v15 = vmul.f32 %v3519_v18, %v3736_v45 }
  0xa3   : > { %v952_v38 = vmul.f32 %v3519_v18, %v5362_v48  ;;  %v953_v9 = vmul.f32 %v3519_v18, %v5363_v10  ;;  %v954_v42 = vmul.f32 %v3519_v18, %v5364_v53  ;;  %v955_v1 = vmul.f32 %v3519_v18, %v5365_v27 }
  0xa4   : > { %v956_v17 = vmul.f32 %v3519_v18, %v5366_v51  ;;  %v957_v7 = vmul.f32 %v3519_v18, %v5367_v61  ;;  %v958_v45 = vmul.f32 %v3519_v18, %v5368_v14  ;;  %v959_v58 = vmul.f32 %v3519_v18, %v5369_v50  ;;  %v5375_v50 = vld [vmem:[#allocation13_spill] sm:$0xff] }
  0xa5   : > { %v960_v8 = vmul.f32 %v3519_v18, %v5370_v29  ;;  %v961_v36 = vmul.f32 %v3519_v18, %v3830_v43  ;;  %v1048_v47 = vrot.slane %v941_v13, 2  ;;  %v1049_v34 = vrot.slane %v942_v54, 2 }
  0xa6   : > { %v1051_v4 = vrot.slane %v943_v41, 2  ;;  %v1053_v3 = vrot.slane %v944_v24, 2  ;;  %v1054_v32 = vrot.slane %v945_v25, 2  ;;  %v1056_v5 = vrot.slane %v946_v19, 2 }
  0xa7   : > { %v1058_v63 = vrot.slane %v947_v33, 2  ;;  %v1059_v46 = vrot.slane %v948_v40, 2  ;;  %v1061_v28 = vrot.slane %v949_v44, 2  ;;  %v1050_v22 = vsel %vm1022_vm2, %v1048_v47, %v1049_v34 }
  0xa8   : > { %v1052_v57 = vsel %vm1022_vm2, %v1049_v34, %v1051_v4  ;;  %v1055_v52 = vsel %vm1022_vm2, %v1053_v3, %v1054_v32  ;;  %v1063_v55 = vrot.slane %v950_v26, 2  ;;  %v1057_v60 = vsel %vm1022_vm2, %v1054_v32, %v1056_v5 }
  0xa9   : > { %v1060_v18 = vsel %vm1022_vm2, %v1058_v63, %v1059_v46  ;;  %v1062_v43 = vsel %vm1022_vm2, %v1059_v46, %v1061_v28  ;;  %v1064_v0 = vrot.slane %v951_v15, 2  ;;  %v1066_v39 = vrot.slane %v952_v38, 2 }
  0xaa   : > { %v1068_v59 = vrot.slane %v953_v9, 2  ;;  %v1069_v11 = vrot.slane %v954_v42, 2  ;;  %v1071_v13 = vrot.slane %v955_v1, 2  ;;  %v1073_v41 = vrot.slane %v956_v17, 2 }
  0xab   : > { %v1065_v54 = vsel %vm1022_vm2, %v1063_v55, %v1064_v0  ;;  %v1074_v24 = vrot.slane %v957_v7, 2  ;;  %v1076_v25 = vrot.slane %v958_v45, 2  ;;  %v1067_v19 = vsel %vm1022_vm2, %v1064_v0, %v1066_v39 }
  0xac   : > { %v1070_v33 = vsel %vm1022_vm2, %v1068_v59, %v1069_v11  ;;  %v1072_v40 = vsel %vm1022_vm2, %v1069_v11, %v1071_v13  ;;  %v1078_v44 = vrot.slane %v959_v58, 2  ;;  %v1079_v48 = vrot.slane %v960_v8, 2 }
  0xad   : > { %v1075_v26 = vsel %vm1022_vm2, %v1073_v41, %v1074_v24  ;;  %v1077_v15 = vsel %vm1022_vm2, %v1074_v24, %v1076_v25  ;;  %v1081_v38 = vrot.slane %v961_v36, 2  ;;  %v4055_v10 = vadd.f32 %v1050_v22, %v3957_v12 }
  0xae   : > { %v4058_v9 = vadd.f32 %v1052_v57, %v3960_v56  ;;  %v4061_v53 = vadd.f32 %v1055_v52, %v3965_v2  ;;  %v4064_v42 = vadd.f32 %v1057_v60, %v3968_v23  ;;  %v1080_v27 = vsel %vm1022_vm2, %v1078_v44, %v1079_v48  ;;  %v5376_v57 = vld [vmem:[#allocation19_spill] sm:$0xff]  ;;  %v413_v60 = vld [vmem:[%s3301_s27 + $0x40] sm:$0xff] }
  0xaf   : > { %v1082_v1 = vsel %vm1022_vm2, %v1079_v48, %v1081_v38  ;;  %v4069_v51 = vadd.f32 %v1060_v18, %v3971_v16  ;;  %v4072_v17 = vadd.f32 %v1062_v43, %v3974_v21  ;;  %v4075_v12 = vadd.f32 %v1065_v54, %v3977_v20  ;;  %v4134_v18 = vld [vmem:[%s3301_s27 + $0x48] sm:$0xff] }
  0xb0   : > { %5371 = vst [vmem:[#allocation40_spill] sm:$0xff] %v4061_v53  ;;  %5372 = vst [vmem:[#allocation37_spill] sm:$0xff] %v4064_v42  ;;  %v4078_v56 = vadd.f32 %v1067_v19, %v3980_v30  ;;  %v4081_v2 = vadd.f32 %v1070_v33, %v3983_v49  ;;  %v4084_v23 = vadd.f32 %v1072_v40, %v3986_v37  ;;  %v5373_v30 = vld [vmem:[#allocation10_spill] sm:$0xff]  ;;  %v482_v19 = vrot.slane %v413_v60, 7 }
  0xb1   : > { %v4087_v61 = vadd.f32 %v1075_v26, %v3989_v35  ;;  %v4090_v16 = vadd.f32 %v1077_v15, %v3992_v62  ;;  %v4093_v21 = vadd.f32 %v1080_v27, %v3995_v31  ;;  %v4096_v20 = vadd.f32 %v1082_v1, %v3998_v6  ;;  %v5374_v6 = vld [vmem:[#allocation14_spill] sm:$0xff] }
  0xb2   : > { %v1191_v7 = vmul.f32 %v5373_v30, %v4055_v10  ;;  %v1192_v49 = vmul.f32 %v5373_v30, %v4058_v9  ;;  %v1195_v37 = vmul.f32 %v5373_v30, %v4069_v51  ;;  %v1196_v35 = vmul.f32 %v5373_v30, %v4072_v17 }
  0xb3   : > { %v1199_v62 = vmul.f32 %v5373_v30, %v4081_v2  ;;  %v1200_v31 = vmul.f32 %v5373_v30, %v4084_v23  ;;  %v1259_v14 = vmul.f32 %v5374_v6, %v4061_v53  ;;  %v1260_v45 = vmul.f32 %v5374_v6, %v4064_v42 }
  0xb4   : > { %v1222_v58 = vadd.f32 %v5375_v50, %v1191_v7  ;;  %v1223_v29 = vadd.f32 %v5375_v50, %v1192_v49  ;;  %v1226_v8 = vadd.f32 %v5375_v50, %v1195_v37  ;;  %v1227_v36 = vadd.f32 %v5375_v50, %v1196_v35 }
  0xb5   : > { %v1230_v47 = vadd.f32 %v5375_v50, %v1199_v62  ;;  %v1231_v34 = vadd.f32 %v5375_v50, %v1200_v31  ;;  %v1263_v4 = vmul.f32 %v5374_v6, %v4075_v12  ;;  %v1264_v3 = vmul.f32 %v5374_v6, %v4078_v56  ;;  %v5377_v31 = vld [vmem:[#allocation24_spill] sm:$0xff] }
  0xb6   : > { %v1267_v32 = vmul.f32 %v5374_v6, %v4087_v61  ;;  %v1268_v5 = vmul.f32 %v5374_v6, %v4090_v16  ;;  %v1291_v63 = vadd.f32 %v1259_v14, %v1222_v58  ;;  %v1292_v46 = vadd.f32 %v1260_v45, %v1223_v29  ;;  %v5378_v45 = vld [vmem:[#allocation25_spill] sm:$0xff] }
  0xb7   : > { %v1295_v28 = vadd.f32 %v1263_v4, %v1226_v8  ;;  %v1296_v22 = vadd.f32 %v1264_v3, %v1227_v36  ;;  %v1328_v52 = vmul.f32 %v5376_v57, %v4069_v51  ;;  %v1329_v55 = vmul.f32 %v5376_v57, %v4072_v17  ;;  %v5379_v4 = vld [vmem:[#allocation26_spill] sm:$0xff] }
  0xb8   : > { %v1299_v43 = vadd.f32 %v1267_v32, %v1230_v47  ;;  %v1300_v0 = vadd.f32 %v1268_v5, %v1231_v34  ;;  %v1332_v39 = vmul.f32 %v5376_v57, %v4081_v2  ;;  %v1333_v59 = vmul.f32 %v5376_v57, %v4084_v23 }
  0xb9   : > { %v1336_v11 = vmul.f32 %v5376_v57, %v4093_v21  ;;  %v1337_v13 = vmul.f32 %v5376_v57, %v4096_v20  ;;  %v1359_v54 = vadd.f32 %v1328_v52, %v1291_v63  ;;  %v1360_v41 = vadd.f32 %v1329_v55, %v1292_v46 }
  0xba   : > { %v1363_v24 = vadd.f32 %v1332_v39, %v1295_v28  ;;  %v1364_v25 = vadd.f32 %v1333_v59, %v1296_v22  ;;  %v483_v33 = vrot.slane %v4134_v18, 7  ;;  %v4151_v1 = vsel %vm469_vm0, 0.0, %v482_v19  ;;  %v5380_v59 = vld [vmem:[#allocation27_spill] sm:$0xff]  ;;  %v4235_v18 = vld [vmem:[%s5221_s1] ss:$0 sm:$0xff] }
  0xbb   : > { %v1367_v40 = vadd.f32 %v1336_v11, %v1299_v43  ;;  %v1368_v44 = vadd.f32 %v1337_v13, %v1300_v0  ;;  %v1430_v26 = vrot.slane %v1359_v54, 6  ;;  %v1431_v15 = vrot.slane %v1360_v41, 6 }
  0xbc   : > { %v1436_v48 = vrot.slane %v1363_v24, 6  ;;  %v1437_v38 = vrot.slane %v1364_v25, 6  ;;  %v4148_v27 = vsel %vm469_vm0, %v482_v19, %v483_v33 }
  0xbd   : > { %v1432_v30 = vsel %vm1411_vm3, %v1430_v26, %v1431_v15  ;;  %v1442_v7 = vrot.slane %v1367_v40, 6  ;;  %v1443_v49 = vrot.slane %v1368_v44, 6  ;;  %v1514_v37 = vsel %vm1411_vm3, 0.0, %v1430_v26 }
  0xbe   : > { %v1438_v35 = vsel %vm1411_vm3, %v1436_v48, %v1437_v38  ;;  %v1516_v62 = vsel %vm1411_vm3, 0.0, %v1436_v48  ;;  %v1565_v14 = vmul.f32 %v5377_v31, %v1514_v37  ;;  %v1640_v58 = vmul.f32 %v5378_v45, %v1514_v37 }
  0xbf   : > { %v1444_v29 = vsel %vm1411_vm3, %v1442_v7, %v1443_v49  ;;  %v1518_v8 = vsel %vm1411_vm3, 0.0, %v1442_v7  ;;  %v1569_v36 = vmul.f32 %v5377_v31, %v1516_v62  ;;  %v4163_v47 = vmul.f32 %v5378_v45, %v1432_v30 }
  0xc0   : > { %v1573_v34 = vmul.f32 %v5377_v31, %v1518_v8  ;;  %v1597_v3 = vadd.f32 %v5379_v4, %v1565_v14  ;;  %v1646_v32 = vmul.f32 %v5378_v45, %v1516_v62  ;;  %v4169_v5 = vmul.f32 %v5378_v45, %v1438_v35 }
  0xc1   : > { %v1601_v63 = vadd.f32 %v5379_v4, %v1569_v36  ;;  %v1652_v46 = vmul.f32 %v5378_v45, %v1518_v8  ;;  %v1653_v28 = vmul.f32 %v5378_v45, %v1444_v29  ;;  %v1748_v22 = vrot.slane %v1640_v58, 2 }
  0xc2   : > { %v1605_v52 = vadd.f32 %v5379_v4, %v1573_v34  ;;  %v1749_v55 = vrot.slane %v4163_v47, 2  ;;  %v1758_v60 = vrot.slane %v1646_v32, 2  ;;  %v1759_v43 = vrot.slane %v4169_v5, 2 }
  0xc3   : > { %v1768_v0 = vrot.slane %v1652_v46, 2  ;;  %v1769_v39 = vrot.slane %v1653_v28, 2  ;;  %v1885_v11 = vmul.f32 %v5380_v59, %v1514_v37  ;;  %v1886_v13 = vmul.f32 %v5380_v59, %v1432_v30 }
  0xc4   : > { %v1750_v54 = vsel %vm1022_vm2, %v1748_v22, %v1749_v55  ;;  %v1760_v41 = vsel %vm1022_vm2, %v1758_v60, %v1759_v43  ;;  %v1891_v24 = vmul.f32 %v5380_v59, %v1516_v62  ;;  %v1892_v25 = vmul.f32 %v5380_v59, %v1438_v35 }
  0xc5   : > { %v1770_v19 = vsel %vm1022_vm2, %v1768_v0, %v1769_v39  ;;  %v1842_v40 = vadd.f32 %v1750_v54, %v1597_v3  ;;  %v1846_v44 = vadd.f32 %v1760_v41, %v1601_v63  ;;  %v1897_v26 = vmul.f32 %v5380_v59, %v1518_v8 }
  0xc6   : > { %v1850_v48 = vadd.f32 %v1770_v19, %v1605_v52  ;;  %v1898_v7 = vmul.f32 %v5380_v59, %v1444_v29  ;;  %v1994_v37 = vrot.slane %v1885_v11, 4  ;;  %v1995_v14 = vrot.slane %v1886_v13, 4  ;;  %v5382_v11 = vld [vmem:[#allocation28_spill] sm:$0xff]  ;;  %v5384_v19 = vld [vmem:[#allocation29_spill] sm:$0xff] }
  0xc7   : > { %v2004_v58 = vrot.slane %v1891_v24, 4  ;;  %v2005_v36 = vrot.slane %v1892_v25, 4  ;;  %v2014_v47 = vrot.slane %v1897_v26, 4  ;;  %v1530_v34 = vsel %vm1411_vm3, %v1431_v15, 0.0  ;;  %v5383_v24 = vld [vmem:[#allocation22_spill] sm:$0xff] }
  0xc8   : > { %v1996_v62 = vsel %vm1963_vm4, %v1994_v37, %v1995_v14  ;;  %v2015_v32 = vrot.slane %v1898_v7, 4  ;;  %v1532_v5 = vsel %vm1411_vm3, %v1437_v38, 0.0  ;;  %v1534_v3 = vsel %vm1411_vm3, %v1443_v49, 0.0  ;;  %v4205_v38 = vld [vmem:[%s5227_s7] ss:$0 sm:$0xff] }
  0xc9   : > { %v2006_v63 = vsel %vm1963_vm4, %v2004_v58, %v2005_v36  ;;  %v4191_v8 = vadd.f32 %v1996_v62, %v1842_v40  ;;  %v1566_v46 = vmul.f32 %v5377_v31, %v1432_v30  ;;  %v1570_v28 = vmul.f32 %v5377_v31, %v1438_v35 }
  0xca   : > { %v2016_v22 = vsel %vm1963_vm4, %v2014_v47, %v2015_v32  ;;  %v4196_v52 = vadd.f32 %v2006_v63, %v1846_v44  ;;  %v1574_v15 = vmul.f32 %v5377_v31, %v1444_v29  ;;  %v1642_v60 = vmul.f32 %v5378_v45, %v1530_v34 }
  0xcb   : > { %5381 = vst [vmem:[#allocation34_spill] sm:$0xff] %v4191_v8  ;;  %v4200_v0 = vadd.f32 %v2016_v22, %v1850_v48  ;;  %v2134_v30 = vmul.f32 %v4205_v38, %v4191_v8  ;;  %v1598_v49 = vadd.f32 %v5379_v4, %v1566_v46  ;;  %v1602_v35 = vadd.f32 %v5379_v4, %v1570_v28 }
  0xcc   : > { %v2200_v13 = vmul.f32 %v5382_v11, %v4196_v52  ;;  %v1606_v29 = vadd.f32 %v5379_v4, %v1574_v15  ;;  %v1648_v54 = vmul.f32 %v5378_v45, %v1532_v5  ;;  %v1654_v41 = vmul.f32 %v5378_v45, %v1534_v3 }
  0xcd   : > { %v2163_v25 = vadd.f32 %v5383_v24, %v2134_v30  ;;  %v2269_v40 = vmul.f32 %v5384_v19, %v4200_v0  ;;  %v1751_v44 = vrot.slane %v1642_v60, 2  ;;  %v1887_v26 = vmul.f32 %v5380_v59, %v1530_v34 }
  0xce   : > { %v1761_v48 = vrot.slane %v1648_v54, 2  ;;  %v1771_v7 = vrot.slane %v1654_v41, 2  ;;  %v1893_v37 = vmul.f32 %v5380_v59, %v1532_v5  ;;  %v1899_v58 = vmul.f32 %v5380_v59, %v1534_v3  ;;  %v4258_v41 = vld [vmem:[%s5222_s2] ss:$0 sm:$0xff] }
  0xcf   : > { %v2232_v47 = vadd.f32 %v2200_v13, %v2163_v25  ;;  %v1752_v62 = vsel %vm1022_vm2, %v1749_v55, %v1751_v44  ;;  %v1997_v63 = vrot.slane %v1887_v26, 4  ;;  %v586_v46 = vsel %vm469_vm0, %v483_v33, 0.0 }
  0xd0   : > { %v1762_v28 = vsel %vm1022_vm2, %v1759_v43, %v1761_v48  ;;  %v1772_v22 = vsel %vm1022_vm2, %v1769_v39, %v1771_v7  ;;  %v1843_v15 = vadd.f32 %v1752_v62, %v1598_v49  ;;  %v2007_v34 = vrot.slane %v1893_v37, 4 }
  0xd1   : > { %v2298_v60 = vadd.f32 %v2269_v40, %v2232_v47  ;;  %v1847_v30 = vadd.f32 %v1762_v28, %v1602_v35  ;;  %v1851_v54 = vadd.f32 %v1772_v22, %v1606_v29  ;;  %v1998_v5 = vsel %vm1963_vm4, %v1995_v14, %v1997_v63  ;;  %v4246_v14 = vld [vmem:[%s5221_s1 + $0x1] ss:$0 sm:$0xff]  ;;  %v4271_v47 = vld [vmem:[%s5221_s1 + $0x2] ss:$0 sm:$0xff] }
  0xd2   : > { %v2008_v3 = vsel %vm1963_vm4, %v2005_v36, %v2007_v34  ;;  %v2017_v13 = vrot.slane %v1899_v58, 4  ;;  %v4230_v55 = vadd.f32 %v1998_v5, %v1843_v15  ;;  %v619_v33 = vmul.f32 %v4235_v18, %v4151_v1  ;;  %v5387_v15 = vld [vmem:[#allocation15_spill] sm:$0xff] }
  0xd3   : > { %2850 = vmatprep.mubr.f32.mxu1 %v2298_v60  ;;  %v4239_v43 = vadd.f32 %v2008_v3, %v1847_v30  ;;  %v620_v39 = vmul.f32 %v4235_v18, %v4148_v27  ;;  %v692_v36 = vmul.f32 %v4246_v14, %v4151_v1  ;;  %v693_v49 = vmul.f32 %v4246_v14, %v4148_v27 }
  0xd4   : > { %5385 = vst [vmem:[#allocation41_spill] sm:$0xff] %v4230_v55  ;;  %v2018_v35 = vsel %vm1963_vm4, %v2015_v32, %v2017_v13  ;;  %v2135_v29 = vmul.f32 %v4205_v38, %v4230_v55  ;;  %v651_v25 = vadd.f32 %v4258_v41, %v619_v33  ;;  %v694_v40 = vmul.f32 %v4246_v14, %v586_v46  ;;  %v5388_v33 = vld [vmem:[#allocation16_spill] sm:$0xff] }
  0xd5   : > { %v4262_v44 = vadd.f32 %v2018_v35, %v1851_v54  ;;  %v2201_v26 = vmul.f32 %v5382_v11, %v4239_v43  ;;  %v652_v48 = vadd.f32 %v4258_v41, %v620_v39  ;;  %v797_v32 = vrot.slane %v692_v36, 1  ;;  %v5389_v36 = vld [vmem:[#allocation20_spill] sm:$0xff]  ;;  %v5390_v35 = vld [vmem:[#allocation21_spill] sm:$0xff] }
  0xd6   : > { %v2164_v7 = vadd.f32 %v5383_v24, %v2135_v29  ;;  %v798_v37 = vrot.slane %v693_v49, 1  ;;  %v800_v58 = vrot.slane %v694_v40, 1  ;;  %v938_v62 = vmul.f32 %v4271_v47, %v4151_v1  ;;  %v4283_v24 = vld [vmem:[%s5223_s3] ss:$0 sm:$0xff] }
  0xd7   : > { %5386 = vst [vmem:[#allocation38_spill] sm:$0xff] %v4262_v44  ;;  %v2270_v63 = vmul.f32 %v5384_v19, %v4262_v44  ;;  %v939_v28 = vmul.f32 %v4271_v47, %v4148_v27  ;;  %v940_v22 = vmul.f32 %v4271_v47, %v586_v46  ;;  %v1185_v34 = vmul.f32 %v4283_v24, %v5387_v15 }
  0xd8   : > { %v2233_v60 = vadd.f32 %v2201_v26, %v2164_v7  ;;  %v799_v30 = vsel %vm776_vm1, %v797_v32, %v798_v37  ;;  %v801_v1 = vsel %vm776_vm1, %v798_v37, %v800_v58  ;;  %v1043_v54 = vrot.slane %v938_v62, 2  ;;  %v5392_v62 = vld [vmem:[#allocation12_spill] sm:$0xff] }
  0xd9   : > { %v897_v5 = vadd.f32 %v799_v30, %v651_v25  ;;  %v898_v3 = vadd.f32 %v801_v1, %v652_v48  ;;  %v1044_v27 = vrot.slane %v939_v28, 2  ;;  %v1046_v13 = vrot.slane %v940_v22, 2  ;;  %v5391_v48 = vld [vmem:[#allocation11_spill] sm:$0xff]  ;;  %v429_v28 = vld [vmem:[%s3301_s27 + $0xc0] sm:$0xff]  ;;  %v5393_v22 = vld [vmem:[#allocation17_spill] sm:$0xff] }
  0xda   : > { %v2299_v46 = vadd.f32 %v2270_v63, %v2233_v60  ;;  %v1186_v39 = vmul.f32 %v4283_v24, %v5388_v33  ;;  %v1212_v49 = vadd.f32 %v5375_v50, %v5389_v36  ;;  %v1213_v29 = vadd.f32 %v5375_v50, %v5390_v35  ;;  %v5394_v30 = vld [vmem:[#allocation18_spill] sm:$0xff] }
  0xdb   : > { %v1045_v40 = vsel %vm1022_vm2, %v1043_v54, %v1044_v27  ;;  %v1047_v26 = vsel %vm1022_vm2, %v1044_v27, %v1046_v13  ;;  %v1216_v25 = vadd.f32 %v5375_v50, %v1185_v34  ;;  %v1249_v32 = vmul.f32 %v5374_v6, %v5391_v48 }
  0xdc   : > { %2851 = vmatmul.mubr.f32.vlgmr.msra.gmra.mrb[0].mxu1 %v2299_v46  ;;  %v4300_v7 = vadd.f32 %v1045_v40, %v897_v5  ;;  %v4302_v37 = vadd.f32 %v1047_v26, %v898_v3  ;;  %v1217_v58 = vadd.f32 %v5375_v50, %v1186_v39  ;;  %v1250_v63 = vmul.f32 %v5374_v6, %v5392_v62  ;;  %v430_v5 = vld [vmem:[%s3301_s27 + $0xc8] sm:$0xff] }
  0xdd   : > { %v1253_v60 = vmul.f32 %v5374_v6, %v5393_v22  ;;  %v1254_v34 = vmul.f32 %v5374_v6, %v5394_v30  ;;  %v1281_v1 = vadd.f32 %v1249_v32, %v1212_v49  ;;  %v1318_v54 = vmul.f32 %v5376_v57, %v5387_v15 }
  0xde   : > { %v1282_v27 = vadd.f32 %v1250_v63, %v1213_v29  ;;  %v1319_v3 = vmul.f32 %v5376_v57, %v5388_v33  ;;  %v1322_v50 = vmul.f32 %v5376_v57, %v4300_v7  ;;  %v1323_v13 = vmul.f32 %v5376_v57, %v4302_v37 }
  0xdf   : > { %v1285_v46 = vadd.f32 %v1253_v60, %v1216_v25  ;;  %v1286_v39 = vadd.f32 %v1254_v34, %v1217_v58  ;;  %v1349_v36 = vadd.f32 %v1318_v54, %v1281_v1  ;;  %v506_v35 = vrot.slane %v429_v28, 7 }
  0xe0   : > { %v1350_v6 = vadd.f32 %v1319_v3, %v1282_v27  ;;  %v507_v49 = vrot.slane %v430_v5, 7  ;;  %v4323_v15 = vmul.f32 %v4283_v24, %v4061_v53  ;;  %v4327_v29 = vmul.f32 %v4283_v24, %v4064_v42 }
  0xe1   : > { %v1353_v33 = vadd.f32 %v1322_v50, %v1285_v46  ;;  %v1354_v40 = vadd.f32 %v1323_v13, %v1286_v39  ;;  %v1415_v26 = vrot.slane %v1349_v36, 6  ;;  %v4330_v48 = vsel %vm469_vm0, 0.0, %v506_v35 }
  0xe2   : > { %v1416_v57 = vrot.slane %v1350_v6, 6  ;;  %v4333_v25 = vsel %vm469_vm0, %v506_v35, %v507_v49  ;;  %v4336_v32 = vsel %vm469_vm0, %v507_v49, 0.0  ;;  %v635_v58 = vmul.f32 %v4235_v18, %v4330_v48 }
  0xe3   : > { %v1421_v62 = vrot.slane %v1353_v33, 6  ;;  %v1422_v63 = vrot.slane %v1354_v40, 6  ;;  %v1509_v28 = vsel %vm1411_vm3, 0.0, %v1415_v26  ;;  %v636_v60 = vmul.f32 %v4235_v18, %v4333_v25 }
  0xe4   : > { %v1417_v34 = vsel %vm1411_vm3, %v1415_v26, %v1416_v57  ;;  %v1555_v1 = vmul.f32 %v5377_v31, %v1509_v28  ;;  %v1625_v54 = vmul.f32 %v5378_v45, %v1509_v28  ;;  %v1870_v5 = vmul.f32 %v5380_v59, %v1509_v28 }
  0xe5   : > { %v1423_v27 = vsel %vm1411_vm3, %v1421_v62, %v1422_v63  ;;  %v1511_v3 = vsel %vm1411_vm3, 0.0, %v1421_v62  ;;  %v1626_v50 = vmul.f32 %v5378_v45, %v1417_v34  ;;  %v1871_v13 = vmul.f32 %v5380_v59, %v1417_v34 }
  0xe6   : > { %v1559_v46 = vmul.f32 %v5377_v31, %v1511_v3  ;;  %v1587_v39 = vadd.f32 %v5379_v4, %v1555_v1  ;;  %v1631_v36 = vmul.f32 %v5378_v45, %v1511_v3  ;;  %v1632_v35 = vmul.f32 %v5378_v45, %v1423_v27 }
  0xe7   : > { %v1723_v6 = vrot.slane %v1625_v54, 2  ;;  %v1724_v49 = vrot.slane %v1626_v50, 2  ;;  %v1876_v33 = vmul.f32 %v5380_v59, %v1511_v3  ;;  %v1877_v40 = vmul.f32 %v5380_v59, %v1423_v27 }
  0xe8   : > { %v1591_v26 = vadd.f32 %v5379_v4, %v1559_v46  ;;  %v1733_v62 = vrot.slane %v1631_v36, 2  ;;  %v1734_v28 = vrot.slane %v1632_v35, 2  ;;  %v1969_v55 = vrot.slane %v1870_v5, 4  ;;  %v4367_v5 = vld [vmem:[%s5225_s5] ss:$0 sm:$0xff] }
  0xe9   : > { %v1725_v8 = vsel %vm1022_vm2, %v1723_v6, %v1724_v49  ;;  %v1970_v31 = vrot.slane %v1871_v13, 4  ;;  %v1979_v42 = vrot.slane %v1876_v33, 4  ;;  %v1980_v1 = vrot.slane %v1877_v40, 4 }
  0xea   : > { %v1735_v53 = vsel %vm1022_vm2, %v1733_v62, %v1734_v28  ;;  %v1832_v44 = vadd.f32 %v1725_v8, %v1587_v39  ;;  %v1525_v45 = vsel %vm1411_vm3, %v1416_v57, 0.0  ;;  %v1527_v54 = vsel %vm1411_vm3, %v1422_v63, 0.0  ;;  %v4376_v57 = vld [vmem:[%s5225_s5 + $0x1] ss:$0 sm:$0xff] }
  0xeb   : > { %v1836_v3 = vadd.f32 %v1735_v53, %v1591_v26  ;;  %v1971_v50 = vsel %vm1963_vm4, %v1969_v55, %v1970_v31  ;;  %v1981_v46 = vsel %vm1963_vm4, %v1979_v42, %v1980_v1  ;;  %v1556_v13 = vmul.f32 %v4367_v5, %v1417_v34 }
  0xec   : > { %v4370_v36 = vadd.f32 %v1971_v50, %v1832_v44  ;;  %v1560_v8 = vmul.f32 %v4367_v5, %v1423_v27  ;;  %v1627_v53 = vmul.f32 %v4376_v57, %v1525_v45  ;;  %v1633_v42 = vmul.f32 %v4376_v57, %v1527_v54  ;;  %v4390_v27 = vld [vmem:[%s5226_s6] ss:$0 sm:$0xff] }
  0xed   : > { %v4380_v55 = vadd.f32 %v1981_v46, %v1836_v3  ;;  %v1588_v63 = vadd.f32 %v5379_v4, %v1556_v13  ;;  %v1872_v39 = vmul.f32 %v5380_v59, %v1525_v45  ;;  %v1878_v44 = vmul.f32 %v5380_v59, %v1527_v54  ;;  %v5395_v59 = vld [vmem:[#allocation23_spill] sm:$0xff] }
  0xee   : > { %v2186_v34 = vmul.f32 %v5382_v11, %v4370_v36  ;;  %v1592_v35 = vadd.f32 %v4390_v27, %v1560_v8  ;;  %v1726_v6 = vrot.slane %v1627_v53, 2  ;;  %v1736_v33 = vrot.slane %v1633_v42, 2 }
  0xef   : > { %v2255_v40 = vmul.f32 %v5384_v19, %v4380_v55  ;;  %v1972_v4 = vrot.slane %v1872_v39, 4  ;;  %v1982_v26 = vrot.slane %v1878_v44, 4  ;;  %v667_v62 = vadd.f32 %v4258_v41, %v635_v58 }
  0xf0   : > { %v2218_v45 = vadd.f32 %v2186_v34, %v5395_v59  ;;  %v1727_v54 = vsel %vm1022_vm2, %v1724_v49, %v1726_v6  ;;  %v1737_v3 = vsel %vm1022_vm2, %v1734_v28, %v1736_v33  ;;  %v668_v50 = vadd.f32 %v4258_v41, %v636_v60 }
  0xf1   : > { %v1833_v46 = vadd.f32 %v1727_v54, %v1588_v63  ;;  %v1837_v13 = vadd.f32 %v1737_v3, %v1592_v35  ;;  %v1973_v8 = vsel %vm1963_vm4, %v1970_v31, %v1972_v4  ;;  %v1983_v53 = vsel %vm1963_vm4, %v1980_v1, %v1982_v26 }
  0xf2   : > { %v2284_v42 = vadd.f32 %v2255_v40, %v2218_v45  ;;  %v716_v39 = vmul.f32 %v4246_v14, %v4330_v48  ;;  %v717_v58 = vmul.f32 %v4246_v14, %v4333_v25  ;;  %v718_v49 = vmul.f32 %v4246_v14, %v4336_v32 }
  0xf3   : > { %v4408_v44 = vadd.f32 %v1973_v8, %v1833_v46  ;;  %v4410_v28 = vadd.f32 %v1983_v53, %v1837_v13  ;;  %v962_v60 = vmul.f32 %v4271_v47, %v4330_v48  ;;  %v963_v31 = vmul.f32 %v4271_v47, %v4333_v25 }
  0xf4   : > { %2829 = vmatprep.mubr.f32.mxu0 %v2284_v42  ;;  %v837_v1 = vrot.slane %v716_v39, 1  ;;  %v838_v63 = vrot.slane %v717_v58, 1  ;;  %v840_v34 = vrot.slane %v718_v49, 1  ;;  %v964_v35 = vmul.f32 %v4271_v47, %v4336_v32 }
  0xf5   : > { %5396 = vst [vmem:[#allocation35_spill] sm:$0xff] %v4410_v28  ;;  %v2187_v6 = vmul.f32 %v5382_v11, %v4408_v44  ;;  %v2256_v33 = vmul.f32 %v5384_v19, %v4410_v28  ;;  %v1083_v40 = vrot.slane %v962_v60, 2  ;;  %v1084_v4 = vrot.slane %v963_v31, 2 }
  0xf6   : > { %v839_v48 = vsel %vm776_vm1, %v837_v1, %v838_v63  ;;  %v841_v26 = vsel %vm776_vm1, %v838_v63, %v840_v34  ;;  %v1086_v25 = vrot.slane %v964_v35, 2  ;;  %v1197_v45 = vmul.f32 %v4283_v24, %v4075_v12  ;;  %v4455_v1 = vld [vmem:[%s5223_s3 + $0x1] ss:$0 sm:$0xff] }
  0xf7   : > { %v2219_v54 = vadd.f32 %v2187_v6, %v5395_v59  ;;  %v913_v3 = vadd.f32 %v839_v48, %v667_v62  ;;  %v914_v32 = vadd.f32 %v841_v26, %v668_v50  ;;  %v1085_v46 = vsel %vm1022_vm2, %v1083_v40, %v1084_v4  ;;  %v4442_v62 = vld [vmem:[%s5224_s4] ss:$0 sm:$0xff] }
  0xf8   : > { %v1087_v11 = vsel %vm1022_vm2, %v1084_v4, %v1086_v25  ;;  %v1198_v19 = vmul.f32 %v4283_v24, %v4078_v56  ;;  %v1201_v13 = vmul.f32 %v4283_v24, %v4087_v61  ;;  %v1202_v8 = vmul.f32 %v4283_v24, %v4090_v16 }
  0xf9   : > { %v2285_v53 = vadd.f32 %v2256_v33, %v2219_v54  ;;  %v4435_v42 = vadd.f32 %v1085_v46, %v913_v3  ;;  %v4437_v39 = vadd.f32 %v1087_v11, %v914_v32  ;;  %v1224_v59 = vadd.f32 %v4442_v62, %v4323_v15  ;;  %v4472_v33 = vld [vmem:[%s5223_s3 + $0x2] ss:$0 sm:$0xff] }
  0xfa   : > { %v1225_v50 = vadd.f32 %v4442_v62, %v4327_v29  ;;  %v1228_v58 = vadd.f32 %v4442_v62, %v1197_v45  ;;  %v1229_v49 = vadd.f32 %v4442_v62, %v1198_v19  ;;  %v1232_v60 = vadd.f32 %v4442_v62, %v1201_v13 }
  0xfb   : > { %2830 = vmatmul.mubr.f32.gmra.mrb[2].mxu0 %v2285_v53  ;;  %v1233_v31 = vadd.f32 %v4442_v62, %v1202_v8  ;;  %v1261_v15 = vmul.f32 %v4455_v1, %v4069_v51  ;;  %v1262_v29 = vmul.f32 %v4455_v1, %v4072_v17  ;;  %v1265_v63 = vmul.f32 %v4455_v1, %v4081_v2 }
  0xfc   : > { %v1266_v34 = vmul.f32 %v4455_v1, %v4084_v23  ;;  %v1269_v35 = vmul.f32 %v4455_v1, %v4093_v21  ;;  %v1270_v6 = vmul.f32 %v4455_v1, %v4096_v20  ;;  %v1330_v51 = vmul.f32 %v4472_v33, %v4075_v12 }
  0xfd   : > { %v1293_v17 = vadd.f32 %v1261_v15, %v1224_v59  ;;  %v1294_v40 = vadd.f32 %v1262_v29, %v1225_v50  ;;  %v1297_v2 = vadd.f32 %v1265_v63, %v1228_v58  ;;  %v1331_v23 = vmul.f32 %v4472_v33, %v4078_v56 }
  0xfe   : > { %v1298_v4 = vadd.f32 %v1266_v34, %v1229_v49  ;;  %v1301_v48 = vadd.f32 %v1269_v35, %v1232_v60  ;;  %v1302_v26 = vadd.f32 %v1270_v6, %v1233_v31  ;;  %v1334_v25 = vmul.f32 %v4472_v33, %v4087_v61 }
  0xff   : > { %v1335_v45 = vmul.f32 %v4472_v33, %v4090_v16  ;;  %v1338_v54 = vmul.f32 %v4472_v33, %v4435_v42  ;;  %v1339_v12 = vmul.f32 %v4472_v33, %v4437_v39  ;;  %v1361_v3 = vadd.f32 %v1330_v51, %v1293_v17 }
 0x100   : > { %v1362_v32 = vadd.f32 %v1331_v23, %v1294_v40  ;;  %v1365_v46 = vadd.f32 %v1334_v25, %v1297_v2  ;;  %v1187_v56 = vmul.f32 %v4283_v24, %v5393_v22  ;;  %v1188_v11 = vmul.f32 %v4283_v24, %v5394_v30 }
 0x101   : > { %v1366_v19 = vadd.f32 %v1335_v45, %v1298_v4  ;;  %v1369_v61 = vadd.f32 %v1338_v54, %v1301_v48  ;;  %v1370_v13 = vadd.f32 %v1339_v12, %v1302_v26  ;;  %v1433_v8 = vrot.slane %v1361_v3, 6 }
 0x102   : > { %v1434_v16 = vrot.slane %v1362_v32, 6  ;;  %v1439_v53 = vrot.slane %v1365_v46, 6  ;;  %v4491_v59 = vadd.f32 %v4442_v62, %v1187_v56  ;;  %v4494_v50 = vadd.f32 %v4442_v62, %v1188_v11  ;;  %v4526_v56 = vld [vmem:[%s5225_s5 + $0x2] ss:$0 sm:$0xff] }
 0x103   : > { %v1440_v58 = vrot.slane %v1366_v19, 6  ;;  %v1445_v49 = vrot.slane %v1369_v61, 6  ;;  %v1446_v60 = vrot.slane %v1370_v13, 6  ;;  %v1515_v22 = vsel %vm1411_vm3, 0.0, %v1433_v8 }
 0x104   : > { %v1435_v31 = vsel %vm1411_vm3, %v1433_v8, %v1434_v16  ;;  %v1517_v30 = vsel %vm1411_vm3, 0.0, %v1439_v53  ;;  %v1567_v15 = vmul.f32 %v4367_v5, %v1515_v22  ;;  %v1643_v29 = vmul.f32 %v4376_v57, %v1515_v22 }
 0x105   : > { %v1441_v63 = vsel %vm1411_vm3, %v1439_v53, %v1440_v58  ;;  %v1447_v34 = vsel %vm1411_vm3, %v1445_v49, %v1446_v60  ;;  %v1519_v35 = vsel %vm1411_vm3, 0.0, %v1445_v49  ;;  %v1571_v6 = vmul.f32 %v4367_v5, %v1517_v30 }
 0x106   : > { %v1575_v51 = vmul.f32 %v4367_v5, %v1519_v35  ;;  %v1599_v17 = vadd.f32 %v4390_v27, %v1567_v15  ;;  %v4508_v40 = vmul.f32 %v4376_v57, %v1435_v31  ;;  %v1649_v2 = vmul.f32 %v4376_v57, %v1517_v30 }
 0x107   : > { %v1603_v23 = vadd.f32 %v4390_v27, %v1571_v6  ;;  %v4513_v4 = vmul.f32 %v4376_v57, %v1441_v63  ;;  %v1655_v48 = vmul.f32 %v4376_v57, %v1519_v35  ;;  %v4517_v26 = vmul.f32 %v4376_v57, %v1447_v34 }
 0x108   : > { %v1607_v25 = vadd.f32 %v4390_v27, %v1575_v51  ;;  %v1753_v45 = vrot.slane %v1643_v29, 2  ;;  %v1754_v54 = vrot.slane %v4508_v40, 2  ;;  %v1763_v12 = vrot.slane %v1649_v2, 2 }
 0x109   : > { %v1764_v3 = vrot.slane %v4513_v4, 2  ;;  %v1773_v32 = vrot.slane %v1655_v48, 2  ;;  %v1774_v46 = vrot.slane %v4517_v26, 2  ;;  %v1888_v11 = vmul.f32 %v4526_v56, %v1515_v22 }
 0x10a   : > { %v1755_v19 = vsel %vm1022_vm2, %v1753_v45, %v1754_v54  ;;  %v1889_v61 = vmul.f32 %v4526_v56, %v1435_v31  ;;  %v1894_v13 = vmul.f32 %v4526_v56, %v1517_v30  ;;  %v1895_v8 = vmul.f32 %v4526_v56, %v1441_v63 }
 0x10b   : > { %v1765_v53 = vsel %vm1022_vm2, %v1763_v12, %v1764_v3  ;;  %v1775_v49 = vsel %vm1022_vm2, %v1773_v32, %v1774_v46  ;;  %v1844_v15 = vadd.f32 %v1755_v19, %v1599_v17  ;;  %v1900_v29 = vmul.f32 %v4526_v56, %v1519_v35 }
 0x10c   : > { %v1848_v6 = vadd.f32 %v1765_v53, %v1603_v23  ;;  %v1852_v51 = vadd.f32 %v1775_v49, %v1607_v25  ;;  %v1901_v40 = vmul.f32 %v4526_v56, %v1447_v34  ;;  %v1999_v22 = vrot.slane %v1888_v11, 4  ;;  %v4569_v49 = vld [vmem:[%s5227_s7 + $0x2] ss:$0 sm:$0xff] }
 0x10d   : > { %v2000_v2 = vrot.slane %v1889_v61, 4  ;;  %v2009_v4 = vrot.slane %v1894_v13, 4  ;;  %v2010_v48 = vrot.slane %v1895_v8, 4  ;;  %v2019_v26 = vrot.slane %v1900_v29, 4 }
 0x10e   : > { %v2020_v45 = vrot.slane %v1901_v40, 4  ;;  %v1531_v30 = vsel %vm1411_vm3, %v1434_v16, 0.0  ;;  %v1533_v28 = vsel %vm1411_vm3, %v1440_v58, 0.0  ;;  %v1535_v12 = vsel %vm1411_vm3, %v1446_v60, 0.0  ;;  %v4578_v40 = vld [vmem:[%s5228_s8] ss:$0 sm:$0xff] }
 0x10f   : > { %v2001_v17 = vsel %vm1963_vm4, %v1999_v22, %v2000_v2  ;;  %v2011_v35 = vsel %vm1963_vm4, %v2009_v4, %v2010_v48  ;;  %v1568_v23 = vmul.f32 %v4367_v5, %v1435_v31  ;;  %v1572_v25 = vmul.f32 %v4367_v5, %v1441_v63  ;;  %v4560_v63 = vld [vmem:[%s5227_s7 + $0x1] ss:$0 sm:$0xff] }
 0x110   : > { %v2021_v32 = vsel %vm1963_vm4, %v2019_v26, %v2020_v45  ;;  %v4545_v11 = vadd.f32 %v2001_v17, %v1844_v15  ;;  %v4547_v19 = vadd.f32 %v2011_v35, %v1848_v6  ;;  %v1576_v16 = vmul.f32 %v4367_v5, %v1447_v34 }
 0x111   : > { %v4550_v61 = vadd.f32 %v2021_v32, %v1852_v51  ;;  %v1600_v58 = vadd.f32 %v4390_v27, %v1568_v23  ;;  %v1604_v60 = vadd.f32 %v4390_v27, %v1572_v25  ;;  %v1645_v13 = vmul.f32 %v4376_v57, %v1531_v30 }
 0x112   : > { %5397 = vst [vmem:[#allocation42_spill] sm:$0xff] %v4545_v11  ;;  %5398 = vst [vmem:[#allocation39_spill] sm:$0xff] %v4547_v19  ;;  %v2136_v31 = vmul.f32 %v4205_v38, %v4545_v11  ;;  %v2202_v8 = vmul.f32 %v4560_v63, %v4547_v19  ;;  %v1608_v34 = vadd.f32 %v4390_v27, %v1576_v16 }
 0x113   : > { %5399 = vst [vmem:[#allocation36_spill] sm:$0xff] %v4550_v61  ;;  %v1651_v53 = vmul.f32 %v4376_v57, %v1533_v28  ;;  %v2271_v15 = vmul.f32 %v4569_v49, %v4550_v61  ;;  %v1657_v29 = vmul.f32 %v4376_v57, %v1535_v12  ;;  %v1756_v6 = vrot.slane %v1645_v13, 2 }
 0x114   : > { %v1890_v51 = vmul.f32 %v4526_v56, %v1531_v30  ;;  %v2165_v22 = vadd.f32 %v4578_v40, %v2136_v31  ;;  %v1896_v26 = vmul.f32 %v4526_v56, %v1533_v28  ;;  %v1902_v17 = vmul.f32 %v4526_v56, %v1535_v12 }
 0x115   : > { %v1766_v4 = vrot.slane %v1651_v53, 2  ;;  %v1757_v35 = vsel %vm1022_vm2, %v1754_v54, %v1756_v6  ;;  %v1776_v23 = vrot.slane %v1657_v29, 2  ;;  %v1255_v32 = vmul.f32 %v4455_v1, %v4300_v7 }
 0x116   : > { %v2002_v25 = vrot.slane %v1890_v51, 4  ;;  %v2234_v30 = vadd.f32 %v2202_v8, %v2165_v22  ;;  %v1845_v13 = vadd.f32 %v1757_v35, %v1600_v58  ;;  %v2012_v11 = vrot.slane %v1896_v26, 4  ;;  %v432_v51 = vld [vmem:[%s3301_s27 + $0xd8] sm:$0xff] }
 0x117   : > { %v1767_v16 = vsel %vm1022_vm2, %v1764_v3, %v1766_v4  ;;  %v1777_v61 = vsel %vm1022_vm2, %v1774_v46, %v1776_v23  ;;  %v2022_v53 = vrot.slane %v1902_v17, 4  ;;  %v1256_v3 = vmul.f32 %v4455_v1, %v4302_v37  ;;  %v5403_v17 = vld [vmem:[#allocation32_spill] sm:$0xff] }
 0x118   : > { %v1849_v31 = vadd.f32 %v1767_v16, %v1604_v60  ;;  %v2003_v28 = vsel %vm1963_vm4, %v2000_v2, %v2002_v25  ;;  %v2300_v12 = vadd.f32 %v2271_v15, %v2234_v30  ;;  %v1853_v19 = vadd.f32 %v1777_v61, %v1608_v34  ;;  %v5401_v34 = vld [vmem:[#allocation31_spill] sm:$0xff] }
 0x119   : > { %v2013_v54 = vsel %vm1963_vm4, %v2010_v48, %v2012_v11  ;;  %v4590_v29 = vadd.f32 %v2003_v28, %v1845_v13  ;;  %v2023_v8 = vsel %vm1963_vm4, %v2020_v45, %v2022_v53  ;;  %v1287_v46 = vadd.f32 %v1255_v32, %v4491_v59  ;;  %v431_v45 = vld [vmem:[%s3301_s27 + $0xd0] sm:$0xff] }
 0x11a   : > { %v4593_v6 = vadd.f32 %v2013_v54, %v1849_v31  ;;  %2853 = vmatprep.mubr.f32.mxu1 %v2300_v12  ;;  %v4598_v58 = vadd.f32 %v2023_v8, %v1853_v19  ;;  %v1324_v48 = vmul.f32 %v4472_v33, %v4055_v10  ;;  %v1325_v11 = vmul.f32 %v4472_v33, %v4058_v9  ;;  %v5402_v19 = vld [vmem:[#allocation30_spill] sm:$0xff] }
 0x11b   : > { %v2137_v2 = vmul.f32 %v4205_v38, %v4590_v29  ;;  %v1288_v60 = vadd.f32 %v1256_v3, %v4494_v50  ;;  %v2151_v59 = vadd.f32 %v4578_v40, %v5401_v34  ;;  %v2188_v15 = vmul.f32 %v4560_v63, %v5402_v19  ;;  %v5404_v50 = vld [vmem:[#allocation33_spill] sm:$0xff] }
 0x11c   : > { %5400 = vst [vmem:[#allocation10_spill] sm:$0xff] %v4593_v6  ;;  %v2203_v61 = vmul.f32 %v4560_v63, %v4593_v6  ;;  %v2272_v4 = vmul.f32 %v4569_v49, %v4598_v58  ;;  %v1355_v26 = vadd.f32 %v1324_v48, %v1287_v46  ;;  %v2123_v35 = vmul.f32 %v4205_v38, %v5403_v17 }
 0x11d   : > { %v2166_v22 = vadd.f32 %v4578_v40, %v2137_v2  ;;  %v1356_v23 = vadd.f32 %v1325_v11, %v1288_v60  ;;  %v4620_v25 = vadd.f32 %v2188_v15, %v2151_v59  ;;  %v2189_v32 = vmul.f32 %v4560_v63, %v5404_v50 }
 0x11e   : > { %v509_v30 = vrot.slane %v431_v45, 7  ;;  %v1424_v13 = vrot.slane %v1355_v26, 6  ;;  %v2152_v31 = vadd.f32 %v4578_v40, %v2123_v35  ;;  %v510_v28 = vrot.slane %v432_v51, 7 }
 0x11f   : > { %v2235_v16 = vadd.f32 %v2203_v61, %v2166_v22  ;;  %v1425_v53 = vrot.slane %v1356_v23, 6  ;;  %v1203_v54 = vmul.f32 %v4283_v24, %v4093_v21  ;;  %v1204_v8 = vmul.f32 %v4283_v24, %v4096_v20 }
 0x120   : > { %v579_v12 = vsel %vm469_vm0, 0.0, %v509_v30  ;;  %v1512_v46 = vsel %vm1411_vm3, 0.0, %v1424_v13  ;;  %v2221_v2 = vadd.f32 %v2189_v32, %v2152_v31  ;;  %v511_v48 = vsel %vm469_vm0, %v509_v30, %v510_v28 }
 0x121   : > { %v2301_v3 = vadd.f32 %v2272_v4, %v2235_v16  ;;  %v1426_v11 = vsel %vm1411_vm3, %v1424_v13, %v1425_v53  ;;  %v1561_v45 = vmul.f32 %v4367_v5, %v1512_v46  ;;  %v1634_v61 = vmul.f32 %v4376_v57, %v1512_v46 }
 0x122   : > { %v1879_v60 = vmul.f32 %v4526_v56, %v1512_v46  ;;  %v1635_v21 = vmul.f32 %v4376_v57, %v1426_v11  ;;  %v1880_v34 = vmul.f32 %v4526_v56, %v1426_v11  ;;  %v1528_v20 = vsel %vm1411_vm3, %v1425_v53, 0.0 }
 0x123   : > { %2854 = vmatmul.mubr.f32.gmra.mrb[2].mxu1 %v2301_v3  ;;  %v1562_v59 = vmul.f32 %v4367_v5, %v1426_v11  ;;  %v1593_v15 = vadd.f32 %v4390_v27, %v1561_v45  ;;  %v1738_v51 = vrot.slane %v1634_v61, 2  ;;  %v1636_v4 = vmul.f32 %v4376_v57, %v1528_v20 }
 0x124   : > { %v1984_v22 = vrot.slane %v1879_v60, 4  ;;  %v1739_v26 = vrot.slane %v1635_v21, 2  ;;  %v1985_v17 = vrot.slane %v1880_v34, 4  ;;  %v1881_v23 = vmul.f32 %v4526_v56, %v1528_v20 }
 0x125   : > { %v1594_v35 = vadd.f32 %v4390_v27, %v1562_v59  ;;  %v1741_v32 = vrot.slane %v1636_v4, 2  ;;  %v595_v30 = vsel %vm469_vm0, %v510_v28, 0.0  ;;  %v637_v16 = vmul.f32 %v4235_v18, %v579_v12 }
 0x126   : > { %v638_v13 = vmul.f32 %v4235_v18, %v511_v48  ;;  %v1740_v31 = vsel %vm1022_vm2, %v1738_v51, %v1739_v26  ;;  %v1986_v53 = vsel %vm1963_vm4, %v1984_v22, %v1985_v17  ;;  %v1987_v3 = vrot.slane %v1881_v23, 4 }
 0x127   : > { %v719_v46 = vmul.f32 %v4246_v14, %v579_v12  ;;  %v1838_v11 = vadd.f32 %v1740_v31, %v1593_v15  ;;  %v1742_v45 = vsel %vm1022_vm2, %v1739_v26, %v1741_v32  ;;  %v669_v61 = vadd.f32 %v4258_v41, %v637_v16 }
 0x128   : > { %v670_v60 = vadd.f32 %v4258_v41, %v638_v13  ;;  %v1839_v21 = vadd.f32 %v1742_v45, %v1594_v35  ;;  %v1988_v28 = vsel %vm1963_vm4, %v1985_v17, %v1987_v3  ;;  %v720_v34 = vmul.f32 %v4246_v14, %v511_v48 }
 0x129   : > { %v721_v20 = vmul.f32 %v4246_v14, %v595_v30  ;;  %v4656_v59 = vadd.f32 %v1986_v53, %v1838_v11  ;;  %v842_v51 = vrot.slane %v719_v46, 1  ;;  %v965_v22 = vmul.f32 %v4271_v47, %v579_v12 }
 0x12a   : > { %v966_v15 = vmul.f32 %v4271_v47, %v511_v48  ;;  %v4660_v4 = vadd.f32 %v1988_v28, %v1839_v21  ;;  %v843_v26 = vrot.slane %v720_v34, 1  ;;  %v967_v32 = vmul.f32 %v4271_v47, %v595_v30 }
 0x12b   : > { %v845_v23 = vrot.slane %v721_v20, 1  ;;  %v2257_v17 = vmul.f32 %v4569_v49, %v4656_v59  ;;  %v1088_v35 = vrot.slane %v965_v22, 2  ;;  %v1234_v13 = vadd.f32 %v4442_v62, %v1203_v54 }
 0x12c   : > { %v1089_v16 = vrot.slane %v966_v15, 2  ;;  %v2258_v31 = vmul.f32 %v4569_v49, %v4660_v4  ;;  %v844_v12 = vsel %vm776_vm1, %v842_v51, %v843_v26  ;;  %v1091_v53 = vrot.slane %v967_v32, 2  ;;  %v5405_v51 = vld [vmem:[#allocation38_spill] sm:$0xff] }
 0x12d   : > { %v846_v48 = vsel %vm776_vm1, %v843_v26, %v845_v23  ;;  %v2286_v3 = vadd.f32 %v2257_v17, %v4620_v25  ;;  %v915_v46 = vadd.f32 %v844_v12, %v669_v61  ;;  %v1235_v28 = vadd.f32 %v4442_v62, %v1204_v8 }
 0x12e   : > { %v916_v11 = vadd.f32 %v846_v48, %v670_v60  ;;  %v1090_v30 = vsel %vm1022_vm2, %v1088_v35, %v1089_v16  ;;  %v2287_v45 = vadd.f32 %v2258_v31, %v2221_v2  ;;  %v1092_v21 = vsel %vm1022_vm2, %v1089_v16, %v1091_v53 }
 0x12f   : > { %v1271_v54 = vmul.f32 %v4455_v1, %v4435_v42  ;;  %2832 = vmatprep.mubr.f32.mxu0 %v2286_v3  ;;  %v4676_v34 = vadd.f32 %v1090_v30, %v915_v46  ;;  %v1272_v25 = vmul.f32 %v4455_v1, %v4437_v39  ;;  %v2138_v61 = vmul.f32 %v4205_v38, %v4196_v52 }
 0x130   : > { %v4678_v20 = vadd.f32 %v1092_v21, %v916_v11  ;;  %2833 = vmatmul.mubr.f32.gmra.mrb[4].mxu0 %v2287_v45  ;;  %v2204_v60 = vmul.f32 %v4560_v63, %v4200_v0  ;;  %v2139_v8 = vmul.f32 %v4205_v38, %v4239_v43  ;;  %v2205_v22 = vmul.f32 %v4560_v63, %v5405_v51  ;;  %v5407_v21 = vld [vmem:[#allocation37_spill] sm:$0xff] }
 0x131   : > { %v1303_v2 = vadd.f32 %v1271_v54, %v1234_v13  ;;  %v1304_v15 = vadd.f32 %v1272_v25, %v1235_v28  ;;  %v1340_v26 = vmul.f32 %v4472_v33, %v4676_v34  ;;  %v2167_v32 = vadd.f32 %v4578_v40, %v2138_v61 }
 0x132   : > { %v1341_v23 = vmul.f32 %v4472_v33, %v4678_v20  ;;  %v2168_v17 = vadd.f32 %v4578_v40, %v2139_v8  ;;  %v1189_v35 = vmul.f32 %v4283_v24, %v4300_v7  ;;  %v1190_v16 = vmul.f32 %v4283_v24, %v4302_v37  ;;  %v5406_v7 = vld [vmem:[#allocation40_spill] sm:$0xff] }
 0x133   : > { %v1257_v13 = vmul.f32 %v4455_v1, %v4055_v10  ;;  %v1371_v31 = vadd.f32 %v1340_v26, %v1303_v2  ;;  %v4702_v48 = vadd.f32 %v2204_v60, %v2167_v32  ;;  %v1258_v53 = vmul.f32 %v4455_v1, %v4058_v9 }
 0x134   : > { %v1372_v12 = vadd.f32 %v1341_v23, %v1304_v15  ;;  %v4706_v3 = vadd.f32 %v2205_v22, %v2168_v17  ;;  %v1220_v46 = vadd.f32 %v4442_v62, %v1189_v35  ;;  %v1221_v11 = vadd.f32 %v4442_v62, %v1190_v16 }
 0x135   : > { %v1326_v30 = vmul.f32 %v4472_v33, %v5406_v7  ;;  %v1448_v37 = vrot.slane %v1371_v31, 6  ;;  %v1327_v10 = vmul.f32 %v4472_v33, %v5407_v21  ;;  %v2124_v28 = vmul.f32 %v4205_v38, %v4370_v36 }
 0x136   : > { %v1449_v45 = vrot.slane %v1372_v12, 6  ;;  %v1289_v54 = vadd.f32 %v1257_v13, %v1220_v46  ;;  %v1290_v25 = vadd.f32 %v1258_v53, %v1221_v11  ;;  %v2190_v9 = vmul.f32 %v4560_v63, %v4380_v55 }
 0x137   : > { %v2125_v61 = vmul.f32 %v4205_v38, %v4408_v44  ;;  %v1520_v60 = vsel %vm1411_vm3, 0.0, %v1448_v37  ;;  %v2153_v22 = vadd.f32 %v4578_v40, %v2124_v28  ;;  %v4738_v28 = vld [vmem:[%s3301_s27 + $0xe0] sm:$0xff] }
 0x138   : > { %v1450_v2 = vsel %vm1411_vm3, %v1448_v37, %v1449_v45  ;;  %v1536_v8 = vsel %vm1411_vm3, %v1449_v45, 0.0  ;;  %v1577_v15 = vmul.f32 %v4367_v5, %v1520_v60  ;;  %v1658_v36 = vmul.f32 %v4376_v57, %v1520_v60  ;;  %5408 = vst [vmem:[#allocation14_spill] sm:$0xff] %v4738_v28 }
 0x139   : > { %v1659_v26 = vmul.f32 %v4376_v57, %v1450_v2  ;;  %v1903_v23 = vmul.f32 %v4526_v56, %v1520_v60  ;;  %v1904_v32 = vmul.f32 %v4526_v56, %v1450_v2  ;;  %v1578_v38 = vmul.f32 %v4367_v5, %v1450_v2  ;;  %v4741_v2 = vld [vmem:[%s3301_s27 + $0xe8] sm:$0xff] }
 0x13a   : > { %v1660_v44 = vmul.f32 %v4376_v57, %v1536_v8  ;;  %v1905_v17 = vmul.f32 %v4526_v56, %v1536_v8  ;;  %v1609_v35 = vadd.f32 %v4390_v27, %v1577_v15  ;;  %v1778_v16 = vrot.slane %v1658_v36, 2  ;;  %5409 = vst [vmem:[#allocation13_spill] sm:$0xff] %v4741_v2 }
 0x13b   : > { %v1779_v13 = vrot.slane %v1659_v26, 2  ;;  %v2024_v31 = vrot.slane %v1903_v23, 4  ;;  %v2025_v12 = vrot.slane %v1904_v32, 4  ;;  %v1610_v53 = vadd.f32 %v4390_v27, %v1578_v38 }
 0x13c   : > { %v1781_v46 = vrot.slane %v1660_v44, 2  ;;  %v2027_v11 = vrot.slane %v1905_v17, 4  ;;  %v1357_v37 = vadd.f32 %v1326_v30, %v1289_v54  ;;  %v1358_v45 = vadd.f32 %v1327_v10, %v1290_v25  ;;  %v5410_v10 = vld [vmem:[#allocation35_spill] sm:$0xff] }
 0x13d   : > { %v1780_v7 = vsel %vm1022_vm2, %v1778_v16, %v1779_v13  ;;  %v4735_v21 = vadd.f32 %v2190_v9, %v2153_v22  ;;  %v2026_v8 = vsel %vm1963_vm4, %v2024_v31, %v2025_v12  ;;  %v2154_v38 = vadd.f32 %v4578_v40, %v2125_v61 }
 0x13e   : > { %v1854_v60 = vadd.f32 %v1780_v7, %v1609_v35  ;;  %v1782_v15 = vsel %vm1022_vm2, %v1779_v13, %v1781_v46  ;;  %v2028_v36 = vsel %vm1963_vm4, %v2025_v12, %v2027_v11  ;;  %v1427_v23 = vrot.slane %v1357_v37, 6 }
 0x13f   : > { %v1855_v26 = vadd.f32 %v1782_v15, %v1610_v53  ;;  %v1428_v32 = vrot.slane %v1358_v45, 6  ;;  %v2191_v54 = vmul.f32 %v4560_v63, %v5410_v10  ;;  %v512_v25 = vrot.slane %v4738_v28, 7 }
 0x140   : > { %v4747_v30 = vadd.f32 %v2026_v8, %v1854_v60  ;;  %v513_v9 = vrot.slane %v4741_v2, 7  ;;  %v1513_v17 = vsel %vm1411_vm3, 0.0, %v1427_v23 }
 0x141   : > { %v4753_v22 = vadd.f32 %v2028_v36, %v1855_v26  ;;  %v1429_v44 = vsel %vm1411_vm3, %v1427_v23, %v1428_v32  ;;  %v1529_v35 = vsel %vm1411_vm3, %v1428_v32, 0.0  ;;  %v1563_v16 = vmul.f32 %v4367_v5, %v1513_v17 }
 0x142   : > { %v2273_v61 = vmul.f32 %v4569_v49, %v4747_v30  ;;  %v1637_v13 = vmul.f32 %v4376_v57, %v1513_v17  ;;  %v1638_v31 = vmul.f32 %v4376_v57, %v1429_v44  ;;  %v1882_v53 = vmul.f32 %v4526_v56, %v1513_v17 }
 0x143   : > { %v2274_v12 = vmul.f32 %v4569_v49, %v4753_v22  ;;  %v1883_v46 = vmul.f32 %v4526_v56, %v1429_v44  ;;  %v1564_v11 = vmul.f32 %v4367_v5, %v1429_v44  ;;  %v1595_v37 = vadd.f32 %v4390_v27, %v1563_v16 }
 0x144   : > { %v2302_v7 = vadd.f32 %v2273_v61, %v4702_v48  ;;  %v1743_v45 = vrot.slane %v1637_v13, 2  ;;  %v1744_v60 = vrot.slane %v1638_v31, 2  ;;  %v1989_v15 = vrot.slane %v1882_v53, 4 }
 0x145   : > { %v2303_v8 = vadd.f32 %v2274_v12, %v4706_v3  ;;  %v1990_v36 = vrot.slane %v1883_v46, 4  ;;  %v1596_v26 = vadd.f32 %v4390_v27, %v1564_v11  ;;  %v1639_v32 = vmul.f32 %v4376_v57, %v1529_v35 }
 0x146   : > { %2856 = vmatprep.mubr.f32.mxu1 %v2302_v7  ;;  %v1745_v23 = vsel %vm1022_vm2, %v1743_v45, %v1744_v60  ;;  %v1884_v17 = vmul.f32 %v4526_v56, %v1529_v35  ;;  %v2223_v44 = vadd.f32 %v2191_v54, %v2154_v38  ;;  %v514_v16 = vsel %vm469_vm0, %v512_v25, %v513_v9 }
 0x147   : > { %2857 = vmatmul.mubr.f32.gmra.mrb[4].mxu1 %v2303_v8  ;;  %v1840_v48 = vadd.f32 %v1745_v23, %v1595_v37  ;;  %v1991_v61 = vsel %vm1963_vm4, %v1989_v15, %v1990_v36  ;;  %v580_v3 = vsel %vm469_vm0, 0.0, %v512_v25  ;;  %v1746_v13 = vrot.slane %v1639_v32, 2 }
 0x148   : > { %v1992_v31 = vrot.slane %v1884_v17, 4  ;;  %v596_v12 = vsel %vm469_vm0, %v513_v9, 0.0  ;;  %v639_v53 = vmul.f32 %v4235_v18, %v580_v3  ;;  %v640_v11 = vmul.f32 %v4235_v18, %v514_v16 }
 0x149   : > { %v4780_v46 = vadd.f32 %v1991_v61, %v1840_v48  ;;  %v722_v38 = vmul.f32 %v4246_v14, %v580_v3  ;;  %v723_v54 = vmul.f32 %v4246_v14, %v514_v16  ;;  %v1747_v35 = vsel %vm1022_vm2, %v1744_v60, %v1746_v13 }
 0x14a   : > { %v1993_v7 = vsel %vm1963_vm4, %v1990_v36, %v1992_v31  ;;  %v671_v25 = vadd.f32 %v4258_v41, %v639_v53  ;;  %v724_v37 = vmul.f32 %v4246_v14, %v596_v12  ;;  %v1841_v45 = vadd.f32 %v1747_v35, %v1596_v26 }
 0x14b   : > { %v2259_v9 = vmul.f32 %v4569_v49, %v4780_v46  ;;  %v672_v8 = vadd.f32 %v4258_v41, %v640_v11  ;;  %v847_v15 = vrot.slane %v722_v38, 1  ;;  %v848_v18 = vrot.slane %v723_v54, 1 }
 0x14c   : > { %v850_v23 = vrot.slane %v724_v37, 1  ;;  %v968_v32 = vmul.f32 %v4271_v47, %v580_v3  ;;  %v969_v17 = vmul.f32 %v4271_v47, %v514_v16  ;;  %v4795_v36 = vadd.f32 %v1993_v7, %v1841_v45  ;;  %v5412_v45 = vld [vmem:[#allocation36_spill] sm:$0xff] }
 0x14d   : > { %v2288_v60 = vadd.f32 %v2259_v9, %v4735_v21  ;;  %v970_v48 = vmul.f32 %v4271_v47, %v596_v12  ;;  %v1205_v14 = vmul.f32 %v4283_v24, %v4435_v42  ;;  %v849_v26 = vsel %vm776_vm1, %v847_v15, %v848_v18 }
 0x14e   : > { %v851_v41 = vsel %vm776_vm1, %v848_v18, %v850_v23  ;;  %v1093_v61 = vrot.slane %v968_v32, 2  ;;  %v1094_v13 = vrot.slane %v969_v17, 2  ;;  %v2260_v3 = vmul.f32 %v4569_v49, %v4795_v36 }
 0x14f   : > { %2835 = vmatprep.mubr.f32.mxu0 %v2288_v60  ;;  %v917_v16 = vadd.f32 %v849_v26, %v671_v25  ;;  %v918_v31 = vadd.f32 %v851_v41, %v672_v8  ;;  %v1096_v21 = vrot.slane %v970_v48, 2  ;;  %v1206_v47 = vmul.f32 %v4283_v24, %v4437_v39  ;;  %v4821_v24 = vld [vmem:[%s5227_s7] ss:$0 sm:$0xff]  ;;  %v5411_v39 = vld [vmem:[#allocation39_spill] sm:$0xff] }
 0x150   : > { %v1095_v53 = vsel %vm1022_vm2, %v1093_v61, %v1094_v13  ;;  %v1236_v42 = vadd.f32 %v4442_v62, %v1205_v14  ;;  %v1273_v12 = vmul.f32 %v4455_v1, %v4676_v34  ;;  %v2289_v11 = vadd.f32 %v2260_v3, %v2223_v44  ;;  %v5413_v41 = vld [vmem:[#allocation34_spill] sm:$0xff] }
 0x151   : > { %v1097_v38 = vsel %vm1022_vm2, %v1094_v13, %v1096_v21  ;;  %v4811_v54 = vadd.f32 %v1095_v53, %v917_v16  ;;  %v1274_v35 = vmul.f32 %v4455_v1, %v4678_v20  ;;  %v1237_v25 = vadd.f32 %v4442_v62, %v1206_v47  ;;  %v4844_v13 = vld [vmem:[%s3301_s27 + $0xf0] sm:$0xff] }
 0x152   : > { %v4815_v7 = vadd.f32 %v1097_v38, %v918_v31  ;;  %v1305_v37 = vadd.f32 %v1273_v12, %v1236_v42  ;;  %v2140_v44 = vmul.f32 %v4821_v24, %v5411_v39  ;;  %2836 = vmatmul.mubr.f32.gmra.mrb[6].mxu0 %v2289_v11  ;;  %v2206_v8 = vmul.f32 %v4560_v63, %v5412_v45  ;;  %v5416_v12 = vld [vmem:[#allocation41_spill] sm:$0xff] }
 0x153   : > { %v1342_v9 = vmul.f32 %v4472_v33, %v4811_v54  ;;  %v2141_v15 = vmul.f32 %v4821_v24, %v4593_v6  ;;  %v2207_v18 = vmul.f32 %v4560_v63, %v4598_v58  ;;  %v1306_v23 = vadd.f32 %v1274_v35, %v1237_v25  ;;  %5414 = vst [vmem:[#allocation19_spill] sm:$0xff] %v4844_v13 }
 0x154   : > { %v1343_v32 = vmul.f32 %v4472_v33, %v4815_v7  ;;  %v2169_v17 = vadd.f32 %v4578_v40, %v2140_v44  ;;  %v2126_v60 = vmul.f32 %v4821_v24, %v5402_v19  ;;  %v2192_v26 = vmul.f32 %v4560_v63, %v4656_v59  ;;  %v4852_v19 = vld [vmem:[%s3301_s27 + $0xf8] sm:$0xff] }
 0x155   : > { %v1373_v48 = vadd.f32 %v1342_v9, %v1305_v37  ;;  %v2170_v14 = vadd.f32 %v4578_v40, %v2141_v15  ;;  %v2261_v61 = vmul.f32 %v4569_v49, %v5413_v41  ;;  %v2127_v21 = vmul.f32 %v4821_v24, %v5404_v50  ;;  %5415 = vst [vmem:[#allocation24_spill] sm:$0xff] %v4852_v19  ;;  %v4867_v9 = vld [vmem:[%s5223_s3] ss:$0 sm:$0xff] }
 0x156   : > { %v1374_v3 = vadd.f32 %v1343_v32, %v1306_v23  ;;  %v4846_v16 = vadd.f32 %v2206_v8, %v2169_v17  ;;  %v2155_v31 = vadd.f32 %v4578_v40, %v2126_v60  ;;  %v2193_v42 = vmul.f32 %v4560_v63, %v4660_v4 }
 0x157   : > { %v1451_v53 = vrot.slane %v1373_v48, 6  ;;  %v4854_v47 = vadd.f32 %v2207_v18, %v2170_v14  ;;  %v2262_v11 = vmul.f32 %v4569_v49, %v5416_v12  ;;  %v2156_v25 = vadd.f32 %v4578_v40, %v2127_v21 }
 0x158   : > { %v1452_v38 = vrot.slane %v1374_v3, 6  ;;  %v2224_v35 = vadd.f32 %v2192_v26, %v2155_v31  ;;  %v515_v37 = vrot.slane %v4844_v13, 7  ;;  %v516_v50 = vrot.slane %v4852_v19, 7 }
 0x159   : > { %v1521_v44 = vsel %vm1411_vm3, 0.0, %v1451_v53  ;;  %v1207_v8 = vmul.f32 %v4867_v9, %v4676_v34  ;;  %v4873_v15 = vmul.f32 %v4867_v9, %v4678_v20  ;;  %v2225_v6 = vadd.f32 %v2193_v42, %v2156_v25 }
 0x15a   : > { %v1453_v18 = vsel %vm1411_vm3, %v1451_v53, %v1452_v38  ;;  %v1579_v23 = vmul.f32 %v4367_v5, %v1521_v44  ;;  %v1661_v32 = vmul.f32 %v4376_v57, %v1521_v44  ;;  %v1906_v17 = vmul.f32 %v4526_v56, %v1521_v44 }
 0x15b   : > { %v1662_v60 = vmul.f32 %v4376_v57, %v1453_v18  ;;  %v1907_v48 = vmul.f32 %v4526_v56, %v1453_v18  ;;  %v1537_v14 = vsel %vm1411_vm3, %v1452_v38, 0.0  ;;  %v1580_v34 = vmul.f32 %v4367_v5, %v1453_v18  ;;  %v4887_v19 = vpop.f32.mrb[0].mxu0 }
 0x15c   : > { %v1611_v26 = vadd.f32 %v4390_v27, %v1579_v23  ;;  %v1783_v20 = vrot.slane %v1661_v32, 2  ;;  %v2029_v3 = vrot.slane %v1906_v17, 4  ;;  %v1663_v31 = vmul.f32 %v4376_v57, %v1537_v14  ;;  %v4890_v5 = vpop.f32.mrb[1].mxu0 }
 0x15d   : > { %v1784_v21 = vrot.slane %v1662_v60, 2  ;;  %v2030_v53 = vrot.slane %v1907_v48, 4  ;;  %v1612_v13 = vadd.f32 %v4390_v27, %v1580_v34  ;;  %v1908_v44 = vmul.f32 %v4526_v56, %v1537_v14 }
 0x15e   : > { %v1786_v28 = vrot.slane %v1663_v31, 2  ;;  %v2290_v2 = vadd.f32 %v2261_v61, %v2224_v35  ;;  %v517_v38 = vsel %vm469_vm0, %v515_v37, %v516_v50  ;;  %v581_v32 = vsel %vm469_vm0, 0.0, %v515_v37  ;;  %v2990_v35 = vld [vmem:[%s5221_s1] ss:$0 sm:$0xff] }
 0x15f   : > { %v1785_v18 = vsel %vm1022_vm2, %v1783_v20, %v1784_v21  ;;  %v2031_v23 = vsel %vm1963_vm4, %v2029_v3, %v2030_v53  ;;  %v2032_v57 = vrot.slane %v1908_v44, 4  ;;  %v2291_v60 = vadd.f32 %v2262_v11, %v2225_v6  ;;  %v2993_v20 = vld [vmem:[%s5221_s1 + $0x2] ss:$0 sm:$0xff] }
 0x160   : > { %v1856_v17 = vadd.f32 %v1785_v18, %v1611_v26  ;;  %v1787_v27 = vsel %vm1022_vm2, %v1784_v21, %v1786_v28  ;;  %2838 = vmatprep.mubr.f32.mxu0 %v2290_v2  ;;  %v597_v48 = vsel %vm469_vm0, %v516_v50, 0.0  ;;  %v641_v25 = vmul.f32 %v2990_v35, %v581_v32  ;;  %v2991_v28 = vld [vmem:[%s5221_s1 + $0x1] ss:$0 sm:$0xff] }
 0x161   : > { %v1857_v61 = vadd.f32 %v1787_v27, %v1612_v13  ;;  %v2033_v42 = vsel %vm1963_vm4, %v2030_v53, %v2032_v57  ;;  %v642_v14 = vmul.f32 %v2990_v35, %v517_v38  ;;  %2839 = vmatmul.mubr.f32.gmra.mrb[8].mxu0 %v2291_v60  ;;  %v725_v2 = vmul.f32 %v2991_v28, %v581_v32  ;;  %v2992_v13 = vld [vmem:[%s5222_s2] ss:$0 sm:$0xff] }
 0x162   : > { %v4901_v34 = vadd.f32 %v2031_v23, %v1856_v17  ;;  %v726_v6 = vmul.f32 %v2991_v28, %v517_v38  ;;  %v727_v11 = vmul.f32 %v2991_v28, %v597_v48  ;;  %v673_v50 = vadd.f32 %v2992_v13, %v641_v25 }
 0x163   : > { %v4906_v37 = vadd.f32 %v2033_v42, %v1857_v61  ;;  %v674_v26 = vadd.f32 %v2992_v13, %v642_v14  ;;  %v971_v3 = vmul.f32 %v2993_v20, %v581_v32  ;;  %v852_v21 = vrot.slane %v725_v2, 1 }
 0x164   : > { %v2275_v31 = vmul.f32 %v4569_v49, %v4901_v34  ;;  %v853_v53 = vrot.slane %v726_v6, 1  ;;  %v855_v44 = vrot.slane %v727_v11, 1  ;;  %v972_v23 = vmul.f32 %v2993_v20, %v517_v38 }
 0x165   : > { %v2276_v18 = vmul.f32 %v4569_v49, %v4906_v37  ;;  %v973_v57 = vmul.f32 %v2993_v20, %v597_v48  ;;  %v1098_v17 = vrot.slane %v971_v3, 2  ;;  %v1238_v32 = vadd.f32 %v4442_v62, %v1207_v8 }
 0x166   : > { %v2304_v27 = vadd.f32 %v2275_v31, %v4846_v16  ;;  %v854_v60 = vsel %vm776_vm1, %v852_v21, %v853_v53  ;;  %v856_v61 = vsel %vm776_vm1, %v853_v53, %v855_v44  ;;  %v1099_v14 = vrot.slane %v972_v23, 2  ;;  %v5417_v53 = vld [vmem:[#allocation42_spill] sm:$0xff] }
 0x167   : > { %v2305_v42 = vadd.f32 %v2276_v18, %v4854_v47  ;;  %v919_v35 = vadd.f32 %v854_v60, %v673_v50  ;;  %v920_v25 = vadd.f32 %v856_v61, %v674_v26  ;;  %v1101_v28 = vrot.slane %v973_v57, 2 }
 0x168   : > { %2859 = vmatprep.mubr.f32.mxu1 %v2304_v27  ;;  %v1239_v38 = vadd.f32 %v4442_v62, %v4873_v15  ;;  %v1275_v48 = vmul.f32 %v4455_v1, %v4811_v54  ;;  %v1276_v16 = vmul.f32 %v4455_v1, %v4815_v7  ;;  %v1100_v2 = vsel %vm1022_vm2, %v1098_v17, %v1099_v14 }
 0x169   : > { %2860 = vmatmul.mubr.f32.gmra.mrb[6].mxu1 %v2305_v42  ;;  %v2142_v47 = vmul.f32 %v4821_v24, %v4200_v0  ;;  %v2208_v8 = vmul.f32 %v4560_v63, %v4747_v30  ;;  %v2143_v6 = vmul.f32 %v4821_v24, %v5405_v51  ;;  %v1102_v15 = vsel %vm1022_vm2, %v1099_v14, %v1101_v28 }
 0x16a   : > { %v1165_v11 = vadd.f32 %v1100_v2, %v919_v35  ;;  %v1307_v13 = vadd.f32 %v1275_v48, %v1238_v32  ;;  %v1308_v50 = vadd.f32 %v1276_v16, %v1239_v38  ;;  %v1166_v26 = vadd.f32 %v1102_v15, %v920_v25 }
 0x16b   : > { %v2171_v20 = vadd.f32 %v4578_v40, %v2142_v47  ;;  %v2172_v3 = vadd.f32 %v4578_v40, %v2143_v6  ;;  %v2209_v31 = vmul.f32 %v4560_v63, %v4753_v22  ;;  %v2128_v21 = vmul.f32 %v4821_v24, %v4380_v55 }
 0x16c   : > { %v1344_v0 = vmul.f32 %v4472_v33, %v1165_v11  ;;  %v2194_v51 = vmul.f32 %v4560_v63, %v4780_v46  ;;  %v2263_v44 = vmul.f32 %v4569_v49, %v5417_v53  ;;  %v1345_v18 = vmul.f32 %v4472_v33, %v1166_v26 }
 0x16d   : > { %v4949_v23 = vadd.f32 %v2208_v8, %v2171_v20  ;;  %v4951_v57 = vadd.f32 %v2209_v31, %v2172_v3  ;;  %v2129_v17 = vmul.f32 %v4821_v24, %v5410_v10  ;;  %v2157_v60 = vadd.f32 %v4578_v40, %v2128_v21  ;;  %v2996_v20 = vld [vmem:[%s5226_s6] ss:$0 sm:$0xff] }
 0x16e   : > { %v1375_v27 = vadd.f32 %v1344_v0, %v1307_v13  ;;  %v2195_v55 = vmul.f32 %v4560_v63, %v4795_v36  ;;  %v2264_v61 = vmul.f32 %v4569_v49, %v4590_v29  ;;  %v1376_v32 = vadd.f32 %v1345_v18, %v1308_v50 }
 0x16f   : > { %v2158_v42 = vadd.f32 %v4578_v40, %v2129_v17  ;;  %v1209_v35 = vmul.f32 %v4867_v9, %v4811_v54  ;;  %v1210_v25 = vmul.f32 %v4867_v9, %v4815_v7  ;;  %v2226_v10 = vadd.f32 %v2194_v51, %v2157_v60 }
 0x170   : > { %v1454_v14 = vrot.slane %v1375_v27, 6  ;;  %v1277_v28 = vmul.f32 %v4455_v1, %v1165_v11  ;;  %v1278_v38 = vmul.f32 %v4455_v1, %v1166_v26  ;;  %v1455_v48 = vrot.slane %v1376_v32, 6  ;;  %v2994_v1 = vld [vmem:[%s5225_s5] ss:$0 sm:$0xff]  ;;  %v2995_v11 = vld [vmem:[%s5225_s5 + $0x1] ss:$0 sm:$0xff] }
 0x171   : > { %v2227_v16 = vadd.f32 %v2195_v55, %v2158_v42  ;;  %v1240_v2 = vadd.f32 %v4442_v62, %v1209_v35  ;;  %v1241_v47 = vadd.f32 %v4442_v62, %v1210_v25  ;;  %v2292_v6 = vadd.f32 %v2263_v44, %v2226_v10 }
 0x172   : > { %v1522_v8 = vsel %vm1411_vm3, 0.0, %v1454_v14  ;;  %v1346_v54 = vmul.f32 0.0, %v4472_v33  ;;  %v2144_v7 = vmul.f32 %v4821_v24, %v5412_v45  ;;  %v1456_v9 = vsel %vm1411_vm3, %v1454_v14, %v1455_v48 }
 0x173   : > { %v1581_v15 = vmul.f32 %v2994_v1, %v1522_v8  ;;  %v1664_v62 = vmul.f32 %v2995_v11, %v1522_v8  ;;  %v1909_v13 = vmul.f32 %v4526_v56, %v1522_v8  ;;  %v1665_v50 = vmul.f32 %v2995_v11, %v1456_v9  ;;  %2841 = vmatprep.mubr.f32.mxu0 %v2292_v6 }
 0x174   : > { %v1910_v33 = vmul.f32 %v4526_v56, %v1456_v9  ;;  %v1538_v26 = vsel %vm1411_vm3, %v1455_v48, 0.0  ;;  %v1582_v45 = vmul.f32 %v2994_v1, %v1456_v9  ;;  %v2293_v60 = vadd.f32 %v2264_v61, %v2227_v16 }
 0x175   : > { %v1613_v3 = vadd.f32 %v2996_v20, %v1581_v15  ;;  %v1788_v31 = vrot.slane %v1664_v62, 2  ;;  %v2034_v0 = vrot.slane %v1909_v13, 4  ;;  %v1666_v21 = vmul.f32 %v2995_v11, %v1538_v26 }
 0x176   : > { %v1789_v51 = vrot.slane %v1665_v50, 2  ;;  %v2035_v44 = vrot.slane %v1910_v33, 4  ;;  %v1614_v18 = vadd.f32 %v2996_v20, %v1582_v45  ;;  %v1911_v17 = vmul.f32 %v4526_v56, %v1538_v26  ;;  %2842 = vmatmul.mubr.f32.gmra.mrb[10].mxu0 %v2293_v60 }
 0x177   : > { %v1791_v27 = vrot.slane %v1666_v21, 2  ;;  %v1309_v55 = vadd.f32 %v1277_v28, %v1240_v2  ;;  %v1310_v32 = vadd.f32 %v1278_v38, %v1241_v47  ;;  %v2173_v14 = vadd.f32 %v4578_v40, %v2144_v7 }
 0x178   : > { %v1790_v42 = vsel %vm1022_vm2, %v1788_v31, %v1789_v51  ;;  %v2036_v35 = vsel %vm1963_vm4, %v2034_v0, %v2035_v44  ;;  %v2037_v25 = vrot.slane %v1911_v17, 4  ;;  %v2210_v61 = vmul.f32 %v4560_v63, %v4901_v34 }
 0x179   : > { %v1858_v10 = vadd.f32 %v1790_v42, %v1613_v3  ;;  %v1792_v48 = vsel %vm1022_vm2, %v1789_v51, %v1791_v27  ;;  %v1377_v8 = vadd.f32 %v1346_v54, %v1309_v55  ;;  %v1378_v6 = vadd.f32 %v1346_v54, %v1310_v32 }
 0x17a   : > { %v1859_v9 = vadd.f32 %v1792_v48, %v1614_v18  ;;  %v2038_v15 = vsel %vm1963_vm4, %v2035_v44, %v2037_v25  ;;  %v2145_v28 = vmul.f32 %v4821_v24, %v4598_v58  ;;  %v2211_v47 = vmul.f32 %v4560_v63, %v4906_v37 }
 0x17b   : > { %v2104_v38 = vadd.f32 %v2036_v35, %v1858_v10  ;;  %v1457_v16 = vrot.slane %v1377_v8, 6  ;;  %v1458_v2 = vrot.slane %v1378_v6, 6  ;;  %v2242_v62 = vadd.f32 %v2210_v61, %v2173_v14 }
 0x17c   : > { %v2105_v7 = vadd.f32 %v2038_v15, %v1859_v9  ;;  %v2174_v13 = vadd.f32 %v4578_v40, %v2145_v28  ;;  %v2130_v54 = vmul.f32 %v4821_v24, %v4656_v59  ;;  %v2196_v8 = vmul.f32 %v4560_v63, %v5413_v41 }
 0x17d   : > { %v2277_v50 = vmul.f32 %v4569_v49, %v2104_v38  ;;  %v1459_v33 = vsel %vm1411_vm3, %v1457_v16, %v1458_v2  ;;  %v1523_v26 = vsel %vm1411_vm3, 0.0, %v1457_v16  ;;  %v1539_v58 = vsel %vm1411_vm3, %v1458_v2, 0.0 }
 0x17e   : > { %v2278_v45 = vmul.f32 %v4569_v49, %v2105_v7  ;;  %v1583_v3 = vmul.f32 %v2994_v1, %v1523_v26  ;;  %v1667_v31 = vmul.f32 %v2995_v11, %v1523_v26  ;;  %v1668_v0 = vmul.f32 %v2995_v11, %v1459_v33 }
 0x17f   : > { %v2306_v21 = vadd.f32 %v2277_v50, %v4949_v23  ;;  %v1912_v51 = vmul.f32 %v4526_v56, %v1523_v26  ;;  %v1913_v44 = vmul.f32 %v4526_v56, %v1459_v33  ;;  %v1584_v59 = vmul.f32 %v2994_v1, %v1459_v33 }
 0x180   : > { %v2307_v18 = vadd.f32 %v2278_v45, %v4951_v57  ;;  %v1615_v17 = vadd.f32 %v2996_v20, %v1583_v3  ;;  %v1793_v27 = vrot.slane %v1667_v31, 2  ;;  %v1794_v60 = vrot.slane %v1668_v0, 2 }
 0x181   : > { %2862 = vmatprep.mubr.f32.mxu1 %v2306_v21  ;;  %v2039_v55 = vrot.slane %v1912_v51, 4  ;;  %v2040_v32 = vrot.slane %v1913_v44, 4  ;;  %v1616_v42 = vadd.f32 %v2996_v20, %v1584_v59  ;;  %v1669_v35 = vmul.f32 %v2995_v11, %v1539_v58  ;;  %v5418_v59 = vld [vmem:[#allocation10_spill] sm:$0xff] }
 0x182   : > { %2863 = vmatmul.mubr.f32.gmra.mrb[8].mxu1 %v2307_v18  ;;  %v1795_v25 = vsel %vm1022_vm2, %v1793_v27, %v1794_v60  ;;  %v1914_v23 = vmul.f32 %v4526_v56, %v1539_v58  ;;  %v2243_v14 = vadd.f32 %v2211_v47, %v2174_v13  ;;  %v2159_v10 = vadd.f32 %v4578_v40, %v2130_v54 }
 0x183   : > { %v1860_v48 = vadd.f32 %v1795_v25, %v1615_v17  ;;  %v2041_v1 = vsel %vm1963_vm4, %v2039_v55, %v2040_v32  ;;  %v1796_v57 = vrot.slane %v1669_v35, 2  ;;  %v2265_v20 = vmul.f32 %v4569_v49, %v4196_v52 }
 0x184   : > { %v2042_v6 = vrot.slane %v1914_v23, 4  ;;  %v2131_v11 = vmul.f32 %v4821_v24, %v4660_v4  ;;  %v2197_v56 = vmul.f32 %v4560_v63, %v5416_v12  ;;  %v2228_v61 = vadd.f32 %v2196_v8, %v2159_v10  ;;  %v2999_v23 = vld [vmem:[%s3301_s27 + $0x8] sm:$0xff]  ;;  %v3000_v10 = vld [vmem:[%s3301_s27] sm:$0xff] }
 0x185   : > { %v2106_v9 = vadd.f32 %v2041_v1, %v1860_v48  ;;  %v1797_v15 = vsel %vm1022_vm2, %v1794_v60, %v1796_v57  ;;  %v2266_v28 = vmul.f32 %v4569_v49, %v4239_v43  ;;  %v2146_v52 = vmul.f32 %v4821_v24, %v4747_v30 }
 0x186   : > { %v1861_v16 = vadd.f32 %v1797_v15, %v1616_v42  ;;  %v2043_v41 = vsel %vm1963_vm4, %v2040_v32, %v2042_v6  ;;  %v2160_v2 = vadd.f32 %v4578_v40, %v2131_v11  ;;  %v2294_v47 = vadd.f32 %v2265_v20, %v2228_v61  ;;  %v3001_v11 = vld [vmem:[%s3301_s27 + $0x88] sm:$0xff] }
 0x187   : > { %v2279_v4 = vmul.f32 %v4569_v49, %v2106_v9  ;;  %v2212_v12 = vmul.f32 %v4560_v63, %v2104_v38  ;;  %v2281_v13 = vmul.f32 0.0, %v4569_v49  ;;  %v2175_v33 = vadd.f32 %v4578_v40, %v2146_v52 }
 0x188   : > { %v2107_v54 = vadd.f32 %v2043_v41, %v1861_v16  ;;  %v2229_v50 = vadd.f32 %v2197_v56, %v2160_v2  ;;  %v2147_v43 = vmul.f32 %v4821_v24, %v4753_v22  ;;  %2844 = vmatprep.mubr.f32.mxu0 %v2294_v47  ;;  %v2213_v58 = vmul.f32 %v4560_v63, %v2105_v7  ;;  %v3003_v2 = vld [vmem:[%s3301_s27 + $0x18] sm:$0xff] }
 0x189   : > { %v2308_v26 = vadd.f32 %v2279_v4, %v2242_v62  ;;  %v2132_v30 = vmul.f32 %v4821_v24, %v4780_v46  ;;  %v2198_v45 = vmul.f32 %v4560_v63, %v5417_v53  ;;  %v2244_v31 = vadd.f32 %v2212_v12, %v2175_v33  ;;  %v5052_v53 = vld [vmem:[%s5230_s10] ss:$0 sm:$0xff]  ;;  %v3004_v4 = vld [vmem:[%s3301_s27 + $0x10] sm:$0xff]  ;;  %v3005_v33 = vld [vmem:[%s3301_s27 + $0x98] sm:$0xff] }
 0x18a   : > { %v2280_v38 = vmul.f32 %v4569_v49, %v2107_v54  ;;  %v2295_v3 = vadd.f32 %v2266_v28, %v2229_v50  ;;  %v2176_v0 = vadd.f32 %v4578_v40, %v2147_v43  ;;  %v2267_v22 = vmul.f32 %v4569_v49, %v5411_v39 }
 0x18b   : > { %2865 = vmatprep.mubr.f32.mxu1 %v2308_v26  ;;  %v2161_v21 = vadd.f32 %v4578_v40, %v2132_v30  ;;  %v2133_v7 = vmul.f32 %v4821_v24, %v4795_v36  ;;  %v2199_v46 = vmul.f32 %v4560_v63, %v4590_v29  ;;  %v2310_v51 = vadd.f32 %v2281_v13, %v2244_v31  ;;  %v2997_v63 = vld [vmem:[%s5227_s7 + $0x1] ss:$0 sm:$0xff]  ;;  %v3006_v26 = vld [vmem:[%s3301_s27 + $0x90] sm:$0xff]  ;;  %v3007_v31 = vld [vmem:[%s3301_s27 + $0x28] sm:$0xff] }
 0x18c   : > { %v2309_v62 = vadd.f32 %v2280_v38, %v2243_v14  ;;  %2845 = vmatmul.mubr.f32.gmra.mrb[12].mxu0 %v2295_v3  ;;  %v2245_v44 = vadd.f32 %v2213_v58, %v2176_v0  ;;  %v2268_v18 = vmul.f32 %v4569_v49, %v5418_v59  ;;  %v2148_v36 = vmul.f32 %v4821_v24, %v4901_v34  ;;  %v2998_v34 = vld [vmem:[%s5228_s8] ss:$0 sm:$0xff] }
 0x18d   : > { %v2230_v17 = vadd.f32 %v2198_v45, %v2161_v21  ;;  %v2162_v39 = vadd.f32 %v4578_v40, %v2133_v7  ;;  %v2214_v29 = vmul.f32 %v2997_v63, %v2106_v9  ;;  %v2149_v60 = vmul.f32 %v4821_v24, %v4906_v37  ;;  %v3002_v9 = vld [vmem:[%s3301_s27 + $0x80] sm:$0xff] }
 0x18e   : > { %2866 = vmatmul.mubr.f32.gmra.mrb[10].mxu1 %v2309_v62  ;;  %v2311_v27 = vadd.f32 %v2281_v13, %v2245_v44  ;;  %v2215_v55 = vmul.f32 %v2997_v63, %v2107_v54  ;;  %v2409_v49 = vadd.f32 %v4887_v19, %v5052_v53  ;;  %v2177_v42 = vadd.f32 %v2998_v34, %v2148_v36  ;;  %v3008_v21 = vld [vmem:[%s3301_s27 + $0x20] sm:$0xff]  ;;  %v3009_v44 = vld [vmem:[%s3301_s27 + $0xa8] sm:$0xff] }
 0x18f   : > { %2868 = vmatprep.mubr.f32.mxu1 %v2310_v51  ;;  %v2296_v40 = vadd.f32 %v2267_v22, %v2230_v17  ;;  %v2231_v32 = vadd.f32 %v2199_v46, %v2162_v39  ;;  %v2404_v35 = vadd.f32 %v5052_v53, %v4890_v5  ;;  %v2178_v25 = vadd.f32 %v2998_v34, %v2149_v60 }
 0x190   : > { %v2563_v14 = vmul.f32 %v2999_v23, %v2409_v49  ;;  %v2246_v37 = vadd.f32 %v2214_v29, %v2177_v42  ;;  %v3014_v23 = vld [vmem:[%s3301_s27 + $0x40] sm:$0xff] }
 0x191   : > { %2847 = vmatprep.mubr.f32.mxu0 %v2296_v40  ;;  %v2297_v24 = vadd.f32 %v2268_v18, %v2231_v32  ;;  %v2562_v19 = vmul.f32 %v3000_v10, %v2404_v35  ;;  %v2247_v48 = vadd.f32 %v2215_v55, %v2178_v25  ;;  %v3010_v18 = vld [vmem:[%s3301_s27 + $0xa0] sm:$0xff]  ;;  %v3012_v55 = vld [vmem:[%s3301_s27 + $0x30] sm:$0xff]  ;;  %v3013_v35 = vld [vmem:[%s3301_s27 + $0x48] sm:$0xff] }
 0x192   : > { %2869 = vmatmul.mubr.f32.gmra.mrb[12].mxu1 %v2311_v27  ;;  %2595 = vst [vmem:[%s5075_s19 + $0x8] sm:$0xff] %v2563_v14  ;;  %v2312_v5 = vadd.f32 %v2281_v13, %v2246_v37  ;;  %v3011_v27 = vld [vmem:[%s3301_s27 + $0x38] sm:$0xff] }
 0x193   : > { %2848 = vmatmul.mubr.f32.gmra.mrb[14].mxu0 %v2297_v24  ;;  %2594 = vst [vmem:[%s5075_s19] sm:$0xff] %v2562_v19  ;;  %v2313_v1 = vadd.f32 %v2281_v13, %v2247_v48  ;;  %v3015_v48 = vld [vmem:[%s3301_s27 + $0xb8] sm:$0xff] }
 0x194   : > { %2871 = vmatprep.mubr.f32.mxu1 %v2312_v5 }
 0x196   : > { %2872 = vmatmul.mubr.f32.gmra.mrb[14].mxu1 %v2313_v1  ;;  %v3016_v1 = vld [vmem:[%s3301_s27 + $0xb0] sm:$0xff] }
 0x1af   : > { %v2852_v57 = vpop.f32.mrb[0].mxu1 }
 0x1b0   : > { %v2489_v8 = vadd.f32 %v2852_v57, %v5052_v53  ;;  %v2483_v6 = vpop.f32.mrb[1].mxu1 }
 0x1b1   : > { %v2484_v20 = vadd.f32 %v5052_v53, %v2483_v6 }
 0x1b2   : > { %v2579_v56 = vmul.f32 %v3001_v11, %v2489_v8 }
 0x1b3   : > { %v2578_v15 = vmul.f32 %v3002_v9, %v2484_v20 }
 0x1b4   : > { %2611 = vst [vmem:[%s5075_s19 + $0x88] sm:$0xff] %v2579_v56  ;;  %v3017_v56 = vld [vmem:[%s3301_s27 + $0x58] sm:$0xff] }
 0x1b5   : > { %2610 = vst [vmem:[%s5075_s19 + $0x80] sm:$0xff] %v2578_v15  ;;  %v3018_v15 = vld [vmem:[%s3301_s27 + $0x50] sm:$0xff] }
 0x1ce   : > { %v2831_v61 = vpop.f32.mrb[2].mxu0 }
 0x1cf   : > { %v2419_v28 = vadd.f32 %v2831_v61, %v5052_v53  ;;  %v2413_v16 = vpop.f32.mrb[3].mxu0 }
 0x1d0   : > { %v2414_v41 = vadd.f32 %v5052_v53, %v2413_v16 }
 0x1d1   : > { %v2565_v52 = vmul.f32 %v3003_v2, %v2419_v28 }
 0x1d2   : > { %v2564_v47 = vmul.f32 %v3004_v4, %v2414_v41 }
 0x1d3   : > { %2597 = vst [vmem:[%s5075_s19 + $0x18] sm:$0xff] %v2565_v52  ;;  %v3019_v52 = vld [vmem:[%s3301_s27 + $0xc8] sm:$0xff] }
 0x1d4   : > { %2596 = vst [vmem:[%s5075_s19 + $0x10] sm:$0xff] %v2564_v47  ;;  %v3020_v47 = vld [vmem:[%s3301_s27 + $0xc0] sm:$0xff] }
 0x1f6   : > { %v2855_v12 = vpop.f32.mrb[2].mxu1 }
 0x1f7   : > { %v2499_v13 = vadd.f32 %v2855_v12, %v5052_v53  ;;  %v2493_v54 = vpop.f32.mrb[3].mxu1 }
 0x1f8   : > { %v2494_v50 = vadd.f32 %v5052_v53, %v2493_v54 }
 0x1f9   : > { %v2581_v43 = vmul.f32 %v3005_v33, %v2499_v13 }
 0x1fa   : > { %v2580_v58 = vmul.f32 %v3006_v26, %v2494_v50 }
 0x1fb   : > { %2613 = vst [vmem:[%s5075_s19 + $0x98] sm:$0xff] %v2581_v43 }
 0x1fc   : > { %2612 = vst [vmem:[%s5075_s19 + $0x90] sm:$0xff] %v2580_v58 }
 0x203   : > { %v2834_v30 = vpop.f32.mrb[4].mxu0 }
 0x204   : > { %v2429_v45 = vadd.f32 %v2834_v30, %v5052_v53  ;;  %v2423_v38 = vpop.f32.mrb[5].mxu0  ;;  %v3021_v30 = vld [vmem:[%s3301_s27 + $0x68] sm:$0xff] }
 0x205   : > { %v2424_v3 = vadd.f32 %v5052_v53, %v2423_v38 }
 0x206   : > { %v2567_v0 = vmul.f32 %v3007_v31, %v2429_v45 }
 0x207   : > { %v2566_v22 = vmul.f32 %v3008_v21, %v2424_v3  ;;  %v3022_v3 = vld [vmem:[%s3301_s27 + $0x60] sm:$0xff] }
 0x208   : > { %2599 = vst [vmem:[%s5075_s19 + $0x28] sm:$0xff] %v2567_v0  ;;  %v3023_v0 = vld [vmem:[%s3301_s27 + $0xd8] sm:$0xff] }
 0x209   : > { %2598 = vst [vmem:[%s5075_s19 + $0x20] sm:$0xff] %v2566_v22  ;;  %v3024_v22 = vld [vmem:[%s3301_s27 + $0xd0] sm:$0xff] }
 0x21a   : > { %v2858_v7 = vpop.f32.mrb[4].mxu1 }
 0x21b   : > { %v2509_v46 = vadd.f32 %v2858_v7, %v5052_v53  ;;  %v2503_v62 = vpop.f32.mrb[5].mxu1 }
 0x21c   : > { %v2504_v51 = vadd.f32 %v5052_v53, %v2503_v62 }
 0x21d   : > { %v2583_v59 = vmul.f32 %v3009_v44, %v2509_v46 }
 0x21e   : > { %v2582_v17 = vmul.f32 %v3010_v18, %v2504_v51 }
 0x21f   : > { %2615 = vst [vmem:[%s5075_s19 + $0xa8] sm:$0xff] %v2583_v59 }
 0x220   : > { %2614 = vst [vmem:[%s5075_s19 + $0xa0] sm:$0xff] %v2582_v17 }
 0x225   : > { %v2837_v39 = vpop.f32.mrb[6].mxu0 }
 0x226   : > { %v2439_v36 = vadd.f32 %v2837_v39, %v5052_v53  ;;  %v2433_v63 = vpop.f32.mrb[7].mxu0  ;;  %v5420_v39 = vld [vmem:[#allocation13_spill] sm:$0xff] }
 0x227   : > { %v2434_v29 = vadd.f32 %v5052_v53, %v2433_v63 }
 0x228   : > { %v2569_v60 = vmul.f32 %v3011_v27, %v2439_v36 }
 0x229   : > { %v2568_v49 = vmul.f32 %v3012_v55, %v2434_v29  ;;  %v5421_v29 = vld [vmem:[#allocation14_spill] sm:$0xff] }
 0x22a   : > { %2601 = vst [vmem:[%s5075_s19 + $0x38] sm:$0xff] %v2569_v60  ;;  %v3025_v60 = vld [vmem:[%s3301_s27 + $0x78] sm:$0xff] }
 0x22b   : > { %2600 = vst [vmem:[%s5075_s19 + $0x30] sm:$0xff] %v2568_v49 }
 0x234   : > { %v2840_v40 = vpop.f32.mrb[8].mxu0 }
 0x235   : > { %v2449_v32 = vadd.f32 %v2840_v40, %v5052_v53  ;;  %v2443_v34 = vpop.f32.mrb[9].mxu0  ;;  %v3026_v40 = vld [vmem:[%s3301_s27 + $0x70] sm:$0xff]  ;;  %s2627_s27 = scalar_lea.sflag [#allocation4], %s3295_s22 }
 0x236   : > { %v2444_v42 = vadd.f32 %v5052_v53, %v2443_v34 }
 0x237   : > { %v2571_v25 = vmul.f32 %v3013_v35, %v2449_v32 }
 0x238   : > { %v2570_v14 = vmul.f32 %v3014_v23, %v2444_v42 }
 0x239   : > { %2603 = vst [vmem:[%s5075_s19 + $0x48] sm:$0xff] %v2571_v25  ;;  %v5422_v25 = vld [vmem:[#allocation24_spill] sm:$0xff] }
 0x23a   : > { %2602 = vst [vmem:[%s5075_s19 + $0x40] sm:$0xff] %v2570_v14  ;;  %v5423_v14 = vld [vmem:[#allocation19_spill] sm:$0xff] }
 0x23c   : > { %v2861_v24 = vpop.f32.mrb[6].mxu1 }
 0x23d   : > { %v2519_v37 = vadd.f32 %v2861_v24, %v5052_v53  ;;  %v2513_v10 = vpop.f32.mrb[7].mxu1 }
 0x23e   : > { %v2514_v19 = vadd.f32 %v5052_v53, %v2513_v10 }
 0x23f   : > { %v2585_v5 = vmul.f32 %v3015_v48, %v2519_v37 }
 0x240   : > { %v2584_v57 = vmul.f32 %v3016_v1, %v2514_v19 }
 0x241   : > { %2617 = vst [vmem:[%s5075_s19 + $0xb8] sm:$0xff] %v2585_v5 }
 0x242   : > { %2616 = vst [vmem:[%s5075_s19 + $0xb0] sm:$0xff] %v2584_v57 }
 0x249   : > { %v2843_v8 = vpop.f32.mrb[10].mxu0 }
 0x24a   : > { %v2459_v6 = vadd.f32 %v2843_v8, %v5052_v53  ;;  %v2453_v20 = vpop.f32.mrb[11].mxu0 }
 0x24b   : > { %v2454_v11 = vadd.f32 %v5052_v53, %v2453_v20 }
 0x24c   : > { %v2573_v9 = vmul.f32 %v3017_v56, %v2459_v6 }
 0x24d   : > { %v2572_v61 = vmul.f32 %v3018_v15, %v2454_v11 }
 0x24e   : > { %2605 = vst [vmem:[%s5075_s19 + $0x58] sm:$0xff] %v2573_v9 }
 0x24f   : > { %2604 = vst [vmem:[%s5075_s19 + $0x50] sm:$0xff] %v2572_v61 }
 0x255   : > { %v2864_v28 = vpop.f32.mrb[8].mxu1 }
 0x256   : > { %v2529_v16 = vadd.f32 %v2864_v28, %v5052_v53  ;;  %v2523_v41 = vpop.f32.mrb[9].mxu1 }
 0x257   : > { %v2524_v2 = vadd.f32 %v5052_v53, %v2523_v41 }
 0x258   : > { %v2587_v4 = vmul.f32 %v3019_v52, %v2529_v16 }
 0x259   : > { %v2586_v12 = vmul.f32 %v3020_v47, %v2524_v2 }
 0x25a   : > { %2619 = vst [vmem:[%s5075_s19 + $0xc8] sm:$0xff] %v2587_v4 }
 0x25b   : > { %2618 = vst [vmem:[%s5075_s19 + $0xc0] sm:$0xff] %v2586_v12 }
 0x25f   : > { %v2846_v13 = vpop.f32.mrb[12].mxu0 }
 0x260   : > { %v2469_v54 = vadd.f32 %v2846_v13, %v5052_v53  ;;  %v2463_v50 = vpop.f32.mrb[13].mxu0 }
 0x261   : > { %v2867_v33 = vpop.f32.mrb[10].mxu1  ;;  %v2464_v43 = vadd.f32 %v5052_v53, %v2463_v50 }
 0x262   : > { %v2539_v26 = vadd.f32 %v2867_v33, %v5052_v53  ;;  %v2533_v58 = vpop.f32.mrb[11].mxu1  ;;  %v2575_v45 = vmul.f32 %v3021_v30, %v2469_v54 }
 0x263   : > { %v2534_v38 = vadd.f32 %v5052_v53, %v2533_v58  ;;  %v2574_v31 = vmul.f32 %v3022_v3, %v2464_v43 }
 0x264   : > { %v2589_v21 = vmul.f32 %v3023_v0, %v2539_v26  ;;  %2607 = vst [vmem:[%s5075_s19 + $0x68] sm:$0xff] %v2575_v45 }
 0x265   : > { %v2588_v7 = vmul.f32 %v3024_v22, %v2534_v38  ;;  %2606 = vst [vmem:[%s5075_s19 + $0x60] sm:$0xff] %v2574_v31  ;;  %v2870_v46 = vpop.f32.mrb[12].mxu1 }
 0x266   : > { %2621 = vst [vmem:[%s5075_s19 + $0xd8] sm:$0xff] %v2589_v21  ;;  %v2549_v62 = vadd.f32 %v2870_v46, %v5052_v53  ;;  %v2543_v51 = vpop.f32.mrb[13].mxu1  ;;  %v2849_v44 = vpop.f32.mrb[14].mxu0 }
 0x267   : > { %2620 = vst [vmem:[%s5075_s19 + $0xd0] sm:$0xff] %v2588_v7  ;;  %v2544_v59 = vadd.f32 %v5052_v53, %v2543_v51  ;;  %v2479_v18 = vadd.f32 %v2849_v44, %v5052_v53  ;;  %v2473_v17 = vpop.f32.mrb[15].mxu0 }
 0x268   : > { %v2591_v36 = vmul.f32 %v2549_v62, %v5420_v39  ;;  %v2474_v63 = vadd.f32 %v5052_v53, %v2473_v17 }
 0x269   : > { %v2590_v27 = vmul.f32 %v2544_v59, %v5421_v29  ;;  %v2577_v55 = vmul.f32 %v3025_v60, %v2479_v18  ;;  %v2873_v49 = vpop.f32.mrb[14].mxu1 }
 0x26a   : > { %2623 = vst [vmem:[%s5075_s19 + $0xe8] sm:$0xff] %v2591_v36  ;;  %v2576_v32 = vmul.f32 %v3026_v40, %v2474_v63  ;;  %v2559_v34 = vadd.f32 %v2873_v49, %v5052_v53  ;;  %v2553_v42 = vpop.f32.mrb[15].mxu1 }
 0x26b   : > { %2622 = vst [vmem:[%s5075_s19 + $0xe0] sm:$0xff] %v2590_v27  ;;  %2609 = vst [vmem:[%s5075_s19 + $0x78] sm:$0xff] %v2577_v55  ;;  %v2554_v35 = vadd.f32 %v5052_v53, %v2553_v42 }
 0x26c   : > { %2608 = vst [vmem:[%s5075_s19 + $0x70] sm:$0xff] %v2576_v32  ;;  %v2593_v23 = vmul.f32 %v2559_v34, %v5422_v25 }
 0x26d   : > { %v2592_v24 = vmul.f32 %v2554_v35, %v5423_v14 }
 0x26e   : > { %2625 = vst [vmem:[%s5075_s19 + $0xf8] sm:$0xff] %v2593_v23 }
 0x26f   : > { %2624 = vst [vmem:[%s5075_s19 + $0xf0] sm:$0xff] %v2592_v24 }
 0x270   : > { %3070 = shalt.err (!%p3067_p2)
}
 0x271   : > { %s3071_s28 = scalar_lea.hbm %s5171_s21, 4096  ;;  %s3075_s26 = scalar_lea.hbm %s5231_s11, 8192 }
 0x272   : > { %p3072_p4 = scmp.ne.s32.totalorder %s5171_s21, %s3071_s28  ;;  %p3076_p9 = scmp.lt.u32.totalorder %s5171_s21, %s5231_s11 }
 0x273   : > { %p3077_p1 = scmp.lt.u32.totalorder %s3075_s26, %s3071_s28  ;;  %p3079_p6 = scmp.lt.u32.totalorder %s3071_s28, %s5171_s21 }
 0x274   : > { %p3073_p5 = pnand %p3072_p4, %p5424_p11 }
 0x275   : > { %p3078_p3 = por %p3077_p1, %p3076_p9 }
 0x276   : > { %p3074_p7 = pneg %p3073_p5 }
 0x277   : > { %p3080_p12 = por %p3079_p6, %p3078_p3 }
 0x279   : > { %p3081_p13 = pnand %p3080_p12, %p3074_p7 }
 0x27b   : > { %3084 = shalt.err (!%p3081_p13)
}
 0x27c   : > { %s3129_s15 = smov 128   ;;  %s3130_s12 = smov 8  }
 0x27d   : > { %2924 = dma.vmem_to_hbm [thread:$0]  (%p5424_p11), %s5173_s24, 4096, %s5171_s21, %s2627_s27, %s3129_s15, %s3129_s15, %s3130_s12  }
 0x27e PF: > { %s2655_s0 = sand.u32 1, %s3111_s17   ;;  %p5425_p8 = scmp.ne.s32.totalorder %s5318_s30, 0 }
 0x27f   : > { %p5426_p10 = scmp.ge.s32.totalorder %s3123_s20, 2  ;;  %s2656_s14 = scalar_lea.sflag [#allocation4], %s2655_s0 }
 0x281   : > { %p2931_p0 = pnand %p5426_p10, %p5425_p8 }
 0x283   : > { %3106 = dma.done.wait (!%p2931_p0), %s2656_s14, 4096  }
 0x284   : > { %3108 = vsyncadd (!%p2931_p0), %s2656_s14, 4294963200  ;;  %s5427_s28 = sld [smem:[#allocation8_spill]]  ;;  %s5428_s19 = sld [smem:[#allocation9_spill]] }
 0x285   : > { %p24_p2 = scmp.ge.s32.totalorder %s3216_s23, 4   ;;  %s5429_s17 = smov %s3115_s18 }
 0x286   : > { %s5431_s20 = smov %s3216_s23 }
 0x287   :  { %26 = sbr.rel (!%p24_p2) target bundleno = 7 (0x7), region = 109 }
 0x28a   : > { %s5430_s18 = smov %s5427_s28 }
 0x28e   :  { %2661 = vsyncpa [#allocation3], 1 }
 0x28f   :  { %2663 = vsyncpa [#allocation3 + $0x1], 1 }
 0x290   :  { %2664 = vsyncpa [#allocation4], 1 }
 0x291   :  { %2666 = vsyncpa [#allocation4 + $0x1], 1 }

</bundles_post_ra>
